<compile_context>
chip_gen: v7x
topology: tpu7x:2x2x1
jax: 0.10.0
libtpu: 0.0.40
codegen_flags: <defaults>
</compile_context>

<pallas_src>
import functools

import jax
import jax.numpy as jnp
from jax import lax
from jax.experimental import pallas as pl
from jax.experimental.pallas import tpu as pltpu

DIV_SA = 3   # matches the module-level `div_sa = 3`


def _fused_kernel(x_ref, w0_ref, b0_ref, wr_ref, br_ref, wsa_ref, wfc_ref,
                  bfc_ref, o_ref, hp_ref, *,
                  T, c_in, cp, f_in, nf, ks, n_rest, div, step, starts,
                  d_model, b_blk):
    f32 = jnp.float32
    rows = T * cp                   # real rows per batch element, (t, c) layout
    prow = (ks // 2) * cp           # halo rows per side ('same' time padding)
    stride_p = rows + 2 * prow      # padded rows per batch element in scratch
    c_max = hp_ref.shape[1]

    # ---- zero the time-padding halo rows of the persistent scratch ----------
    zero_halo = jnp.zeros((prow, c_max), f32)
    for b in range(b_blk):
        base = b * stride_p
        hp_ref[base:base + prow, :] = zero_halo
        hp_ref[base + prow + rows:base + stride_p, :] = zero_halo

    # ---- stage the input slab into the scratch middles -----------------------
    for b in range(b_blk):
        mid = b * stride_p + prow
        hp_ref[mid:mid + rows, :f_in] = x_ref[b]

    # ---- conv stack: Conv2d(k=(ks,1), 'same') + ReLU, one im2col dot / layer --
    def conv_layer(w_mat, bias_row, cols_in):
        taps = []
        for dt in range(ks):
            parts = [hp_ref[b * stride_p + dt * cp:
                            b * stride_p + dt * cp + rows, :cols_in]
                     for b in range(b_blk)]
            taps.append(parts[0] if b_blk == 1 else
                        jnp.concatenate(parts, axis=0))
        im2col = taps[0] if ks == 1 else jnp.concatenate(taps, axis=1)
        acc = jnp.dot(im2col, w_mat, preferred_element_type=f32) + bias_row
        return jnp.maximum(acc, 0.0)                     # (b_blk*rows, nf)

    h = conv_layer(w0_ref[...], b0_ref[...], f_in)
    for l in range(n_rest):
        # write this layer's output into the scratch middles (halos stay zero)
        for b in range(b_blk):
            mid = b * stride_p + prow
            hp_ref[mid:mid + rows, :nf] = h[b * rows:(b + 1) * rows, :]
        h = conv_layer(wr_ref[l], br_ref[l:l + 1, :], nf)

    # ---- gather all (batch, window) operands, then ONE projection matmul -----
    # TODO(synk): for very large T/step switch this static unroll to a
    # lax.fori_loop that stages windows through a VMEM scratch.
    n_win = b_blk * step
    blocks = []
    for b in range(b_blk):
        for w in range(step):
            s0 = starts[w]
            parts = [h[b * rows + (s0 + dt) * cp:
                       b * rows + (s0 + dt) * cp + cp, :] for dt in range(div)]
            blocks.append(jnp.concatenate(parts, axis=1))     # (cp, div*nf)
    a_in = jnp.concatenate(blocks, axis=0)                    # (n_win*cp, div*nf)

    proj = jnp.dot(a_in, wsa_ref[...], preferred_element_type=f32)
    proj = proj.reshape(n_win, cp, 4 * nf)
    fT = proj[:, :, 0:nf]
    gT = proj[:, :, nf:2 * nf]
    hT = proj[:, :, 2 * nf:3 * nf]            # gamma already folded into W_v
    v1T = proj[:, :, 3 * nf:4 * nf]

    # scores kept transposed: sT[n, j, i] == s[i, j]; softmax over i (last axis)
    sT = jnp.einsum('njo,nio->nji', gT, fT, preferred_element_type=f32)
    col_i = lax.broadcasted_iota(jnp.int32, (n_win, cp, cp), 2)
    sT = jnp.where(col_i < c_in, sT, -1e30)   # mask padded c positions
    m = jnp.max(sT, axis=-1, keepdims=True)
    e = jnp.exp(sT - m)
    betaT = e / jnp.sum(e, axis=-1, keepdims=True)
    oT = jnp.einsum('nji,nio->njo', betaT, hT, preferred_element_type=f32) + v1T
    att = jnp.maximum(oT, 0.0)                # (n_win, cp, nf), layout (win, c, f)

    # ---- fused Linear + ReLU across all windows (one matmul, one store) ------
    flat = jnp.concatenate([att[:, c, :] for c in range(cp)],
                           axis=1)                            # (n_win, cp*nf)
    y = jnp.dot(flat, wfc_ref[...], preferred_element_type=f32) + bfc_ref[...]
    o_ref[...] = jnp.maximum(y, 0.0)


def _pick_batch_block(B, step, cap=8):
    """Largest batch block <= cap that keeps the 2D output BlockSpec legal."""
    best = 1 if (step % 8 == 0 or B == 1) else None
    for cand in range(2, min(B, cap) + 1):
        if B % cand == 0 and (cand == B or (cand * step) % 8 == 0):
            best = cand
    if best is None:
        best = B        # grid of 1, block == full array: always legal
    return best


def timefreq_feature_extractor_attention(x, params, *, div=DIV_SA,
                                          max_batch_block=8):
    """Pallas forward of TimeFreq_FeatureExtractor_attention (inference)."""
    # TODO(synk): nn.Dropout(0.2) is an identity at inference; training-mode
    # stochastic dropout is not implemented here.
    B, c_in, f_in, T = x.shape
    conv_w, conv_b = params["conv_w"], params["conv_b"]
    nf = conv_w[0].shape[0]
    ks = conv_w[0].shape[2]
    d_model = params["fc_w"].shape[0]
    assert T >= div, "need at least div_sa time steps"
    step = -(-T // div)
    starts = tuple(w * div if w < step - 1 else T - div for w in range(step))

    cp = ((c_in + 7) // 8) * 8      # pad the c "position" axis so slices align
    c_max = max(f_in, nf)
    b_blk = _pick_batch_block(B, step, max_batch_block)
    n_rest = len(conv_w) - 1

    # -------- operand pre-folding (done once, outside the kernel) -------------
    # input (B, c_in, f_in, T) -> (B, T, cp, f_in) -> (B, T*cp, f_in)
    xk = jnp.transpose(x, (0, 3, 1, 2)).astype(jnp.float32)
    xk = jnp.pad(xk, ((0, 0), (0, 0), (0, cp - c_in), (0, 0)))
    xk = xk.reshape(B, T * cp, f_in)

    def conv_fold(w):   # (nf, Cin, ks, 1) -> (ks*Cin, nf), row index = dt*Cin + i
        nf_, cin_, ks_, _ = w.shape
        return jnp.transpose(w[:, :, :, 0], (2, 1, 0)).reshape(
            ks_ * cin_, nf_).astype(jnp.float32)

    w0 = conv_fold(conv_w[0])                                   # (ks*f_in, nf)
    b0 = conv_b[0].reshape(1, nf).astype(jnp.float32)
    if n_rest > 0:
        wr = jnp.stack([conv_fold(w) for w in conv_w[1:]], 0)   # (L-1, ks*nf, nf)
        br = jnp.stack(conv_b[1:], 0).astype(jnp.float32)       # (L-1, nf)
    else:
        wr = jnp.zeros((1, ks * nf, nf), jnp.float32)
        br = jnp.zeros((1, nf), jnp.float32)

    def sa_fold(w):     # (nf, div*nf, 1), in idx = f*div+dt -> (div*nf, nf) rows dt*nf+f
        w2 = w[:, :, 0].reshape(nf, nf, div)                    # (o, f, dt)
        return jnp.transpose(w2, (2, 1, 0)).reshape(div * nf, nf)

    gamma = jnp.asarray(params["gamma"], jnp.float32).reshape(())
    wsa = jnp.concatenate(
        [sa_fold(params["sa_q"]), sa_fold(params["sa_k"]),
         gamma * sa_fold(params["sa_v"]), sa_fold(params["sa_v1"])],
        axis=1).astype(jnp.float32)                             # (div*nf, 4*nf)

    # fc weight (d_model, nf*c_in), flat j = f*c_in + c -> rows c*nf + f,
    # padded c rows get zero weight so the cp-padding never reaches the output.
    wfc3 = jnp.transpose(params["fc_w"].reshape(d_model, nf, c_in), (2, 1, 0))
    wfc = jnp.pad(wfc3, ((0, cp - c_in), (0, 0), (0, 0))).reshape(
        cp * nf, d_model).astype(jnp.float32)
    bfc = params["fc_b"].reshape(1, d_model).astype(jnp.float32)

    kernel = functools.partial(
        _fused_kernel, T=T, c_in=c_in, cp=cp, f_in=f_in, nf=nf, ks=ks,
        n_rest=n_rest, div=div, step=step, starts=starts, d_model=d_model,
        b_blk=b_blk)

    stride_p = (T + ks - 1) * cp
    # rough VMEM footprint; only raise the scoped limit when actually needed
    blk_bytes = 4 * (b_blk * T * cp * f_in + b_blk * step * d_model)
    weight_bytes = 4 * (w0.size + b0.size + wr.size + br.size + wsa.size +
                        wfc.size + bfc.size)
    scratch_bytes = 4 * b_blk * stride_p * c_max
    live_bytes = 4 * b_blk * T * cp * (ks * c_max + 2 * nf)
    vmem_est = 2 * blk_bytes + 2 * weight_bytes + scratch_bytes + 3 * live_bytes
    vmem_limit = None
    if vmem_est > 12 * 1024 * 1024:
        vmem_limit = int(min(vmem_est * 3 // 2, 96 * 1024 * 1024))

    out2d = pl.pallas_call(
        kernel,
        out_shape=jax.ShapeDtypeStruct((B * step, d_model), jnp.float32),
        grid_spec=pltpu.PrefetchScalarGridSpec(
            num_scalar_prefetch=0,
            grid=(B // b_blk,),
            in_specs=[
                pl.BlockSpec((b_blk, T * cp, f_in), lambda i: (i, 0, 0)),
                pl.BlockSpec(w0.shape, lambda i: (0, 0)),
                pl.BlockSpec(b0.shape, lambda i: (0, 0)),
                pl.BlockSpec(wr.shape, lambda i: (0, 0, 0)),
                pl.BlockSpec(br.shape, lambda i: (0, 0)),
                pl.BlockSpec(wsa.shape, lambda i: (0, 0)),
                pl.BlockSpec(wfc.shape, lambda i: (0, 0)),
                pl.BlockSpec(bfc.shape, lambda i: (0, 0)),
            ],
            out_specs=pl.BlockSpec((b_blk * step, d_model), lambda i: (i, 0)),
            scratch_shapes=[pltpu.VMEM((b_blk * stride_p, c_max), jnp.float32)],
        ),
        compiler_params=pltpu.CompilerParams(
            dimension_semantics=("parallel",),
            vmem_limit_bytes=vmem_limit,
        ),
    )(xk, w0, b0, wr, br, wsa, wfc, bfc)

    # leading-dim split is a metadata-only reshape in XLA (row-major compatible)
    return out2d.reshape(B, step, d_model)


# ----------------------------- pure-JAX reference -----------------------------
def _reference_forward(x, params, *, div=DIV_SA):
    hi = lax.Precision.HIGHEST
    h = jnp.transpose(x, (0, 2, 3, 1))                       # (B, f_in, T, c_in)
    for w, b in zip(params["conv_w"], params["conv_b"]):
        h = lax.conv_general_dilated(h, w, (1, 1), "SAME",
                                     dimension_numbers=("NCHW", "OIHW", "NCHW"),
                                     precision=hi)
        h = jax.nn.relu(h + b[None, :, None, None])
    B, F, L, C = h.shape
    step = -(-L // div)
    wq = params["sa_q"][:, :, 0]
    wk = params["sa_k"][:, :, 0]
    wv = params["sa_v"][:, :, 0]
    wv1 = params["sa_v1"][:, :, 0]
    gamma = params["gamma"]
    outs = []
    for idx in range(step):
        sl = h[:, :, idx * div:(idx + 1) * div, :] if idx < step - 1 else h[:, :, L - div:, :]
        t = sl.reshape(B, F * div, C)
        f_ = jnp.einsum("oi,bic->boc", wq, t, precision=hi)
        g_ = jnp.einsum("oi,bic->boc", wk, t, precision=hi)
        hh = jnp.einsum("oi,bic->boc", wv, t, precision=hi)
        v1 = jnp.einsum("oi,bic->boc", wv1, t, precision=hi)
        s = jnp.einsum("boi,boj->bij", f_, g_, precision=hi)
        beta = jax.nn.softmax(s, axis=1)
        o = gamma * jnp.einsum("bfi,bij->bfj", hh, beta, precision=hi) + v1
        outs.append(o)
    refined = jnp.stack(outs, axis=-1)                       # (B, F, C, step)
    z = jax.nn.relu(jnp.transpose(refined, (0, 3, 1, 2)))    # (B, step, F, C)
    z = z.reshape(B, step, F * C)
    y = jnp.einsum("bsi,oi->bso", z, params["fc_w"], precision=hi) + params["fc_b"]
    return jax.nn.relu(y)


def init_params(key, input_shape, number_filter, token_d_model,
                conv_number=4, filter_size=5):
    B, c_in, f_in, T = input_shape
    nf = number_filter
    keys = jax.random.split(key, 2 * conv_number + 6)
    conv_w, conv_b = [], []
    for i in range(conv_number):
        cin = f_in if i == 0 else nf
        conv_w.append(0.2 * jax.random.normal(keys[2 * i], (nf, cin, filter_size, 1),
                                              jnp.float32))
        conv_b.append(0.1 * jax.random.normal(keys[2 * i + 1], (nf,), jnp.float32))
    n_ch = nf * DIV_SA
    k = 2 * conv_number

    def proj(kk):
        return 0.25 * jax.random.normal(kk, (nf, n_ch, 1), jnp.float32)

    return {
        "conv_w": conv_w, "conv_b": conv_b,
        "sa_q": proj(keys[k]), "sa_k": proj(keys[k + 1]),
        "sa_v": proj(keys[k + 2]), "sa_v1": proj(keys[k + 3]),
        "gamma": jnp.float32(0.5),   # learned scalar; nonzero to exercise attention path
        "fc_w": 0.2 * jax.random.normal(keys[k + 4], (token_d_model, nf * c_in),
                                        jnp.float32),
        "fc_b": 0.1 * jax.random.normal(keys[k + 5], (token_d_model,), jnp.float32),
    }


if __name__ == "__main__":
    key = jax.random.PRNGKey(0)
    kp, kx = jax.random.split(key)

    # small shapes: batch=2, c_in=4, f_in=8, T=10 (not a multiple of 3, so the
    # overlapping last window path is exercised), number_filter=8, d_model=32
    B, c_in, f_in, T = 2, 4, 8, 10
    number_filter, token_d_model = 8, 32

    params = init_params(kp, (B, c_in, f_in, T), number_filter, token_d_model)
    x = jax.random.normal(kx, (B, c_in, f_in, T), jnp.float32)

    out = timefreq_feature_extractor_attention(x, params)
    out = jax.block_until_ready(out)

    ref = _reference_forward(x, params)
    step = -(-T // DIV_SA)
    assert out.shape == (B, step, token_d_model), out.shape
    assert out.dtype == jnp.float32
    max_err = float(jnp.max(jnp.abs(out - ref)))
    assert jnp.allclose(out, ref, atol=2e-3, rtol=2e-3), f"max abs err {max_err}"

    print("KERNEL_OK")
</pallas_src>

<mosaic_0001>
module attributes {stable_mosaic.version = 11 : i64} {
  func.func @_fused_kernel(%arg0: i32, %arg1: memref<2x80x8xf32, #tpu.memory_space<vmem>>, %arg2: memref<40x8xf32, #tpu.memory_space<vmem>>, %arg3: memref<1x8xf32, #tpu.memory_space<vmem>>, %arg4: memref<3x40x8xf32, #tpu.memory_space<vmem>>, %arg5: memref<3x8xf32, #tpu.memory_space<vmem>>, %arg6: memref<24x32xf32, #tpu.memory_space<vmem>>, %arg7: memref<64x32xf32, #tpu.memory_space<vmem>>, %arg8: memref<1x32xf32, #tpu.memory_space<vmem>>, %arg9: memref<8x32xf32, #tpu.memory_space<vmem>>, %arg10: memref<224x8xf32, #tpu.memory_space<vmem>>) attributes {dimension_semantics = [#tpu.dimension_semantics<parallel>], iteration_bounds = array<i64: 1>, scalar_prefetch = 0 : i64, scratch_operands = 1 : i64, tpu.core_type = #tpu.core_type<tc>, window_params = [{transform_indices = @transform_0, window_bounds = array<i64: 2, 80, 8>}, {pipeline_mode = #tpu.pipeline_mode<synchronous>, transform_indices = @transform_1, window_bounds = array<i64: 40, 8>}, {pipeline_mode = #tpu.pipeline_mode<synchronous>, transform_indices = @transform_2, window_bounds = array<i64: 1, 8>}, {pipeline_mode = #tpu.pipeline_mode<synchronous>, transform_indices = @transform_3, window_bounds = array<i64: 3, 40, 8>}, {pipeline_mode = #tpu.pipeline_mode<synchronous>, transform_indices = @transform_4, window_bounds = array<i64: 3, 8>}, {pipeline_mode = #tpu.pipeline_mode<synchronous>, transform_indices = @transform_5, window_bounds = array<i64: 24, 32>}, {pipeline_mode = #tpu.pipeline_mode<synchronous>, transform_indices = @transform_6, window_bounds = array<i64: 64, 32>}, {pipeline_mode = #tpu.pipeline_mode<synchronous>, transform_indices = @transform_7, window_bounds = array<i64: 1, 32>}, {transform_indices = @transform_8, window_bounds = array<i64: 8, 32>}]} {
    %cst = arith.constant 0.000000e+00 : f32
    %0 = vector.broadcast %cst : f32 to vector<16x8xf32>
    %c0 = arith.constant 0 : index
    %c0_0 = arith.constant 0 : index
    %1 = vector.load %arg10[%c0, %c0_0] : memref<224x8xf32, #tpu.memory_space<vmem>>, vector<16x8xf32>
    tpu.vector_store %arg10[%c0, %c0_0], %0 {strides = array<i32>} : memref<224x8xf32, #tpu.memory_space<vmem>>, vector<16x8xf32>,
    %c96 = arith.constant 96 : index
    %c0_1 = arith.constant 0 : index
    %2 = vector.load %arg10[%c96, %c0_1] : memref<224x8xf32, #tpu.memory_space<vmem>>, vector<16x8xf32>
    tpu.vector_store %arg10[%c96, %c0_1], %0 {strides = array<i32>} : memref<224x8xf32, #tpu.memory_space<vmem>>, vector<16x8xf32>,
    %c112 = arith.constant 112 : index
    %c0_2 = arith.constant 0 : index
    %3 = vector.load %arg10[%c112, %c0_2] : memref<224x8xf32, #tpu.memory_space<vmem>>, vector<16x8xf32>
    tpu.vector_store %arg10[%c112, %c0_2], %0 {strides = array<i32>} : memref<224x8xf32, #tpu.memory_space<vmem>>, vector<16x8xf32>,
    %c208 = arith.constant 208 : index
    %c0_3 = arith.constant 0 : index
    %4 = vector.load %arg10[%c208, %c0_3] : memref<224x8xf32, #tpu.memory_space<vmem>>, vector<16x8xf32>
    tpu.vector_store %arg10[%c208, %c0_3], %0 {strides = array<i32>} : memref<224x8xf32, #tpu.memory_space<vmem>>, vector<16x8xf32>,
    %c0_4 = arith.constant 0 : index
    %c0_5 = arith.constant 0 : index
    %c0_6 = arith.constant 0 : index
    %5 = vector.load %arg1[%c0_4, %c0_5, %c0_6] : memref<2x80x8xf32, #tpu.memory_space<vmem>>, vector<1x80x8xf32>
    %6 = vector.shape_cast %5 : vector<1x80x8xf32> to vector<80x8xf32>
    %c16 = arith.constant 16 : index
    %c0_7 = arith.constant 0 : index
    %7 = vector.load %arg10[%c16, %c0_7] : memref<224x8xf32, #tpu.memory_space<vmem>>, vector<80x8xf32>
    tpu.vector_store %arg10[%c16, %c0_7], %6 {strides = array<i32>} : memref<224x8xf32, #tpu.memory_space<vmem>>, vector<80x8xf32>,
    %c1 = arith.constant 1 : index
    %c0_8 = arith.constant 0 : index
    %c0_9 = arith.constant 0 : index
    %8 = vector.load %arg1[%c1, %c0_8, %c0_9] : memref<2x80x8xf32, #tpu.memory_space<vmem>>, vector<1x80x8xf32>
    %9 = vector.shape_cast %8 : vector<1x80x8xf32> to vector<80x8xf32>
    %c128 = arith.constant 128 : index
    %c0_10 = arith.constant 0 : index
    %10 = vector.load %arg10[%c128, %c0_10] : memref<224x8xf32, #tpu.memory_space<vmem>>, vector<80x8xf32>
    tpu.vector_store %arg10[%c128, %c0_10], %9 {strides = array<i32>} : memref<224x8xf32, #tpu.memory_space<vmem>>, vector<80x8xf32>,
    %c0_11 = arith.constant 0 : index
    %c0_12 = arith.constant 0 : index
    %11 = vector.load %arg2[%c0_11, %c0_12] : memref<40x8xf32, #tpu.memory_space<vmem>>, vector<40x8xf32>
    %c0_13 = arith.constant 0 : index
    %c0_14 = arith.constant 0 : index
    %12 = vector.load %arg3[%c0_13, %c0_14] : memref<1x8xf32, #tpu.memory_space<vmem>>, vector<1x8xf32>
    %c0_15 = arith.constant 0 : index
    %c0_16 = arith.constant 0 : index
    %13 = vector.load %arg10[%c0_15, %c0_16] : memref<224x8xf32, #tpu.memory_space<vmem>>, vector<80x8xf32>
    %c112_17 = arith.constant 112 : index
    %c0_18 = arith.constant 0 : index
    %14 = vector.load %arg10[%c112_17, %c0_18] : memref<224x8xf32, #tpu.memory_space<vmem>>, vector<80x8xf32>
    %15 = tpu.concatenate %13, %14 in 0 : vector<80x8xf32>, vector<80x8xf32> -> vector<160x8xf32>
    %c8 = arith.constant 8 : index
    %c0_19 = arith.constant 0 : index
    %16 = vector.load %arg10[%c8, %c0_19] : memref<224x8xf32, #tpu.memory_space<vmem>>, vector<80x8xf32>
    %c120 = arith.constant 120 : index
    %c0_20 = arith.constant 0 : index
    %17 = vector.load %arg10[%c120, %c0_20] : memref<224x8xf32, #tpu.memory_space<vmem>>, vector<80x8xf32>
    %18 = tpu.concatenate %16, %17 in 0 : vector<80x8xf32>, vector<80x8xf32> -> vector<160x8xf32>
    %c16_21 = arith.constant 16 : index
    %c0_22 = arith.constant 0 : index
    %19 = vector.load %arg10[%c16_21, %c0_22] : memref<224x8xf32, #tpu.memory_space<vmem>>, vector<80x8xf32>
    %c128_23 = arith.constant 128 : index
    %c0_24 = arith.constant 0 : index
    %20 = vector.load %arg10[%c128_23, %c0_24] : memref<224x8xf32, #tpu.memory_space<vmem>>, vector<80x8xf32>
    %21 = tpu.concatenate %19, %20 in 0 : vector<80x8xf32>, vector<80x8xf32> -> vector<160x8xf32>
    %c24 = arith.constant 24 : index
    %c0_25 = arith.constant 0 : index
    %22 = vector.load %arg10[%c24, %c0_25] : memref<224x8xf32, #tpu.memory_space<vmem>>, vector<80x8xf32>
    %c136 = arith.constant 136 : index
    %c0_26 = arith.constant 0 : index
    %23 = vector.load %arg10[%c136, %c0_26] : memref<224x8xf32, #tpu.memory_space<vmem>>, vector<80x8xf32>
    %24 = tpu.concatenate %22, %23 in 0 : vector<80x8xf32>, vector<80x8xf32> -> vector<160x8xf32>
    %c32 = arith.constant 32 : index
    %c0_27 = arith.constant 0 : index
    %25 = vector.load %arg10[%c32, %c0_27] : memref<224x8xf32, #tpu.memory_space<vmem>>, vector<80x8xf32>
    %c144 = arith.constant 144 : index
    %c0_28 = arith.constant 0 : index
    %26 = vector.load %arg10[%c144, %c0_28] : memref<224x8xf32, #tpu.memory_space<vmem>>, vector<80x8xf32>
    %27 = tpu.concatenate %25, %26 in 0 : vector<80x8xf32>, vector<80x8xf32> -> vector<160x8xf32>
    %28 = tpu.concatenate %15, %18, %21, %24, %27 in 1 : vector<160x8xf32>, vector<160x8xf32>, vector<160x8xf32>, vector<160x8xf32>, vector<160x8xf32> -> vector<160x40xf32>
    %cst_29 = arith.constant dense<0.000000e+00> : vector<160x8xf32>
    %29 = tpu.matmul %28, %11, %cst_29 {dimension_numbers = #tpu.dot_dimension_numbers<[1], [0], [0], [1], [0, 0, 1, 1], [], []>} : vector<160x40xf32>, vector<40x8xf32>, vector<160x8xf32> -> vector<160x8xf32>
    %30 = vector.broadcast %12 : vector<1x8xf32> to vector<160x8xf32>
    %31 = arith.addf %29, %30 : vector<160x8xf32>
    %cst_30 = arith.constant 0.000000e+00 : f32
    %32 = vector.broadcast %cst_30 : f32 to vector<160x8xf32>
    %33 = arith.maximumf %31, %32 : vector<160x8xf32>
    %34 = vector.extract_strided_slice %33 {offsets = [0, 0], sizes = [80, 8], strides = [1, 1]} : vector<160x8xf32> to vector<80x8xf32>
    %c16_31 = arith.constant 16 : index
    %c0_32 = arith.constant 0 : index
    %35 = vector.load %arg10[%c16_31, %c0_32] : memref<224x8xf32, #tpu.memory_space<vmem>>, vector<80x8xf32>
    tpu.vector_store %arg10[%c16_31, %c0_32], %34 {strides = array<i32>} : memref<224x8xf32, #tpu.memory_space<vmem>>, vector<80x8xf32>,
    %36 = vector.extract_strided_slice %33 {offsets = [80, 0], sizes = [80, 8], strides = [1, 1]} : vector<160x8xf32> to vector<80x8xf32>
    %c128_33 = arith.constant 128 : index
    %c0_34 = arith.constant 0 : index
    %37 = vector.load %arg10[%c128_33, %c0_34] : memref<224x8xf32, #tpu.memory_space<vmem>>, vector<80x8xf32>
    tpu.vector_store %arg10[%c128_33, %c0_34], %36 {strides = array<i32>} : memref<224x8xf32, #tpu.memory_space<vmem>>, vector<80x8xf32>,
    %c0_35 = arith.constant 0 : index
    %c0_36 = arith.constant 0 : index
    %c0_37 = arith.constant 0 : index
    %38 = vector.load %arg4[%c0_35, %c0_36, %c0_37] : memref<3x40x8xf32, #tpu.memory_space<vmem>>, vector<1x40x8xf32>
    %39 = vector.shape_cast %38 : vector<1x40x8xf32> to vector<40x8xf32>
    %c0_38 = arith.constant 0 : index
    %c0_39 = arith.constant 0 : index
    %40 = vector.load %arg5[%c0_38, %c0_39] : memref<3x8xf32, #tpu.memory_space<vmem>>, vector<1x8xf32>
    %c0_40 = arith.constant 0 : index
    %c0_41 = arith.constant 0 : index
    %41 = vector.load %arg10[%c0_40, %c0_41] : memref<224x8xf32, #tpu.memory_space<vmem>>, vector<80x8xf32>
    %c112_42 = arith.constant 112 : index
    %c0_43 = arith.constant 0 : index
    %42 = vector.load %arg10[%c112_42, %c0_43] : memref<224x8xf32, #tpu.memory_space<vmem>>, vector<80x8xf32>
    %43 = tpu.concatenate %41, %42 in 0 : vector<80x8xf32>, vector<80x8xf32> -> vector<160x8xf32>
    %c8_44 = arith.constant 8 : index
    %c0_45 = arith.constant 0 : index
    %44 = vector.load %arg10[%c8_44, %c0_45] : memref<224x8xf32, #tpu.memory_space<vmem>>, vector<80x8xf32>
    %c120_46 = arith.constant 120 : index
    %c0_47 = arith.constant 0 : index
    %45 = vector.load %arg10[%c120_46, %c0_47] : memref<224x8xf32, #tpu.memory_space<vmem>>, vector<80x8xf32>
    %46 = tpu.concatenate %44, %45 in 0 : vector<80x8xf32>, vector<80x8xf32> -> vector<160x8xf32>
    %c16_48 = arith.constant 16 : index
    %c0_49 = arith.constant 0 : index
    %47 = vector.load %arg10[%c16_48, %c0_49] : memref<224x8xf32, #tpu.memory_space<vmem>>, vector<80x8xf32>
    %c128_50 = arith.constant 128 : index
    %c0_51 = arith.constant 0 : index
    %48 = vector.load %arg10[%c128_50, %c0_51] : memref<224x8xf32, #tpu.memory_space<vmem>>, vector<80x8xf32>
    %49 = tpu.concatenate %47, %48 in 0 : vector<80x8xf32>, vector<80x8xf32> -> vector<160x8xf32>
    %c24_52 = arith.constant 24 : index
    %c0_53 = arith.constant 0 : index
    %50 = vector.load %arg10[%c24_52, %c0_53] : memref<224x8xf32, #tpu.memory_space<vmem>>, vector<80x8xf32>
    %c136_54 = arith.constant 136 : index
    %c0_55 = arith.constant 0 : index
    %51 = vector.load %arg10[%c136_54, %c0_55] : memref<224x8xf32, #tpu.memory_space<vmem>>, vector<80x8xf32>
    %52 = tpu.concatenate %50, %51 in 0 : vector<80x8xf32>, vector<80x8xf32> -> vector<160x8xf32>
    %c32_56 = arith.constant 32 : index
    %c0_57 = arith.constant 0 : index
    %53 = vector.load %arg10[%c32_56, %c0_57] : memref<224x8xf32, #tpu.memory_space<vmem>>, vector<80x8xf32>
    %c144_58 = arith.constant 144 : index
    %c0_59 = arith.constant 0 : index
    %54 = vector.load %arg10[%c144_58, %c0_59] : memref<224x8xf32, #tpu.memory_space<vmem>>, vector<80x8xf32>
    %55 = tpu.concatenate %53, %54 in 0 : vector<80x8xf32>, vector<80x8xf32> -> vector<160x8xf32>
    %56 = tpu.concatenate %43, %46, %49, %52, %55 in 1 : vector<160x8xf32>, vector<160x8xf32>, vector<160x8xf32>, vector<160x8xf32>, vector<160x8xf32> -> vector<160x40xf32>
    %cst_60 = arith.constant dense<0.000000e+00> : vector<160x8xf32>
    %57 = tpu.matmul %56, %39, %cst_60 {dimension_numbers = #tpu.dot_dimension_numbers<[1], [0], [0], [1], [0, 0, 1, 1], [], []>} : vector<160x40xf32>, vector<40x8xf32>, vector<160x8xf32> -> vector<160x8xf32>
    %58 = vector.broadcast %40 : vector<1x8xf32> to vector<160x8xf32>
    %59 = arith.addf %57, %58 : vector<160x8xf32>
    %cst_61 = arith.constant 0.000000e+00 : f32
    %60 = vector.broadcast %cst_61 : f32 to vector<160x8xf32>
    %61 = arith.maximumf %59, %60 : vector<160x8xf32>
    %62 = vector.extract_strided_slice %61 {offsets = [0, 0], sizes = [80, 8], strides = [1, 1]} : vector<160x8xf32> to vector<80x8xf32>
    %c16_62 = arith.constant 16 : index
    %c0_63 = arith.constant 0 : index
    %63 = vector.load %arg10[%c16_62, %c0_63] : memref<224x8xf32, #tpu.memory_space<vmem>>, vector<80x8xf32>
    tpu.vector_store %arg10[%c16_62, %c0_63], %62 {strides = array<i32>} : memref<224x8xf32, #tpu.memory_space<vmem>>, vector<80x8xf32>,
    %64 = vector.extract_strided_slice %61 {offsets = [80, 0], sizes = [80, 8], strides = [1, 1]} : vector<160x8xf32> to vector<80x8xf32>
    %c128_64 = arith.constant 128 : index
    %c0_65 = arith.constant 0 : index
    %65 = vector.load %arg10[%c128_64, %c0_65] : memref<224x8xf32, #tpu.memory_space<vmem>>, vector<80x8xf32>
    tpu.vector_store %arg10[%c128_64, %c0_65], %64 {strides = array<i32>} : memref<224x8xf32, #tpu.memory_space<vmem>>, vector<80x8xf32>,
    %c1_66 = arith.constant 1 : index
    %c0_67 = arith.constant 0 : index
    %c0_68 = arith.constant 0 : index
    %66 = vector.load %arg4[%c1_66, %c0_67, %c0_68] : memref<3x40x8xf32, #tpu.memory_space<vmem>>, vector<1x40x8xf32>
    %67 = vector.shape_cast %66 : vector<1x40x8xf32> to vector<40x8xf32>
    %c1_69 = arith.constant 1 : index
    %c0_70 = arith.constant 0 : index
    %68 = vector.load %arg5[%c1_69, %c0_70] : memref<3x8xf32, #tpu.memory_space<vmem>>, vector<1x8xf32>
    %c0_71 = arith.constant 0 : index
    %c0_72 = arith.constant 0 : index
    %69 = vector.load %arg10[%c0_71, %c0_72] : memref<224x8xf32, #tpu.memory_space<vmem>>, vector<80x8xf32>
    %c112_73 = arith.constant 112 : index
    %c0_74 = arith.constant 0 : index
    %70 = vector.load %arg10[%c112_73, %c0_74] : memref<224x8xf32, #tpu.memory_space<vmem>>, vector<80x8xf32>
    %71 = tpu.concatenate %69, %70 in 0 : vector<80x8xf32>, vector<80x8xf32> -> vector<160x8xf32>
    %c8_75 = arith.constant 8 : index
    %c0_76 = arith.constant 0 : index
    %72 = vector.load %arg10[%c8_75, %c0_76] : memref<224x8xf32, #tpu.memory_space<vmem>>, vector<80x8xf32>
    %c120_77 = arith.constant 120 : index
    %c0_78 = arith.constant 0 : index
    %73 = vector.load %arg10[%c120_77, %c0_78] : memref<224x8xf32, #tpu.memory_space<vmem>>, vector<80x8xf32>
    %74 = tpu.concatenate %72, %73 in 0 : vector<80x8xf32>, vector<80x8xf32> -> vector<160x8xf32>
    %c16_79 = arith.constant 16 : index
    %c0_80 = arith.constant 0 : index
    %75 = vector.load %arg10[%c16_79, %c0_80] : memref<224x8xf32, #tpu.memory_space<vmem>>, vector<80x8xf32>
    %c128_81 = arith.constant 128 : index
    %c0_82 = arith.constant 0 : index
    %76 = vector.load %arg10[%c128_81, %c0_82] : memref<224x8xf32, #tpu.memory_space<vmem>>, vector<80x8xf32>
    %77 = tpu.concatenate %75, %76 in 0 : vector<80x8xf32>, vector<80x8xf32> -> vector<160x8xf32>
    %c24_83 = arith.constant 24 : index
    %c0_84 = arith.constant 0 : index
    %78 = vector.load %arg10[%c24_83, %c0_84] : memref<224x8xf32, #tpu.memory_space<vmem>>, vector<80x8xf32>
    %c136_85 = arith.constant 136 : index
    %c0_86 = arith.constant 0 : index
    %79 = vector.load %arg10[%c136_85, %c0_86] : memref<224x8xf32, #tpu.memory_space<vmem>>, vector<80x8xf32>
    %80 = tpu.concatenate %78, %79 in 0 : vector<80x8xf32>, vector<80x8xf32> -> vector<160x8xf32>
    %c32_87 = arith.constant 32 : index
    %c0_88 = arith.constant 0 : index
    %81 = vector.load %arg10[%c32_87, %c0_88] : memref<224x8xf32, #tpu.memory_space<vmem>>, vector<80x8xf32>
    %c144_89 = arith.constant 144 : index
    %c0_90 = arith.constant 0 : index
    %82 = vector.load %arg10[%c144_89, %c0_90] : memref<224x8xf32, #tpu.memory_space<vmem>>, vector<80x8xf32>
    %83 = tpu.concatenate %81, %82 in 0 : vector<80x8xf32>, vector<80x8xf32> -> vector<160x8xf32>
    %84 = tpu.concatenate %71, %74, %77, %80, %83 in 1 : vector<160x8xf32>, vector<160x8xf32>, vector<160x8xf32>, vector<160x8xf32>, vector<160x8xf32> -> vector<160x40xf32>
    %cst_91 = arith.constant dense<0.000000e+00> : vector<160x8xf32>
    %85 = tpu.matmul %84, %67, %cst_91 {dimension_numbers = #tpu.dot_dimension_numbers<[1], [0], [0], [1], [0, 0, 1, 1], [], []>} : vector<160x40xf32>, vector<40x8xf32>, vector<160x8xf32> -> vector<160x8xf32>
    %86 = vector.broadcast %68 : vector<1x8xf32> to vector<160x8xf32>
    %87 = arith.addf %85, %86 : vector<160x8xf32>
    %cst_92 = arith.constant 0.000000e+00 : f32
    %88 = vector.broadcast %cst_92 : f32 to vector<160x8xf32>
    %89 = arith.maximumf %87, %88 : vector<160x8xf32>
    %90 = vector.extract_strided_slice %89 {offsets = [0, 0], sizes = [80, 8], strides = [1, 1]} : vector<160x8xf32> to vector<80x8xf32>
    %c16_93 = arith.constant 16 : index
    %c0_94 = arith.constant 0 : index
    %91 = vector.load %arg10[%c16_93, %c0_94] : memref<224x8xf32, #tpu.memory_space<vmem>>, vector<80x8xf32>
    tpu.vector_store %arg10[%c16_93, %c0_94], %90 {strides = array<i32>} : memref<224x8xf32, #tpu.memory_space<vmem>>, vector<80x8xf32>,
    %92 = vector.extract_strided_slice %89 {offsets = [80, 0], sizes = [80, 8], strides = [1, 1]} : vector<160x8xf32> to vector<80x8xf32>
    %c128_95 = arith.constant 128 : index
    %c0_96 = arith.constant 0 : index
    %93 = vector.load %arg10[%c128_95, %c0_96] : memref<224x8xf32, #tpu.memory_space<vmem>>, vector<80x8xf32>
    tpu.vector_store %arg10[%c128_95, %c0_96], %92 {strides = array<i32>} : memref<224x8xf32, #tpu.memory_space<vmem>>, vector<80x8xf32>,
    %c2 = arith.constant 2 : index
    %c0_97 = arith.constant 0 : index
    %c0_98 = arith.constant 0 : index
    %94 = vector.load %arg4[%c2, %c0_97, %c0_98] : memref<3x40x8xf32, #tpu.memory_space<vmem>>, vector<1x40x8xf32>
    %95 = vector.shape_cast %94 : vector<1x40x8xf32> to vector<40x8xf32>
    %c2_99 = arith.constant 2 : index
    %c0_100 = arith.constant 0 : index
    %96 = vector.load %arg5[%c2_99, %c0_100] : memref<3x8xf32, #tpu.memory_space<vmem>>, vector<1x8xf32>
    %c0_101 = arith.constant 0 : index
    %c0_102 = arith.constant 0 : index
    %97 = vector.load %arg10[%c0_101, %c0_102] : memref<224x8xf32, #tpu.memory_space<vmem>>, vector<80x8xf32>
    %c112_103 = arith.constant 112 : index
    %c0_104 = arith.constant 0 : index
    %98 = vector.load %arg10[%c112_103, %c0_104] : memref<224x8xf32, #tpu.memory_space<vmem>>, vector<80x8xf32>
    %99 = tpu.concatenate %97, %98 in 0 : vector<80x8xf32>, vector<80x8xf32> -> vector<160x8xf32>
    %c8_105 = arith.constant 8 : index
    %c0_106 = arith.constant 0 : index
    %100 = vector.load %arg10[%c8_105, %c0_106] : memref<224x8xf32, #tpu.memory_space<vmem>>, vector<80x8xf32>
    %c120_107 = arith.constant 120 : index
    %c0_108 = arith.constant 0 : index
    %101 = vector.load %arg10[%c120_107, %c0_108] : memref<224x8xf32, #tpu.memory_space<vmem>>, vector<80x8xf32>
    %102 = tpu.concatenate %100, %101 in 0 : vector<80x8xf32>, vector<80x8xf32> -> vector<160x8xf32>
    %c16_109 = arith.constant 16 : index
    %c0_110 = arith.constant 0 : index
    %103 = vector.load %arg10[%c16_109, %c0_110] : memref<224x8xf32, #tpu.memory_space<vmem>>, vector<80x8xf32>
    %c128_111 = arith.constant 128 : index
    %c0_112 = arith.constant 0 : index
    %104 = vector.load %arg10[%c128_111, %c0_112] : memref<224x8xf32, #tpu.memory_space<vmem>>, vector<80x8xf32>
    %105 = tpu.concatenate %103, %104 in 0 : vector<80x8xf32>, vector<80x8xf32> -> vector<160x8xf32>
    %c24_113 = arith.constant 24 : index
    %c0_114 = arith.constant 0 : index
    %106 = vector.load %arg10[%c24_113, %c0_114] : memref<224x8xf32, #tpu.memory_space<vmem>>, vector<80x8xf32>
    %c136_115 = arith.constant 136 : index
    %c0_116 = arith.constant 0 : index
    %107 = vector.load %arg10[%c136_115, %c0_116] : memref<224x8xf32, #tpu.memory_space<vmem>>, vector<80x8xf32>
    %108 = tpu.concatenate %106, %107 in 0 : vector<80x8xf32>, vector<80x8xf32> -> vector<160x8xf32>
    %c32_117 = arith.constant 32 : index
    %c0_118 = arith.constant 0 : index
    %109 = vector.load %arg10[%c32_117, %c0_118] : memref<224x8xf32, #tpu.memory_space<vmem>>, vector<80x8xf32>
    %c144_119 = arith.constant 144 : index
    %c0_120 = arith.constant 0 : index
    %110 = vector.load %arg10[%c144_119, %c0_120] : memref<224x8xf32, #tpu.memory_space<vmem>>, vector<80x8xf32>
    %111 = tpu.concatenate %109, %110 in 0 : vector<80x8xf32>, vector<80x8xf32> -> vector<160x8xf32>
    %112 = tpu.concatenate %99, %102, %105, %108, %111 in 1 : vector<160x8xf32>, vector<160x8xf32>, vector<160x8xf32>, vector<160x8xf32>, vector<160x8xf32> -> vector<160x40xf32>
    %cst_121 = arith.constant dense<0.000000e+00> : vector<160x8xf32>
    %113 = tpu.matmul %112, %95, %cst_121 {dimension_numbers = #tpu.dot_dimension_numbers<[1], [0], [0], [1], [0, 0, 1, 1], [], []>} : vector<160x40xf32>, vector<40x8xf32>, vector<160x8xf32> -> vector<160x8xf32>
    %114 = vector.broadcast %96 : vector<1x8xf32> to vector<160x8xf32>
    %115 = arith.addf %113, %114 : vector<160x8xf32>
    %cst_122 = arith.constant 0.000000e+00 : f32
    %116 = vector.broadcast %cst_122 : f32 to vector<160x8xf32>
    %117 = arith.maximumf %115, %116 : vector<160x8xf32>
    %118 = vector.extract_strided_slice %117 {offsets = [0, 0], sizes = [8, 8], strides = [1, 1]} : vector<160x8xf32> to vector<8x8xf32>
    %119 = vector.extract_strided_slice %117 {offsets = [8, 0], sizes = [8, 8], strides = [1, 1]} : vector<160x8xf32> to vector<8x8xf32>
    %120 = vector.extract_strided_slice %117 {offsets = [16, 0], sizes = [8, 8], strides = [1, 1]} : vector<160x8xf32> to vector<8x8xf32>
    %121 = tpu.concatenate %118, %119, %120 in 1 : vector<8x8xf32>, vector<8x8xf32>, vector<8x8xf32> -> vector<8x24xf32>
    %122 = vector.extract_strided_slice %117 {offsets = [24, 0], sizes = [8, 8], strides = [1, 1]} : vector<160x8xf32> to vector<8x8xf32>
    %123 = vector.extract_strided_slice %117 {offsets = [32, 0], sizes = [8, 8], strides = [1, 1]} : vector<160x8xf32> to vector<8x8xf32>
    %124 = vector.extract_strided_slice %117 {offsets = [40, 0], sizes = [8, 8], strides = [1, 1]} : vector<160x8xf32> to vector<8x8xf32>
    %125 = tpu.concatenate %122, %123, %124 in 1 : vector<8x8xf32>, vector<8x8xf32>, vector<8x8xf32> -> vector<8x24xf32>
    %126 = vector.extract_strided_slice %117 {offsets = [48, 0], sizes = [8, 8], strides = [1, 1]} : vector<160x8xf32> to vector<8x8xf32>
    %127 = vector.extract_strided_slice %117 {offsets = [56, 0], sizes = [8, 8], strides = [1, 1]} : vector<160x8xf32> to vector<8x8xf32>
    %128 = vector.extract_strided_slice %117 {offsets = [64, 0], sizes = [8, 8], strides = [1, 1]} : vector<160x8xf32> to vector<8x8xf32>
    %129 = tpu.concatenate %126, %127, %128 in 1 : vector<8x8xf32>, vector<8x8xf32>, vector<8x8xf32> -> vector<8x24xf32>
    %130 = vector.extract_strided_slice %117 {offsets = [56, 0], sizes = [8, 8], strides = [1, 1]} : vector<160x8xf32> to vector<8x8xf32>
    %131 = vector.extract_strided_slice %117 {offsets = [64, 0], sizes = [8, 8], strides = [1, 1]} : vector<160x8xf32> to vector<8x8xf32>
    %132 = vector.extract_strided_slice %117 {offsets = [72, 0], sizes = [8, 8], strides = [1, 1]} : vector<160x8xf32> to vector<8x8xf32>
    %133 = tpu.concatenate %130, %131, %132 in 1 : vector<8x8xf32>, vector<8x8xf32>, vector<8x8xf32> -> vector<8x24xf32>
    %134 = vector.extract_strided_slice %117 {offsets = [80, 0], sizes = [8, 8], strides = [1, 1]} : vector<160x8xf32> to vector<8x8xf32>
    %135 = vector.extract_strided_slice %117 {offsets = [88, 0], sizes = [8, 8], strides = [1, 1]} : vector<160x8xf32> to vector<8x8xf32>
    %136 = vector.extract_strided_slice %117 {offsets = [96, 0], sizes = [8, 8], strides = [1, 1]} : vector<160x8xf32> to vector<8x8xf32>
    %137 = tpu.concatenate %134, %135, %136 in 1 : vector<8x8xf32>, vector<8x8xf32>, vector<8x8xf32> -> vector<8x24xf32>
    %138 = vector.extract_strided_slice %117 {offsets = [104, 0], sizes = [8, 8], strides = [1, 1]} : vector<160x8xf32> to vector<8x8xf32>
    %139 = vector.extract_strided_slice %117 {offsets = [112, 0], sizes = [8, 8], strides = [1, 1]} : vector<160x8xf32> to vector<8x8xf32>
    %140 = vector.extract_strided_slice %117 {offsets = [120, 0], sizes = [8, 8], strides = [1, 1]} : vector<160x8xf32> to vector<8x8xf32>
    %141 = tpu.concatenate %138, %139, %140 in 1 : vector<8x8xf32>, vector<8x8xf32>, vector<8x8xf32> -> vector<8x24xf32>
    %142 = vector.extract_strided_slice %117 {offsets = [128, 0], sizes = [8, 8], strides = [1, 1]} : vector<160x8xf32> to vector<8x8xf32>
    %143 = vector.extract_strided_slice %117 {offsets = [136, 0], sizes = [8, 8], strides = [1, 1]} : vector<160x8xf32> to vector<8x8xf32>
    %144 = vector.extract_strided_slice %117 {offsets = [144, 0], sizes = [8, 8], strides = [1, 1]} : vector<160x8xf32> to vector<8x8xf32>
    %145 = tpu.concatenate %142, %143, %144 in 1 : vector<8x8xf32>, vector<8x8xf32>, vector<8x8xf32> -> vector<8x24xf32>
    %146 = vector.extract_strided_slice %117 {offsets = [136, 0], sizes = [8, 8], strides = [1, 1]} : vector<160x8xf32> to vector<8x8xf32>
    %147 = vector.extract_strided_slice %117 {offsets = [144, 0], sizes = [8, 8], strides = [1, 1]} : vector<160x8xf32> to vector<8x8xf32>
    %148 = vector.extract_strided_slice %117 {offsets = [152, 0], sizes = [8, 8], strides = [1, 1]} : vector<160x8xf32> to vector<8x8xf32>
    %149 = tpu.concatenate %146, %147, %148 in 1 : vector<8x8xf32>, vector<8x8xf32>, vector<8x8xf32> -> vector<8x24xf32>
    %150 = tpu.concatenate %121, %125, %129, %133, %137, %141, %145, %149 in 0 : vector<8x24xf32>, vector<8x24xf32>, vector<8x24xf32>, vector<8x24xf32>, vector<8x24xf32>, vector<8x24xf32>, vector<8x24xf32>, vector<8x24xf32> -> vector<64x24xf32>
    %c0_123 = arith.constant 0 : index
    %c0_124 = arith.constant 0 : index
    %151 = vector.load %arg6[%c0_123, %c0_124] : memref<24x32xf32, #tpu.memory_space<vmem>>, vector<24x32xf32>
    %cst_125 = arith.constant dense<0.000000e+00> : vector<64x32xf32>
    %152 = tpu.matmul %150, %151, %cst_125 {dimension_numbers = #tpu.dot_dimension_numbers<[1], [0], [0], [1], [0, 0, 1, 1], [], []>} : vector<64x24xf32>, vector<24x32xf32>, vector<64x32xf32> -> vector<64x32xf32>
    %153 = vector.shape_cast %152 : vector<64x32xf32> to vector<8x8x32xf32>
    %154 = vector.extract_strided_slice %153 {offsets = [0, 0, 0], sizes = [8, 8, 8], strides = [1, 1, 1]} : vector<8x8x32xf32> to vector<8x8x8xf32>
    %155 = vector.extract_strided_slice %153 {offsets = [0, 0, 8], sizes = [8, 8, 8], strides = [1, 1, 1]} : vector<8x8x32xf32> to vector<8x8x8xf32>
    %156 = vector.extract_strided_slice %153 {offsets = [0, 0, 16], sizes = [8, 8, 8], strides = [1, 1, 1]} : vector<8x8x32xf32> to vector<8x8x8xf32>
    %157 = vector.extract_strided_slice %153 {offsets = [0, 0, 24], sizes = [8, 8, 8], strides = [1, 1, 1]} : vector<8x8x32xf32> to vector<8x8x8xf32>
    "tpu.trace_start"() <{level = 10 : i32, message = "njo,nio->nji"}> : () -> ()
    %cst_126 = arith.constant dense<0.000000e+00> : vector<8x8x8xf32>
    %158 = tpu.matmul %155, %154, %cst_126 {dimension_numbers = #tpu.dot_dimension_numbers<[2], [2], [1], [1], [0, 0, 0, 1, 1, 1], [0], [0]>} : vector<8x8x8xf32>, vector<8x8x8xf32>, vector<8x8x8xf32> -> vector<8x8x8xf32>
    "tpu.trace_stop"() : () -> ()
    %159 = tpu.iota {dimensions = array<i32: 2>} : vector<8x8x8xi32>
    %c4_i32 = arith.constant 4 : i32
    %160 = vector.broadcast %c4_i32 : i32 to vector<8x8x8xi32>
    %161 = arith.cmpi slt, %159, %160 : vector<8x8x8xi32>
    %cst_127 = arith.constant -1.000000e+30 : f32
    %162 = vector.broadcast %cst_127 : f32 to vector<8x8x8xf32>
    %163 = arith.select %161, %158, %162 : vector<8x8x8xi1>, vector<8x8x8xf32>
    %cst_128 = arith.constant dense<0xFF800000> : vector<8x8xf32>
    %164 = vector.multi_reduction <maximumf>, %163, %cst_128 [2] : vector<8x8x8xf32> to vector<8x8xf32>
    %165 = vector.shape_cast %164 : vector<8x8xf32> to vector<8x8x1xf32>
    %166 = vector.broadcast %165 : vector<8x8x1xf32> to vector<8x8x8xf32>
    %167 = arith.subf %163, %166 : vector<8x8x8xf32>
    %168 = math.exp %167 : vector<8x8x8xf32>
    %cst_129 = arith.constant dense<0.000000e+00> : vector<8x8xf32>
    %169 = vector.multi_reduction <add>, %168, %cst_129 [2] : vector<8x8x8xf32> to vector<8x8xf32>
    %170 = vector.shape_cast %169 : vector<8x8xf32> to vector<8x8x1xf32>
    %171 = vector.broadcast %170 : vector<8x8x1xf32> to vector<8x8x8xf32>
    %172 = arith.divf %168, %171 : vector<8x8x8xf32>
    "tpu.trace_start"() <{level = 10 : i32, message = "nji,nio->njo"}> : () -> ()
    %cst_130 = arith.constant dense<0.000000e+00> : vector<8x8x8xf32>
    %173 = tpu.matmul %172, %156, %cst_130 {dimension_numbers = #tpu.dot_dimension_numbers<[2], [1], [1], [2], [0, 0, 0, 1, 1, 2], [0], [0]>} : vector<8x8x8xf32>, vector<8x8x8xf32>, vector<8x8x8xf32> -> vector<8x8x8xf32>
    "tpu.trace_stop"() : () -> ()
    %174 = arith.addf %173, %157 : vector<8x8x8xf32>
    %cst_131 = arith.constant 0.000000e+00 : f32
    %175 = vector.broadcast %cst_131 : f32 to vector<8x8x8xf32>
    %176 = arith.maximumf %174, %175 : vector<8x8x8xf32>
    %177 = vector.extract_strided_slice %176 {offsets = [0, 0, 0], sizes = [8, 1, 8], strides = [1, 1, 1]} : vector<8x8x8xf32> to vector<8x1x8xf32>
    %178 = vector.shape_cast %177 : vector<8x1x8xf32> to vector<8x8xf32>
    %179 = vector.extract_strided_slice %176 {offsets = [0, 1, 0], sizes = [8, 1, 8], strides = [1, 1, 1]} : vector<8x8x8xf32> to vector<8x1x8xf32>
    %180 = vector.shape_cast %179 : vector<8x1x8xf32> to vector<8x8xf32>
    %181 = vector.extract_strided_slice %176 {offsets = [0, 2, 0], sizes = [8, 1, 8], strides = [1, 1, 1]} : vector<8x8x8xf32> to vector<8x1x8xf32>
    %182 = vector.shape_cast %181 : vector<8x1x8xf32> to vector<8x8xf32>
    %183 = vector.extract_strided_slice %176 {offsets = [0, 3, 0], sizes = [8, 1, 8], strides = [1, 1, 1]} : vector<8x8x8xf32> to vector<8x1x8xf32>
    %184 = vector.shape_cast %183 : vector<8x1x8xf32> to vector<8x8xf32>
    %185 = vector.extract_strided_slice %176 {offsets = [0, 4, 0], sizes = [8, 1, 8], strides = [1, 1, 1]} : vector<8x8x8xf32> to vector<8x1x8xf32>
    %186 = vector.shape_cast %185 : vector<8x1x8xf32> to vector<8x8xf32>
    %187 = vector.extract_strided_slice %176 {offsets = [0, 5, 0], sizes = [8, 1, 8], strides = [1, 1, 1]} : vector<8x8x8xf32> to vector<8x1x8xf32>
    %188 = vector.shape_cast %187 : vector<8x1x8xf32> to vector<8x8xf32>
    %189 = vector.extract_strided_slice %176 {offsets = [0, 6, 0], sizes = [8, 1, 8], strides = [1, 1, 1]} : vector<8x8x8xf32> to vector<8x1x8xf32>
    %190 = vector.shape_cast %189 : vector<8x1x8xf32> to vector<8x8xf32>
    %191 = vector.extract_strided_slice %176 {offsets = [0, 7, 0], sizes = [8, 1, 8], strides = [1, 1, 1]} : vector<8x8x8xf32> to vector<8x1x8xf32>
    %192 = vector.shape_cast %191 : vector<8x1x8xf32> to vector<8x8xf32>
    %193 = tpu.concatenate %178, %180, %182, %184, %186, %188, %190, %192 in 1 : vector<8x8xf32>, vector<8x8xf32>, vector<8x8xf32>, vector<8x8xf32>, vector<8x8xf32>, vector<8x8xf32>, vector<8x8xf32>, vector<8x8xf32> -> vector<8x64xf32>
    %c0_132 = arith.constant 0 : index
    %c0_133 = arith.constant 0 : index
    %194 = vector.load %arg7[%c0_132, %c0_133] : memref<64x32xf32, #tpu.memory_space<vmem>>, vector<64x32xf32>
    %cst_134 = arith.constant dense<0.000000e+00> : vector<8x32xf32>
    %195 = tpu.matmul %193, %194, %cst_134 {dimension_numbers = #tpu.dot_dimension_numbers<[1], [0], [0], [1], [0, 0, 1, 1], [], []>} : vector<8x64xf32>, vector<64x32xf32>, vector<8x32xf32> -> vector<8x32xf32>
    %c0_135 = arith.constant 0 : index
    %c0_136 = arith.constant 0 : index
    %196 = vector.load %arg8[%c0_135, %c0_136] : memref<1x32xf32, #tpu.memory_space<vmem>>, vector<1x32xf32>
    %197 = vector.broadcast %196 : vector<1x32xf32> to vector<8x32xf32>
    %198 = arith.addf %195, %197 : vector<8x32xf32>
    %cst_137 = arith.constant 0.000000e+00 : f32
    %199 = vector.broadcast %cst_137 : f32 to vector<8x32xf32>
    %200 = arith.maximumf %198, %199 : vector<8x32xf32>
    %c0_138 = arith.constant 0 : index
    %c0_139 = arith.constant 0 : index
    %201 = vector.load %arg9[%c0_138, %c0_139] : memref<8x32xf32, #tpu.memory_space<vmem>>, vector<8x32xf32>
    tpu.vector_store %arg9[%c0_138, %c0_139], %200 {strides = array<i32>} : memref<8x32xf32, #tpu.memory_space<vmem>>, vector<8x32xf32>,
    return
  }
  func.func @transform_0(%arg0: i32) -> (i32, i32, i32) {
    %c0_i32 = arith.constant 0 : i32
    %c0_i32_0 = arith.constant 0 : i32
    %c0_i32_1 = arith.constant 0 : i32
    return %arg0, %c0_i32, %c0_i32_0 : i32, i32, i32
  }
  func.func @transform_1(%arg0: i32) -> (i32, i32) {
    %c0_i32 = arith.constant 0 : i32
    %c0_i32_0 = arith.constant 0 : i32
    %c0_i32_1 = arith.constant 0 : i32
    return %c0_i32, %c0_i32_0 : i32, i32
  }
  func.func @transform_2(%arg0: i32) -> (i32, i32) {
    %c0_i32 = arith.constant 0 : i32
    %c0_i32_0 = arith.constant 0 : i32
    %c0_i32_1 = arith.constant 0 : i32
    return %c0_i32, %c0_i32_0 : i32, i32
  }
  func.func @transform_3(%arg0: i32) -> (i32, i32, i32) {
    %c0_i32 = arith.constant 0 : i32
    %c0_i32_0 = arith.constant 0 : i32
    %c0_i32_1 = arith.constant 0 : i32
    %c0_i32_2 = arith.constant 0 : i32
    return %c0_i32, %c0_i32_0, %c0_i32_1 : i32, i32, i32
  }
  func.func @transform_4(%arg0: i32) -> (i32, i32) {
    %c0_i32 = arith.constant 0 : i32
    %c0_i32_0 = arith.constant 0 : i32
    %c0_i32_1 = arith.constant 0 : i32
    return %c0_i32, %c0_i32_0 : i32, i32
  }
  func.func @transform_5(%arg0: i32) -> (i32, i32) {
    %c0_i32 = arith.constant 0 : i32
    %c0_i32_0 = arith.constant 0 : i32
    %c0_i32_1 = arith.constant 0 : i32
    return %c0_i32, %c0_i32_0 : i32, i32
  }
  func.func @transform_6(%arg0: i32) -> (i32, i32) {
    %c0_i32 = arith.constant 0 : i32
    %c0_i32_0 = arith.constant 0 : i32
    %c0_i32_1 = arith.constant 0 : i32
    return %c0_i32, %c0_i32_0 : i32, i32
  }
  func.func @transform_7(%arg0: i32) -> (i32, i32) {
    %c0_i32 = arith.constant 0 : i32
    %c0_i32_0 = arith.constant 0 : i32
    %c0_i32_1 = arith.constant 0 : i32
    return %c0_i32, %c0_i32_0 : i32, i32
  }
  func.func @transform_8(%arg0: i32) -> (i32, i32) {
    %c0_i32 = arith.constant 0 : i32
    %c0_i32_0 = arith.constant 0 : i32
    return %arg0, %c0_i32 : i32, i32
  }
}

</mosaic_0001>

<bundles_post_ra>
// kernel: tpu_custom_call.1
= control target key start
LH: loop header
LB: loop body
LE: loop exit
PB: predicated region body
PF: predicated region fallthrough
CT: control target
= control target key end

     0   :  { %vm30_vm0 = vcmask 64512   ;;  %v5185_v2 = vmov 0.0   ;;  %s7185_s0 = inlined_call_operand.vmem [shape: f32[2,80,8], index: 0, kind: input, shape index: {}]   ;;  %s7186_s1 = inlined_call_operand.vmem [shape: f32[40,8], index: 1, kind: input, shape index: {}]   ;;  %s7187_s2 = inlined_call_operand.vmem [shape: f32[1,8], index: 2, kind: input, shape index: {}]   ;;  %s7188_s3 = inlined_call_operand.vmem [shape: f32[3,40,8], index: 3, kind: input, shape index: {}]   ;;  %s7189_s4 = inlined_call_operand.vmem [shape: f32[3,8], index: 4, kind: input, shape index: {}]   ;;  %s7190_s5 = inlined_call_operand.vmem [shape: f32[24,32], index: 5, kind: input, shape index: {}]   ;;  %s7191_s6 = inlined_call_operand.vmem [shape: f32[64,32], index: 6, kind: input, shape index: {}]   ;;  %s7192_s7 = inlined_call_operand.vmem [shape: f32[1,32], index: 7, kind: input, shape index: {}]   ;;  %s7193_s8 = inlined_call_operand.hbm [shape: f32[8,32], index: 8, kind: output, shape index: {}]  }
   0x1   :  { %v39_v0 = vld [vmem:[%s7185_s0] sm:$0xff]  ;;  %v40_v1 = vld [vmem:[%s7185_s0 + $0x8] sm:$0xff]  ;;  %32 = vst.msk [vmem:[#allocation2 + $0x8] sm:$0xff] %vm30_vm0, %v5185_v2  ;;  %31 = vst.msk [vmem:[#allocation2] sm:$0xff] %vm30_vm0, %v5185_v2 }
   0x2   :  { %49 = vst.msk [vmem:[#allocation2 + $0x10] sm:$0xff] %vm30_vm0, %v39_v0  ;;  %33 = vst.msk [vmem:[#allocation2 + $0x60] sm:$0xff] %vm30_vm0, %v5185_v2  ;;  %v41_v3 = vld [vmem:[%s7185_s0 + $0x10] sm:$0xff]  ;;  %v42_v4 = vld [vmem:[%s7185_s0 + $0x18] sm:$0xff] }
   0x3   :  { %34 = vst.msk [vmem:[#allocation2 + $0x68] sm:$0xff] %vm30_vm0, %v5185_v2  ;;  %35 = vst.msk [vmem:[#allocation2 + $0x70] sm:$0xff] %vm30_vm0, %v5185_v2  ;;  %v43_v5 = vld [vmem:[%s7185_s0 + $0x20] sm:$0xff]  ;;  %v44_v6 = vld [vmem:[%s7185_s0 + $0x28] sm:$0xff] }
   0x4   :  { %36 = vst.msk [vmem:[#allocation2 + $0x78] sm:$0xff] %vm30_vm0, %v5185_v2  ;;  %37 = vst.msk [vmem:[#allocation2 + $0xd0] sm:$0xff] %vm30_vm0, %v5185_v2  ;;  %v45_v7 = vld [vmem:[%s7185_s0 + $0x30] sm:$0xff]  ;;  %v46_v8 = vld [vmem:[%s7185_s0 + $0x38] sm:$0xff] }
   0x5   :  { %38 = vst.msk [vmem:[#allocation2 + $0xd8] sm:$0xff] %vm30_vm0, %v5185_v2  ;;  %50 = vst.msk [vmem:[#allocation2 + $0x18] sm:$0xff] %vm30_vm0, %v40_v1  ;;  %v47_v9 = vld [vmem:[%s7185_s0 + $0x40] sm:$0xff]  ;;  %v48_v10 = vld [vmem:[%s7185_s0 + $0x48] sm:$0xff] }
   0x6   :  { %51 = vst.msk [vmem:[#allocation2 + $0x20] sm:$0xff] %vm30_vm0, %v41_v3  ;;  %52 = vst.msk [vmem:[#allocation2 + $0x28] sm:$0xff] %vm30_vm0, %v42_v4  ;;  %v4492_v11 = vld [vmem:[%s7185_s0 + $0x50] sm:$0xff]  ;;  %v4493_v12 = vld [vmem:[%s7185_s0 + $0x58] sm:$0xff] }
   0x7   :  { %53 = vst.msk [vmem:[#allocation2 + $0x30] sm:$0xff] %vm30_vm0, %v43_v5  ;;  %54 = vst.msk [vmem:[#allocation2 + $0x38] sm:$0xff] %vm30_vm0, %v44_v6  ;;  %v4494_v13 = vld [vmem:[%s7185_s0 + $0x60] sm:$0xff]  ;;  %v4495_v14 = vld [vmem:[%s7185_s0 + $0x68] sm:$0xff] }
   0x8   :  { %55 = vst.msk [vmem:[#allocation2 + $0x40] sm:$0xff] %vm30_vm0, %v45_v7  ;;  %56 = vst.msk [vmem:[#allocation2 + $0x48] sm:$0xff] %vm30_vm0, %v46_v8  ;;  %v4496_v15 = vld [vmem:[%s7185_s0 + $0x70] sm:$0xff]  ;;  %v4497_v16 = vld [vmem:[%s7185_s0 + $0x78] sm:$0xff] }
   0x9   :  { %57 = vst.msk [vmem:[#allocation2 + $0x50] sm:$0xff] %vm30_vm0, %v47_v9  ;;  %58 = vst.msk [vmem:[#allocation2 + $0x58] sm:$0xff] %vm30_vm0, %v48_v10  ;;  %v4498_v17 = vld [vmem:[%s7185_s0 + $0x80] sm:$0xff]  ;;  %v81_v19 = vld [vmem:[%s7186_s1 + $0x8] sm:$0xff] }
   0xa   :  { %70 = vst.msk [vmem:[#allocation2 + $0x80] sm:$0xff] %vm30_vm0, %v4492_v11  ;;  %71 = vst.msk [vmem:[#allocation2 + $0x88] sm:$0xff] %vm30_vm0, %v4493_v12  ;;  %v80_v18 = vld [vmem:[%s7186_s1] sm:$0xff]  ;;  %v82_v20 = vld [vmem:[%s7186_s1 + $0x10] sm:$0xff] }
   0xb   :  { %72 = vst.msk [vmem:[#allocation2 + $0x90] sm:$0xff] %vm30_vm0, %v4494_v13  ;;  %73 = vst.msk [vmem:[#allocation2 + $0x98] sm:$0xff] %vm30_vm0, %v4495_v14  ;;  %v5059_v21 = vpack.c.bf16 %v81_v19, %v80_v18  ;;  %v83_v22 = vld [vmem:[%s7186_s1 + $0x18] sm:$0xff]  ;;  %v4499_v23 = vld [vmem:[%s7185_s0 + $0x88] sm:$0xff] }
   0xc   :  { %74 = vst.msk [vmem:[#allocation2 + $0xa0] sm:$0xff] %vm30_vm0, %v4496_v15  ;;  %75 = vst.msk [vmem:[#allocation2 + $0xa8] sm:$0xff] %vm30_vm0, %v4497_v16 }
   0xd   :  { %76 = vst.msk [vmem:[#allocation2 + $0xb0] sm:$0xff] %vm30_vm0, %v4498_v17 }
   0xe   :  { %13 = vsyncpa [#allocation4], 0  ;;  %v5343_v24 = vld [vmem:[#allocation2 + $0x10] sm:$0xff]  ;;  %v5345_v25 = vld [vmem:[#allocation2 + $0x8] sm:$0xff]  ;;  %v5063_v26 = vpack.c.bf16 %v83_v22, %v82_v20  ;;  %77 = vst.msk [vmem:[#allocation2 + $0xb8] sm:$0xff] %vm30_vm0, %v4499_v23  ;;  %s5186_s27 = smov 16   ;;  %5060 = vmatprep.subr.bf16.mxu0 %v5059_v21 }
   0xf   :  { %196 = vrot.lane.b32.xlu1 %v5343_v24, %s5186_s27  ;;  %s5187_s28 = smov 8   ;;  %v5352_v27 = vld [vmem:[#allocation2 + $0x18] sm:$0xff]  ;;  %5062 = vmatpush3.bf16.msra.mxu0 %v5059_v21  ;;  %v5358_v28 = vld [vmem:[#allocation2 + $0x20] sm:$0xff]  ;;  %v4500_v30 = vld [vmem:[%s7185_s0 + $0x90] sm:$0xff]  ;;  %s5188_s11 = smov 24   ;;  %vm400_vm1 = vcmask 130048  }
  0x10   :  { %134 = vrot.lane.b32.xlu0 %v5345_v25, %s5187_s28  ;;  %5064 = vmatprep.subr.bf16.mxu0 %v5063_v26  ;;  %v84_v29 = vld [vmem:[%s7186_s1 + $0x20] sm:$0xff]  ;;  %78 = vst.msk [vmem:[#allocation2 + $0xc0] sm:$0xff] %vm30_vm0, %v4500_v30  ;;  %v4501_v31 = vld [vmem:[%s7185_s0 + $0x98] sm:$0xff]  ;;  %s5189_s1 = smov 32   ;;  %v5379_v32 = vld [vmem:[#allocation2 + $0x28] sm:$0xff]  ;;  %vm421_vm2 = vcmask 195584  }
  0x11   :  { %79 = vst.msk [vmem:[#allocation2 + $0xc8] sm:$0xff] %vm30_vm0, %v4501_v31  ;;  %v5389_v33 = vld [vmem:[#allocation2 + $0x30] sm:$0xff]  ;;  %v5399_v34 = vld [vmem:[#allocation2 + $0x38] sm:$0xff]  ;;  %v5409_v35 = vld [vmem:[#allocation2 + $0x40] sm:$0xff]  ;;  %vm442_vm3 = vcmask 261120   ;;  %vm469_vm4 = vcmask 326656  }
  0x12   :  { %v5419_v36 = vld [vmem:[#allocation2 + $0x48] sm:$0xff]  ;;  %v106_v37 = vld [vmem:[#allocation2 + $0x50] sm:$0xff]  ;;  %v108_v38 = vld [vmem:[#allocation2 + $0x58] sm:$0xff]  ;;  %vm5190_vm5 = vmmov 0   ;;  %s5192_s0 = smov 112   ;;  %s5193_s14 = smov 104  }
  0x13   :  { %198 = vrot.lane.b32.xlu1 %v5352_v27, %s5186_s27  ;;  %5066 = vmatpush3.bf16.msra.mxu0 %v5063_v26  ;;  %v5439_v39 = vld [vmem:[#allocation2 + $0x60] sm:$0xff]  ;;  %v5444_v40 = vld [vmem:[#allocation2 + $0x78] sm:$0xff]  ;;  %v5452_v42 = vld [vmem:[#allocation2 + $0x68] sm:$0xff]  ;;  %vm4238_vm7 = vcmask 1041409   ;;  %vm4241_vm8 = vcmask 1042434   ;;  %vm4244_vm9 = vcmask 1043459  }
  0x14   :  { %136 = vrot.lane.b32.xlu0 %v5343_v24, %s5187_s28  ;;  %4790 = vmatprep.subr.mxu0 %v84_v29  ;;  %v5450_v41 = vld [vmem:[#allocation2 + $0x80] sm:$0xff]  ;;  %v5458_v43 = vld [vmem:[#allocation2 + $0x88] sm:$0xff]  ;;  %v5464_v44 = vld [vmem:[#allocation2 + $0x90] sm:$0xff]  ;;  %vm4247_vm10 = vcmask 1044484   ;;  %vm4250_vm11 = vcmask 1045509   ;;  %vm4253_vm12 = vcmask 1046534  }
  0x15   :  { %v5474_v45 = vld [vmem:[#allocation2 + $0x98] sm:$0xff]  ;;  %v5484_v46 = vld [vmem:[#allocation2 + $0xa0] sm:$0xff]  ;;  %v5494_v47 = vld [vmem:[#allocation2 + $0xa8] sm:$0xff]  ;;  %vm4256_vm13 = vcmask 1047559   ;;  %vm4383_vm14 = vcmask 392192   ;;  %vm4385_vm15 = vcmask 457728  }
  0x16   :  { %v5504_v50 = vld [vmem:[#allocation2 + $0xb0] sm:$0xff]  ;;  %v5506_v53 = vld [vmem:[#allocation2] sm:$0xff]  ;;  %v5519_v58 = vld [vmem:[#allocation2 + $0xb8] sm:$0xff]  ;;  %s5198_s9 = smov [#allocation3]  }
  0x17   :  { %260 = vrot.lane.b32.xlu1 %v5358_v28, %s5188_s11  ;;  %4791 = vmatpush3.msra.mxu0 %v84_v29  ;;  %v107_v6 = vld [vmem:[#allocation2 + $0xc0] sm:$0xff]  ;;  %v5565_v29 = vld [vmem:[#allocation2 + $0xd8] sm:$0xff]  ;;  %s4484_s10 = sshll.u32 %s5198_s9, 4  ;;  %s4485_s10 = int_to_ptr.vmem [resolvable:$true] %s4484_s10 }
  0x18   :  { %258 = vrot.lane.b32.xlu0 %v5352_v27, %s5188_s11  ;;  %v109_v13 = vld [vmem:[#allocation2 + $0xc8] sm:$0xff]  ;;  %p5166_p1 = scmp.lt.s32.totalorder %s4485_s10, %s4485_s10 }
  0x1b   :  { %138 = vrot.lane.b32.xlu1 %v5352_v27, %s5187_s28 }
  0x1c   :  { %320 = vrot.lane.b32.xlu0 %v5358_v28, %s5189_s1 }
  0x1f   :  { %140 = vrot.lane.b32.xlu1 %v5358_v28, %s5187_s28 }
  0x20   :  { %322 = vrot.lane.b32.xlu0 %v5379_v32, %s5189_s1 }
  0x23   :  { %202 = vrot.lane.b32.xlu1 %v5379_v32, %s5186_s27 }
  0x24   :  { %200 = vrot.lane.b32.xlu0 %v5358_v28, %s5186_s27 }
  0x27   :  { %264 = vrot.lane.b32.xlu1 %v5389_v33, %s5188_s11 }
  0x28   :  { %262 = vrot.lane.b32.xlu0 %v5379_v32, %s5188_s11 }
  0x2b   :  { %142 = vrot.lane.b32.xlu1 %v5379_v32, %s5187_s28 }
  0x2c   :  { %324 = vrot.lane.b32.xlu0 %v5389_v33, %s5189_s1 }
  0x2f   :  { %144 = vrot.lane.b32.xlu1 %v5389_v33, %s5187_s28 }
  0x30   :  { %326 = vrot.lane.b32.xlu0 %v5399_v34, %s5189_s1 }
  0x33   :  { %206 = vrot.lane.b32.xlu1 %v5399_v34, %s5186_s27 }
  0x34   :  { %204 = vrot.lane.b32.xlu0 %v5389_v33, %s5186_s27 }
  0x37   :  { %268 = vrot.lane.b32.xlu1 %v5409_v35, %s5188_s11 }
  0x38   :  { %266 = vrot.lane.b32.xlu0 %v5399_v34, %s5188_s11 }
  0x3b   :  { %146 = vrot.lane.b32.xlu1 %v5399_v34, %s5187_s28 }
  0x3c   :  { %328 = vrot.lane.b32.xlu0 %v5409_v35, %s5189_s1 }
  0x3f   :  { %148 = vrot.lane.b32.xlu1 %v5409_v35, %s5187_s28 }
  0x40   :  { %330 = vrot.lane.b32.xlu0 %v5419_v36, %s5189_s1 }
  0x43   :  { %210 = vrot.lane.b32.xlu1 %v5419_v36, %s5186_s27 }
  0x44   :  { %208 = vrot.lane.b32.xlu0 %v5409_v35, %s5186_s27 }
  0x47   :  { %272 = vrot.lane.b32.xlu1 %v106_v37, %s5188_s11 }
  0x48   :  { %270 = vrot.lane.b32.xlu0 %v5419_v36, %s5188_s11 }
  0x4b   :  { %150 = vrot.lane.b32.xlu1 %v5419_v36, %s5187_s28 }
  0x4c   :  { %332 = vrot.lane.b32.xlu0 %v106_v37, %s5189_s1 }
  0x4f   :  { %152 = vrot.lane.b32.xlu1 %v106_v37, %s5187_s28 }
  0x50   :  { %334 = vrot.lane.b32.xlu0 %v108_v38, %s5189_s1 }
  0x53   :  { %214 = vrot.lane.b32.xlu1 %v108_v38, %s5186_s27 }
  0x54   :  { %212 = vrot.lane.b32.xlu0 %v106_v37, %s5186_s27 }
  0x57   :  { %276 = vrot.lane.b32.xlu1 %v5439_v39, %s5188_s11 }
  0x58   :  { %274 = vrot.lane.b32.xlu0 %v108_v38, %s5188_s11 }
  0x5b   :  { %154 = vrot.lane.b32.xlu1 %v5444_v40, %s5187_s28 }
  0x5c   :  { %336 = vrot.lane.b32.xlu0 %v5439_v39, %s5189_s1 }
  0x5f   :  { %156 = vrot.lane.b32.xlu1 %v5450_v41, %s5187_s28 }
  0x60   :  { %338 = vrot.lane.b32.xlu0 %v5452_v42, %s5189_s1 }
  0x63   :  { %218 = vrot.lane.b32.xlu1 %v5458_v43, %s5186_s27 }
  0x64   :  { %216 = vrot.lane.b32.xlu0 %v5450_v41, %s5186_s27 }
  0x67   :  { %280 = vrot.lane.b32.xlu1 %v5464_v44, %s5188_s11 }
  0x68   :  { %278 = vrot.lane.b32.xlu0 %v5458_v43, %s5188_s11 }
  0x6b   :  { %158 = vrot.lane.b32.xlu1 %v5458_v43, %s5187_s28 }
  0x6c   :  { %340 = vrot.lane.b32.xlu0 %v5464_v44, %s5189_s1 }
  0x6f   :  { %160 = vrot.lane.b32.xlu1 %v5464_v44, %s5187_s28 }
  0x70   :  { %342 = vrot.lane.b32.xlu0 %v5474_v45, %s5189_s1 }
  0x73   :  { %222 = vrot.lane.b32.xlu1 %v5474_v45, %s5186_s27 }
  0x74   :  { %220 = vrot.lane.b32.xlu0 %v5464_v44, %s5186_s27 }
  0x77   :  { %284 = vrot.lane.b32.xlu1 %v5484_v46, %s5188_s11 }
  0x78   :  { %282 = vrot.lane.b32.xlu0 %v5474_v45, %s5188_s11 }
  0x7b   :  { %162 = vrot.lane.b32.xlu1 %v5474_v45, %s5187_s28 }
  0x7c   :  { %344 = vrot.lane.b32.xlu0 %v5484_v46, %s5189_s1 }
  0x7f   :  { %164 = vrot.lane.b32.xlu1 %v5484_v46, %s5187_s28 }
  0x80   :  { %346 = vrot.lane.b32.xlu0 %v5494_v47, %s5189_s1 }
  0x81   :  { %v197_v48 = vpop.permute.xlu1 %196 }
  0x82   :  { %v135_v49 = vpop.permute.xlu0 %134 }
  0x83   :  { %226 = vrot.lane.b32.xlu1 %v5494_v47, %s5186_s27  ;;  %v380_v54 = vsel %vm30_vm0, %v5506_v53, %v135_v49 }
  0x84   :  { %224 = vrot.lane.b32.xlu0 %v5484_v46, %s5186_s27  ;;  %v401_v57 = vsel %vm400_vm1, %v380_v54, %v197_v48 }
  0x85   :  { %v199_v51 = vpop.permute.xlu1 %198 }
  0x86   :  { %v137_v52 = vpop.permute.xlu0 %136 }
  0x87   :  { %288 = vrot.lane.b32.xlu1 %v5504_v50, %s5188_s11  ;;  %v381_v59 = vsel %vm30_vm0, %v5345_v25, %v137_v52 }
  0x88   :  { %286 = vrot.lane.b32.xlu0 %v5494_v47, %s5188_s11  ;;  %v402_v0 = vsel %vm400_vm1, %v381_v59, %v199_v51 }
  0x89   :  { %v261_v55 = vpop.permute.xlu1 %260 }
  0x8a   :  { %v259_v56 = vpop.permute.xlu0 %258  ;;  %v423_v1 = vsel %vm421_vm2, %v402_v0, %v261_v55 }
  0x8b   :  { %166 = vrot.lane.b32.xlu1 %v5494_v47, %s5187_s28  ;;  %v422_v60 = vsel %vm421_vm2, %v401_v57, %v259_v56 }
  0x8c   :  { %348 = vrot.lane.b32.xlu0 %v5504_v50, %s5189_s1 }
  0x8d   :  { %v139_v61 = vpop.permute.xlu1 %138 }
  0x8e   :  { %v321_v62 = vpop.permute.xlu0 %320  ;;  %v382_v11 = vsel %vm30_vm0, %v5343_v24, %v139_v61  ;;  %v5560_v24 = vld [vmem:[#allocation2 + $0xd0] sm:$0xff] }
  0x8f   :  { %v443_v63 = vsel %vm442_vm3, %v422_v60, %v321_v62  ;;  %168 = vrot.lane.b32.xlu1 %v5504_v50, %s5187_s28 }
  0x90   :  { %350 = vrot.lane.b32.xlu0 %v5519_v58, %s5189_s1  ;;  %4792 = vmatprep.mubr.msk.f32.mxu0 %vm469_vm4, %v443_v63 }
  0x91   :  { %v141_v3 = vpop.permute.xlu1 %140 }
  0x92   :  { %v323_v4 = vpop.permute.xlu0 %322  ;;  %v383_v14 = vsel %vm30_vm0, %v5352_v27, %v141_v3 }
  0x93   :  { %v444_v5 = vsel %vm442_vm3, %v423_v1, %v323_v4  ;;  %230 = vrot.lane.b32.xlu1 %v5519_v58, %s5186_s27 }
  0x94   :  { %228 = vrot.lane.b32.xlu0 %v5504_v50, %s5186_s27  ;;  %4793 = vmatmul.mubr.msk.f32.vlgmr.msra.gmra.mrb[0].mxu0 %vm469_vm4, %v444_v5 }
  0x95   :  { %v203_v7 = vpop.permute.xlu1 %202 }
  0x96   :  { %v201_v8 = vpop.permute.xlu0 %200  ;;  %v404_v19 = vsel %vm400_vm1, %v383_v14, %v203_v7 }
  0x97   :  { %292 = vrot.lane.b32.xlu1 %v107_v6, %s5188_s11  ;;  %v403_v12 = vsel %vm400_vm1, %v382_v11, %v201_v8 }
  0x98   :  { %290 = vrot.lane.b32.xlu0 %v5519_v58, %s5188_s11 }
  0x99   :  { %v265_v9 = vpop.permute.xlu1 %264 }
  0x9a   :  { %v263_v10 = vpop.permute.xlu0 %262  ;;  %v425_v20 = vsel %vm421_vm2, %v404_v19, %v265_v9 }
  0x9b   :  { %170 = vrot.lane.b32.xlu1 %v5519_v58, %s5187_s28  ;;  %v424_v15 = vsel %vm421_vm2, %v403_v12, %v263_v10 }
  0x9c   :  { %352 = vrot.lane.b32.xlu0 %v107_v6, %s5189_s1 }
  0x9d   :  { %v143_v16 = vpop.permute.xlu1 %142 }
  0x9e   :  { %v325_v17 = vpop.permute.xlu0 %324  ;;  %v384_v37 = vsel %vm30_vm0, %v5358_v28, %v143_v16 }
  0x9f   :  { %v445_v18 = vsel %vm442_vm3, %v424_v15, %v325_v17  ;;  %172 = vrot.lane.b32.xlu1 %v107_v6, %s5187_s28 }
  0xa0   :  { %354 = vrot.lane.b32.xlu0 %v109_v13, %s5189_s1  ;;  %4795 = vmatprep.mubr.msk.f32.mxu0 %vm469_vm4, %v445_v18 }
  0xa1   :  { %v145_v21 = vpop.permute.xlu1 %144 }
  0xa2   :  { %v327_v22 = vpop.permute.xlu0 %326  ;;  %v385_v48 = vsel %vm30_vm0, %v5379_v32, %v145_v21 }
  0xa3   :  { %v446_v23 = vsel %vm442_vm3, %v425_v20, %v327_v22  ;;  %234 = vrot.lane.b32.xlu1 %v109_v13, %s5186_s27 }
  0xa4   :  { %232 = vrot.lane.b32.xlu0 %v107_v6, %s5186_s27  ;;  %4796 = vmatmul.mubr.msk.f32.gmra.mrb[2].mxu0 %vm469_vm4, %v446_v23 }
  0xa5   :  { %v207_v26 = vpop.permute.xlu1 %206 }
  0xa6   :  { %v205_v27 = vpop.permute.xlu0 %204  ;;  %v406_v28 = vsel %vm400_vm1, %v385_v48, %v207_v26  ;;  %v5619_v26 = vld [vmem:[#allocation2 + $0x70] sm:$0xff] }
  0xa7   :  { %296 = vrot.lane.b32.xlu1 %v5560_v24, %s5188_s11  ;;  %v405_v38 = vsel %vm400_vm1, %v384_v37, %v205_v27 }
  0xa8   :  { %294 = vrot.lane.b32.xlu0 %v109_v13, %s5188_s11 }
  0xa9   :  { %v269_v30 = vpop.permute.xlu1 %268 }
  0xaa   :  { %v267_v31 = vpop.permute.xlu0 %266  ;;  %v427_v55 = vsel %vm421_vm2, %v406_v28, %v269_v30 }
  0xab   :  { %358 = vrot.lane.b32.xlu1 %v5565_v29, %s5189_s1  ;;  %v426_v49 = vsel %vm421_vm2, %v405_v38, %v267_v31 }
  0xac   :  { %356 = vrot.lane.b32.xlu0 %v5560_v24, %s5189_s1 }
  0xad   :  { %v147_v51 = vpop.permute.xlu1 %146 }
  0xae   :  { %v329_v52 = vpop.permute.xlu0 %328  ;;  %v386_v63 = vsel %vm30_vm0, %v5389_v33, %v147_v51 }
  0xaf   :  { %v447_v54 = vsel %vm442_vm3, %v426_v49, %v329_v52  ;;  %931 = vrot.lane.b32.xlu1 %v5439_v39, %s5188_s11 }
  0xb0   :  { %4798 = vmatprep.mubr.msk.f32.mxu0 %vm469_vm4, %v447_v54  ;;  %789 = vrot.lane.b32.xlu0 %v5345_v25, %s5187_s28 }
  0xb1   :  { %v149_v56 = vpop.permute.xlu1 %148 }
  0xb2   :  { %v331_v32 = vpop.permute.xlu0 %330  ;;  %v387_v1 = vsel %vm30_vm0, %v5399_v34, %v149_v56 }
  0xb3   :  { %v448_v57 = vsel %vm442_vm3, %v427_v55, %v331_v32  ;;  %809 = vrot.lane.b32.xlu1 %v5444_v40, %s5187_s28 }
  0xb4   :  { %4799 = vmatmul.mubr.msk.f32.gmra.mrb[4].mxu0 %vm469_vm4, %v448_v57  ;;  %991 = vrot.lane.b32.xlu0 %v5439_v39, %s5189_s1 }
  0xb5   :  { %v211_v59 = vpop.permute.xlu1 %210 }
  0xb6   :  { %v209_v60 = vpop.permute.xlu0 %208 }
  0xb7   :  { %951 = vrot.lane.b32.xlu1 %v5560_v24, %s5188_s11  ;;  %v407_v0 = vsel %vm400_vm1, %v386_v63, %v209_v60 }
  0xb8   :  { %993 = vrot.lane.b32.xlu0 %v5452_v42, %s5189_s1  ;;  %v408_v42 = vsel %vm400_vm1, %v387_v1, %v211_v59 }
  0xb9   :  { %v273_v61 = vpop.permute.xlu1 %272 }
  0xba   :  { %v271_v62 = vpop.permute.xlu0 %270  ;;  %v429_v6 = vsel %vm421_vm2, %v408_v42, %v273_v61 }
  0xbb   :  { %v428_v39 = vsel %vm421_vm2, %v407_v0, %v271_v62 }
  0xbd   :  { %v151_v3 = vpop.permute.xlu1 %150 }
  0xbe   :  { %v333_v4 = vpop.permute.xlu0 %332  ;;  %v388_v12 = vsel %vm30_vm0, %v5409_v35, %v151_v3 }
  0xbf   :  { %v449_v5 = vsel %vm442_vm3, %v428_v39, %v333_v4 }
  0xc0   :  { %4801 = vmatprep.mubr.msk.f32.mxu0 %vm469_vm4, %v449_v5 }
  0xc1   :  { %v153_v7 = vpop.permute.xlu1 %152 }
  0xc2   :  { %v335_v8 = vpop.permute.xlu0 %334  ;;  %v389_v14 = vsel %vm30_vm0, %v5419_v36, %v153_v7 }
  0xc3   :  { %v450_v33 = vsel %vm442_vm3, %v429_v6, %v335_v8 }
  0xc4   :  { %4802 = vmatmul.mubr.msk.f32.gmra.mrb[6].mxu0 %vm469_vm4, %v450_v33 }
  0xc5   :  { %v215_v9 = vpop.permute.xlu1 %214 }
  0xc6   :  { %v213_v34 = vpop.permute.xlu0 %212  ;;  %v410_v19 = vsel %vm400_vm1, %v389_v14, %v215_v9 }
  0xc7   :  { %v409_v13 = vsel %vm400_vm1, %v388_v12, %v213_v34 }
  0xc9   :  { %v277_v10 = vpop.permute.xlu1 %276 }
  0xca   :  { %v275_v11 = vpop.permute.xlu0 %274  ;;  %v431_v20 = vsel %vm421_vm2, %v410_v19, %v277_v10 }
  0xcb   :  { %v430_v15 = vsel %vm421_vm2, %v409_v13, %v275_v11 }
  0xcd   :  { %v155_v16 = vpop.permute.xlu1 %154 }
  0xce   :  { %v337_v17 = vpop.permute.xlu0 %336  ;;  %v390_v31 = vsel %vm30_vm0, %v5619_v26, %v155_v16 }
  0xcf   :  { %v451_v18 = vsel %vm442_vm3, %v430_v15, %v337_v17 }
  0xd0   :  { %4804 = vmatprep.mubr.msk.f32.mxu0 %vm469_vm4, %v451_v18 }
  0xd1   :  { %v157_v21 = vpop.permute.xlu1 %156 }
  0xd2   :  { %v339_v22 = vpop.permute.xlu0 %338  ;;  %v391_v38 = vsel %vm30_vm0, %v5444_v40, %v157_v21 }
  0xd3   :  { %v452_v35 = vsel %vm442_vm3, %v431_v20, %v339_v22 }
  0xd4   :  { %4805 = vmatmul.mubr.msk.f32.gmra.mrb[8].mxu0 %vm469_vm4, %v452_v35 }
  0xd5   :  { %v219_v23 = vpop.permute.xlu1 %218 }
  0xd6   :  { %v217_v36 = vpop.permute.xlu0 %216  ;;  %v412_v54 = vsel %vm400_vm1, %v391_v38, %v219_v23 }
  0xd7   :  { %v411_v37 = vsel %vm400_vm1, %v390_v31, %v217_v36 }
  0xd9   :  { %v281_v27 = vpop.permute.xlu1 %280 }
  0xda   :  { %v279_v30 = vpop.permute.xlu0 %278  ;;  %v433_v28 = vsel %vm421_vm2, %v412_v54, %v281_v27 }
  0xdb   :  { %v432_v48 = vsel %vm421_vm2, %v411_v37, %v279_v30 }
  0xdd   :  { %v159_v49 = vpop.permute.xlu1 %158 }
  0xde   :  { %v341_v51 = vpop.permute.xlu0 %340  ;;  %v392_v61 = vsel %vm30_vm0, %v5450_v41, %v159_v49 }
  0xdf   :  { %v453_v52 = vsel %vm442_vm3, %v432_v48, %v341_v51 }
  0xe0   :  { %4807 = vmatprep.mubr.msk.f32.mxu0 %vm469_vm4, %v453_v52 }
  0xe1   :  { %v161_v55 = vpop.permute.xlu1 %160 }
  0xe2   :  { %v343_v56 = vpop.permute.xlu0 %342  ;;  %v393_v63 = vsel %vm30_vm0, %v5458_v43, %v161_v55 }
  0xe3   :  { %v454_v32 = vsel %vm442_vm3, %v433_v28, %v343_v56 }
  0xe4   :  { %4808 = vmatmul.mubr.msk.f32.gmra.mrb[10].mxu0 %vm469_vm4, %v454_v32 }
  0xe5   :  { %v223_v57 = vpop.permute.xlu1 %222 }
  0xe6   :  { %v221_v40 = vpop.permute.xlu0 %220  ;;  %v414_v4 = vsel %vm400_vm1, %v393_v63, %v223_v57 }
  0xe7   :  { %v413_v62 = vsel %vm400_vm1, %v392_v61, %v221_v40 }
  0xe9   :  { %v285_v59 = vpop.permute.xlu1 %284 }
  0xea   :  { %v283_v60 = vpop.permute.xlu0 %282  ;;  %v435_v5 = vsel %vm421_vm2, %v414_v4, %v285_v59 }
  0xeb   :  { %v434_v0 = vsel %vm421_vm2, %v413_v62, %v283_v60 }
  0xed   :  { %v163_v1 = vpop.permute.xlu1 %162 }
  0xee   :  { %v345_v39 = vpop.permute.xlu0 %344  ;;  %v394_v9 = vsel %vm30_vm0, %v5464_v44, %v163_v1 }
  0xef   :  { %v455_v3 = vsel %vm442_vm3, %v434_v0, %v345_v39 }
  0xf0   :  { %4810 = vmatprep.mubr.msk.f32.mxu0 %vm469_vm4, %v455_v3 }
  0xf1   :  { %v165_v42 = vpop.permute.xlu1 %164 }
  0xf2   :  { %v347_v6 = vpop.permute.xlu0 %346  ;;  %v395_v10 = vsel %vm30_vm0, %v5474_v45, %v165_v42  ;;  %v736_v42 = vld [vmem:[%s7188_s3 + $0x8] sm:$0xff] }
  0xf3   :  { %v456_v41 = vsel %vm442_vm3, %v435_v5, %v347_v6  ;;  %v735_v5 = vld [vmem:[%s7188_s3] sm:$0xff] }
  0xf4   :  { %4811 = vmatmul.mubr.msk.f32.gmra.mrb[12].mxu0 %vm469_vm4, %v456_v41  ;;  %v5067_v6 = vpack.c.bf16 %v736_v42, %v735_v5 }
  0xf5   :  { %v227_v7 = vpop.permute.xlu1 %226 }
  0xf6   :  { %v225_v43 = vpop.permute.xlu0 %224  ;;  %v416_v15 = vsel %vm400_vm1, %v395_v10, %v227_v7  ;;  %5068 = vmatprep.subr.bf16.mxu1 %v5067_v6 }
  0xf7   :  { %v415_v34 = vsel %vm400_vm1, %v394_v9, %v225_v43  ;;  %v738_v9 = vld [vmem:[%s7188_s3 + $0x18] sm:$0xff]  ;;  %5070 = vmatpush3.bf16.msra.mxu1 %v5067_v6 }
  0xf9   :  { %v289_v8 = vpop.permute.xlu1 %288 }
  0xfa   :  { %v287_v33 = vpop.permute.xlu0 %286  ;;  %v437_v16 = vsel %vm421_vm2, %v416_v15, %v289_v8 }
  0xfb   :  { %v436_v11 = vsel %vm421_vm2, %v415_v34, %v287_v33  ;;  %v737_v33 = vld [vmem:[%s7188_s3 + $0x10] sm:$0xff] }
  0xfc   :  { %v5071_v10 = vpack.c.bf16 %v738_v9, %v737_v33 }
  0xfd   :  { %v167_v12 = vpop.permute.xlu1 %166 }
  0xfe   :  { %v349_v13 = vpop.permute.xlu0 %348  ;;  %v396_v22 = vsel %vm30_vm0, %v5484_v46, %v167_v12  ;;  %5072 = vmatprep.subr.bf16.mxu1 %v5071_v10 }
  0xff   :  { %v457_v14 = vsel %vm442_vm3, %v436_v11, %v349_v13  ;;  %5074 = vmatpush3.bf16.msra.mxu1 %v5071_v10  ;;  %v739_v13 = vld [vmem:[%s7188_s3 + $0x20] sm:$0xff] }
 0x100   :  { %4813 = vmatprep.mubr.msk.f32.mxu0 %vm469_vm4, %v457_v14  ;;  %4830 = vmatprep.subr.mxu1 %v739_v13 }
 0x101   :  { %v169_v17 = vpop.permute.xlu1 %168 }
 0x102   :  { %v351_v18 = vpop.permute.xlu0 %350  ;;  %v397_v23 = vsel %vm30_vm0, %v5494_v47, %v169_v17 }
 0x103   :  { %v458_v44 = vsel %vm442_vm3, %v437_v16, %v351_v18  ;;  %4831 = vmatpush3.msra.mxu1 %v739_v13 }
 0x104   :  { %4814 = vmatmul.mubr.msk.f32.gmra.mrb[14].mxu0 %vm469_vm4, %v458_v44 }
 0x105   :  { %v231_v19 = vpop.permute.xlu1 %230 }
 0x106   :  { %v229_v45 = vpop.permute.xlu0 %228  ;;  %v418_v37 = vsel %vm400_vm1, %v397_v23, %v231_v19 }
 0x107   :  { %v417_v35 = vsel %vm400_vm1, %v396_v22, %v229_v45 }
 0x109   :  { %v293_v20 = vpop.permute.xlu1 %292 }
 0x10a   :  { %v291_v21 = vpop.permute.xlu0 %290  ;;  %v439_v38 = vsel %vm421_vm2, %v418_v37, %v293_v20 }
 0x10b   :  { %v438_v36 = vsel %vm421_vm2, %v417_v35, %v291_v21 }
 0x10d   :  { %v171_v27 = vpop.permute.xlu1 %170 }
 0x10e   :  { %v353_v30 = vpop.permute.xlu0 %352  ;;  %v398_v55 = vsel %vm30_vm0, %v5504_v50, %v171_v27  ;;  %v5684_v50 = vld [vmem:[%s7187_s2] ss:$0 sm:$0xff] }
 0x10f   :  { %v459_v31 = vsel %vm442_vm3, %v438_v36, %v353_v30 }
 0x110   :  { %4816 = vmatprep.mubr.msk.f32.mxu0 %vm469_vm4, %v459_v31 }
 0x111   :  { %v173_v48 = vpop.permute.xlu1 %172 }
 0x112   :  { %v355_v49 = vpop.permute.xlu0 %354  ;;  %v399_v52 = vsel %vm30_vm0, %v5519_v58, %v173_v48 }
 0x113   :  { %v460_v46 = vsel %vm442_vm3, %v439_v38, %v355_v49 }
 0x114   :  { %4817 = vmatmul.mubr.msk.f32.gmra.mrb[16].mxu0 %vm469_vm4, %v460_v46 }
 0x115   :  { %v235_v51 = vpop.permute.xlu1 %234 }
 0x116   :  { %v233_v47 = vpop.permute.xlu0 %232  ;;  %v420_v56 = vsel %vm400_vm1, %v399_v52, %v235_v51 }
 0x117   :  { %v419_v32 = vsel %vm400_vm1, %v398_v55, %v233_v47 }
 0x119   :  { %v297_v54 = vpop.permute.xlu1 %296 }
 0x11a   :  { %v295_v28 = vpop.permute.xlu0 %294  ;;  %v441_v57 = vsel %vm421_vm2, %v420_v56, %v297_v54 }
 0x11b   :  { %v440_v40 = vsel %vm421_vm2, %v419_v32, %v295_v28 }
 0x11d   :  { %v359_v59 = vpop.permute.xlu1 %358 }
 0x11e   :  { %v357_v60 = vpop.permute.xlu0 %356  ;;  %v462_v61 = vsel %vm442_vm3, %v441_v57, %v359_v59 }
 0x11f   :  { %v461_v62 = vsel %vm442_vm3, %v440_v40, %v357_v60 }
 0x120   :  { %4819 = vmatprep.mubr.msk.f32.mxu0 %vm469_vm4, %v461_v62 }
 0x121   :  { %4820 = vmatmul.mubr.msk.f32.gmra.mrb[18].mxu0 %vm469_vm4, %v462_v61 }
 0x122   :  { %v790_v33 = vpop.permute.xlu0 %789 }
 0x126   :  { %v5852_v10 = vpop.permute.xlu0 %991 }
 0x12a   :  { %v5862_v13 = vpop.permute.xlu0 %993 }
 0x167   :  { %v4794_v58 = vpop.f32.mrb[0].mxu0 }
 0x168   :  { %v602_v63 = vadd.f32 %v4794_v58, %v5684_v50  ;;  %v596_v0 = vpop.f32.mrb[1].mxu0 }
 0x169   :  { %v597_v1 = vadd.f32 %v5684_v50, %v596_v0 }
 0x16a   :  { %v696_v39 = vmax.f32 %v602_v63, 0.0 }
 0x16b   :  { %v695_v3 = vmax.f32 %v597_v1, 0.0 }
 0x16c   :  { %716 = vst.msk [vmem:[#allocation2 + $0x18] sm:$0xff] %vm30_vm0, %v696_v39 }
 0x16d   :  { %715 = vst.msk [vmem:[#allocation2 + $0x10] sm:$0xff] %vm30_vm0, %v695_v3  ;;  %v5830_v3 = vpop.permute.xlu1 %931 }
 0x173   :  { %v5690_v4 = vld [vmem:[#allocation2 + $0x18] sm:$0xff] }
 0x174   :  { %913 = vrot.lane.b32.xlu0 %v5690_v4, %s5188_s11  ;;  %853 = vrot.lane.b32.xlu1 %v5690_v4, %s5186_s27  ;;  %v5702_v7 = vld [vmem:[#allocation2 + $0x10] sm:$0xff] }
 0x177   :  { %v4797_v41 = vpop.f32.mrb[2].mxu0 }
 0x178   :  { %v612_v43 = vadd.f32 %v4797_v41, %v5684_v50  ;;  %793 = vrot.lane.b32.xlu1 %v5690_v4, %s5187_s28  ;;  %v606_v8 = vpop.f32.mrb[3].mxu0  ;;  %851 = vrot.lane.b32.xlu0 %v5702_v7, %s5186_s27 }
 0x179   :  { %v607_v34 = vadd.f32 %v5684_v50, %v606_v8 }
 0x17a   :  { %v698_v11 = vmax.f32 %v612_v43, 0.0 }
 0x17b   :  { %v697_v12 = vmax.f32 %v607_v34, 0.0  ;;  %v5840_v34 = vpop.permute.xlu1 %809 }
 0x17c   :  { %718 = vst.msk [vmem:[#allocation2 + $0x28] sm:$0xff] %vm30_vm0, %v698_v11  ;;  %791 = vrot.lane.b32.xlu1 %v5702_v7, %s5187_s28 }
 0x17d   :  { %717 = vst.msk [vmem:[#allocation2 + $0x20] sm:$0xff] %vm30_vm0, %v697_v12 }
 0x17f   :  { %v5854_v11 = vpop.permute.xlu1 %951 }
 0x183   :  { %v5723_v14 = vld [vmem:[#allocation2 + $0x28] sm:$0xff] }
 0x184   :  { %977 = vrot.lane.b32.xlu0 %v5723_v14, %s5189_s1  ;;  %857 = vrot.lane.b32.xlu1 %v5723_v14, %s5186_s27  ;;  %v5736_v45 = vld [vmem:[#allocation2 + $0x20] sm:$0xff] }
 0x187   :  { %v4800_v15 = vpop.f32.mrb[4].mxu0 }
 0x188   :  { %v622_v16 = vadd.f32 %v4800_v15, %v5684_v50  ;;  %v616_v17 = vpop.f32.mrb[5].mxu0  ;;  %917 = vrot.lane.b32.xlu0 %v5723_v14, %s5188_s11  ;;  %797 = vrot.lane.b32.xlu1 %v5723_v14, %s5187_s28 }
 0x189   :  { %v617_v18 = vadd.f32 %v5684_v50, %v616_v17 }
 0x18a   :  { %v700_v44 = vmax.f32 %v622_v16, 0.0 }
 0x18b   :  { %v699_v19 = vmax.f32 %v617_v18, 0.0 }
 0x18c   :  { %720 = vst.msk [vmem:[#allocation2 + $0x38] sm:$0xff] %vm30_vm0, %v700_v44  ;;  %975 = vrot.lane.b32.xlu0 %v5736_v45, %s5189_s1  ;;  %915 = vrot.lane.b32.xlu1 %v5736_v45, %s5188_s11 }
 0x18d   :  { %719 = vst.msk [vmem:[#allocation2 + $0x30] sm:$0xff] %vm30_vm0, %v699_v19 }
 0x190   :  { %855 = vrot.lane.b32.xlu0 %v5736_v45, %s5186_s27  ;;  %795 = vrot.lane.b32.xlu1 %v5736_v45, %s5187_s28 }
 0x193   :  { %v5747_v20 = vld [vmem:[#allocation2 + $0x38] sm:$0xff] }
 0x194   :  { %981 = vrot.lane.b32.xlu0 %v5747_v20, %s5189_s1  ;;  %861 = vrot.lane.b32.xlu1 %v5747_v20, %s5186_s27  ;;  %v5760_v30 = vld [vmem:[#allocation2 + $0x30] sm:$0xff] }
 0x197   :  { %v4803_v21 = vpop.f32.mrb[6].mxu0 }
 0x198   :  { %v632_v22 = vadd.f32 %v4803_v21, %v5684_v50  ;;  %v626_v35 = vpop.f32.mrb[7].mxu0  ;;  %921 = vrot.lane.b32.xlu0 %v5747_v20, %s5188_s11  ;;  %801 = vrot.lane.b32.xlu1 %v5747_v20, %s5187_s28 }
 0x199   :  { %v627_v23 = vadd.f32 %v5684_v50, %v626_v35 }
 0x19a   :  { %v702_v36 = vmax.f32 %v632_v22, 0.0 }
 0x19b   :  { %v701_v27 = vmax.f32 %v627_v23, 0.0 }
 0x19c   :  { %722 = vst.msk [vmem:[#allocation2 + $0x48] sm:$0xff] %vm30_vm0, %v702_v36  ;;  %979 = vrot.lane.b32.xlu0 %v5760_v30, %s5189_s1  ;;  %919 = vrot.lane.b32.xlu1 %v5760_v30, %s5188_s11 }
 0x19d   :  { %721 = vst.msk [vmem:[#allocation2 + $0x40] sm:$0xff] %vm30_vm0, %v701_v27 }
 0x1a0   :  { %859 = vrot.lane.b32.xlu0 %v5760_v30, %s5186_s27  ;;  %799 = vrot.lane.b32.xlu1 %v5760_v30, %s5187_s28 }
 0x1a3   :  { %v5771_v31 = vld [vmem:[#allocation2 + $0x48] sm:$0xff] }
 0x1a4   :  { %985 = vrot.lane.b32.xlu0 %v5771_v31, %s5189_s1  ;;  %865 = vrot.lane.b32.xlu1 %v5771_v31, %s5186_s27  ;;  %v5784_v47 = vld [vmem:[#allocation2 + $0x40] sm:$0xff] }
 0x1a7   :  { %v4806_v37 = vpop.f32.mrb[8].mxu0 }
 0x1a8   :  { %v642_v38 = vadd.f32 %v4806_v37, %v5684_v50  ;;  %v636_v48 = vpop.f32.mrb[9].mxu0  ;;  %925 = vrot.lane.b32.xlu0 %v5771_v31, %s5188_s11  ;;  %805 = vrot.lane.b32.xlu1 %v5771_v31, %s5187_s28 }
 0x1a9   :  { %v637_v49 = vadd.f32 %v5684_v50, %v636_v48 }
 0x1aa   :  { %v704_v46 = vmax.f32 %v642_v38, 0.0 }
 0x1ab   :  { %v703_v51 = vmax.f32 %v637_v49, 0.0 }
 0x1ac   :  { %724 = vst.msk [vmem:[#allocation2 + $0x58] sm:$0xff] %vm30_vm0, %v704_v46  ;;  %983 = vrot.lane.b32.xlu0 %v5784_v47, %s5189_s1  ;;  %923 = vrot.lane.b32.xlu1 %v5784_v47, %s5188_s11 }
 0x1ad   :  { %723 = vst.msk [vmem:[#allocation2 + $0x50] sm:$0xff] %vm30_vm0, %v703_v51 }
 0x1b0   :  { %863 = vrot.lane.b32.xlu0 %v5784_v47, %s5186_s27  ;;  %803 = vrot.lane.b32.xlu1 %v5784_v47, %s5187_s28 }
 0x1b3   :  { %v763_v52 = vld [vmem:[#allocation2 + $0x58] sm:$0xff] }
 0x1b4   :  { %989 = vrot.lane.b32.xlu0 %v763_v52, %s5189_s1  ;;  %869 = vrot.lane.b32.xlu1 %v763_v52, %s5186_s27  ;;  %v761_v56 = vld [vmem:[#allocation2 + $0x50] sm:$0xff] }
 0x1b7   :  { %v4809_v54 = vpop.f32.mrb[10].mxu0 }
 0x1b8   :  { %v652_v28 = vadd.f32 %v4809_v54, %v5684_v50  ;;  %v646_v55 = vpop.f32.mrb[11].mxu0  ;;  %929 = vrot.lane.b32.xlu0 %v763_v52, %s5188_s11  ;;  %927 = vrot.lane.b32.xlu1 %v761_v56, %s5188_s11 }
 0x1b9   :  { %v647_v32 = vadd.f32 %v5684_v50, %v646_v55  ;;  %v1035_v55 = vsel %vm30_vm0, %v5506_v53, %v790_v33 }
 0x1ba   :  { %v706_v57 = vmax.f32 %v652_v28, 0.0 }
 0x1bb   :  { %v705_v40 = vmax.f32 %v647_v32, 0.0 }
 0x1bc   :  { %726 = vst.msk [vmem:[#allocation2 + $0x88] sm:$0xff] %vm30_vm0, %v706_v57  ;;  %987 = vrot.lane.b32.xlu0 %v761_v56, %s5189_s1  ;;  %807 = vrot.lane.b32.xlu1 %v761_v56, %s5187_s28 }
 0x1bd   :  { %725 = vst.msk [vmem:[#allocation2 + $0x80] sm:$0xff] %vm30_vm0, %v705_v40 }
 0x1c0   :  { %867 = vrot.lane.b32.xlu0 %v761_v56, %s5186_s27 }
 0x1c3   :  { %v5806_v59 = vld [vmem:[#allocation2 + $0x88] sm:$0xff] }
 0x1c4   :  { %873 = vrot.lane.b32.xlu1 %v5806_v59, %s5186_s27  ;;  %933 = vrot.lane.b32.xlu0 %v5806_v59, %s5188_s11  ;;  %v5813_v58 = vld [vmem:[#allocation2 + $0x80] sm:$0xff] }
 0x1c7   :  { %v4812_v60 = vpop.f32.mrb[12].mxu0 }
 0x1c8   :  { %v662_v61 = vadd.f32 %v4812_v60, %v5684_v50  ;;  %v656_v62 = vpop.f32.mrb[13].mxu0  ;;  %813 = vrot.lane.b32.xlu1 %v5806_v59, %s5187_s28  ;;  %871 = vrot.lane.b32.xlu0 %v5813_v58, %s5186_s27 }
 0x1c9   :  { %v657_v63 = vadd.f32 %v5684_v50, %v656_v62 }
 0x1ca   :  { %v708_v0 = vmax.f32 %v662_v61, 0.0 }
 0x1cb   :  { %v707_v1 = vmax.f32 %v657_v63, 0.0 }
 0x1cc   :  { %728 = vst.msk [vmem:[#allocation2 + $0x98] sm:$0xff] %vm30_vm0, %v708_v0  ;;  %811 = vrot.lane.b32.xlu1 %v5813_v58, %s5187_s28 }
 0x1cd   :  { %727 = vst.msk [vmem:[#allocation2 + $0x90] sm:$0xff] %vm30_vm0, %v707_v1 }
 0x1d3   :  { %v5824_v39 = vld [vmem:[#allocation2 + $0x98] sm:$0xff] }
 0x1d4   :  { %997 = vrot.lane.b32.xlu0 %v5824_v39, %s5189_s1  ;;  %877 = vrot.lane.b32.xlu1 %v5824_v39, %s5186_s27  ;;  %v5838_v9 = vld [vmem:[#allocation2 + $0x90] sm:$0xff] }
 0x1d7   :  { %v4815_v5 = vpop.f32.mrb[14].mxu0 }
 0x1d8   :  { %v672_v42 = vadd.f32 %v4815_v5, %v5684_v50  ;;  %v666_v6 = vpop.f32.mrb[15].mxu0  ;;  %937 = vrot.lane.b32.xlu0 %v5824_v39, %s5188_s11  ;;  %817 = vrot.lane.b32.xlu1 %v5824_v39, %s5187_s28 }
 0x1d9   :  { %v667_v41 = vadd.f32 %v5684_v50, %v666_v6 }
 0x1da   :  { %v710_v43 = vmax.f32 %v672_v42, 0.0 }
 0x1db   :  { %v709_v8 = vmax.f32 %v667_v41, 0.0 }
 0x1dc   :  { %730 = vst.msk [vmem:[#allocation2 + $0xa8] sm:$0xff] %vm30_vm0, %v710_v43  ;;  %995 = vrot.lane.b32.xlu0 %v5838_v9, %s5189_s1  ;;  %935 = vrot.lane.b32.xlu1 %v5838_v9, %s5188_s11 }
 0x1dd   :  { %729 = vst.msk [vmem:[#allocation2 + $0xa0] sm:$0xff] %vm30_vm0, %v709_v8 }
 0x1e0   :  { %875 = vrot.lane.b32.xlu0 %v5838_v9, %s5186_s27  ;;  %815 = vrot.lane.b32.xlu1 %v5838_v9, %s5187_s28 }
 0x1e3   :  { %v5856_v12 = vld [vmem:[#allocation2 + $0xa8] sm:$0xff] }
 0x1e4   :  { %1001 = vrot.lane.b32.xlu0 %v5856_v12, %s5189_s1  ;;  %881 = vrot.lane.b32.xlu1 %v5856_v12, %s5186_s27  ;;  %v5870_v21 = vld [vmem:[#allocation2 + $0xa0] sm:$0xff] }
 0x1e6   :  { %v854_v15 = vpop.permute.xlu1 %853  ;;  %v914_v35 = vpop.permute.xlu0 %913 }
 0x1e7   :  { %v4818_v16 = vpop.f32.mrb[16].mxu0 }
 0x1e8   :  { %941 = vrot.lane.b32.xlu0 %v5856_v12, %s5188_s11  ;;  %821 = vrot.lane.b32.xlu1 %v5856_v12, %s5187_s28  ;;  %v682_v17 = vadd.f32 %v4818_v16, %v5684_v50  ;;  %v676_v18 = vpop.f32.mrb[17].mxu0 }
 0x1e9   :  { %v677_v44 = vadd.f32 %v5684_v50, %v676_v18 }
 0x1ea   :  { %v712_v19 = vmax.f32 %v682_v17, 0.0  ;;  %v794_v23 = vpop.permute.xlu1 %793  ;;  %v852_v36 = vpop.permute.xlu0 %851 }
 0x1eb   :  { %v711_v22 = vmax.f32 %v677_v44, 0.0  ;;  %v1037_v8 = vsel %vm30_vm0, %v5702_v7, %v794_v23 }
 0x1ec   :  { %999 = vrot.lane.b32.xlu0 %v5870_v21, %s5189_s1  ;;  %939 = vrot.lane.b32.xlu1 %v5870_v21, %s5188_s11  ;;  %732 = vst.msk [vmem:[#allocation2 + $0xb8] sm:$0xff] %vm30_vm0, %v712_v19 }
 0x1ed   :  { %731 = vst.msk [vmem:[#allocation2 + $0xb0] sm:$0xff] %vm30_vm0, %v711_v22 }
 0x1ee   :  { %v792_v27 = vpop.permute.xlu1 %791 }
 0x1ef   :  { %v1036_v57 = vsel %vm30_vm0, %v5345_v25, %v792_v27 }
 0x1f0   :  { %879 = vrot.lane.b32.xlu0 %v5870_v21, %s5186_s27  ;;  %819 = vrot.lane.b32.xlu1 %v5870_v21, %s5187_s28  ;;  %v1056_v60 = vsel %vm400_vm1, %v1036_v57, %v854_v15 }
 0x1f3   :  { %v5882_v38 = vld [vmem:[#allocation2 + $0xb8] sm:$0xff] }
 0x1f4   :  { %v4821_v37 = vpop.f32.mrb[18].mxu0  ;;  %1005 = vrot.lane.b32.xlu0 %v5882_v38, %s5189_s1  ;;  %885 = vrot.lane.b32.xlu1 %v5882_v38, %s5186_s27  ;;  %v5901_v40 = vld [vmem:[#allocation2 + $0xb0] sm:$0xff] }
 0x1f5   :  { %v692_v48 = vadd.f32 %v4821_v37, %v5684_v50  ;;  %v686_v49 = vpop.f32.mrb[19].mxu0 }
 0x1f6   :  { %v687_v46 = vadd.f32 %v5684_v50, %v686_v49  ;;  %v978_v52 = vpop.permute.xlu0 %977  ;;  %v858_v54 = vpop.permute.xlu1 %857  ;;  %v1055_v50 = vsel %vm400_vm1, %v1035_v55, %v852_v36 }
 0x1f7   :  { %v714_v51 = vmax.f32 %v692_v48, 0.0  ;;  %v1075_v62 = vsel %vm421_vm2, %v1055_v50, %v914_v35 }
 0x1f8   :  { %v713_v28 = vmax.f32 %v687_v46, 0.0  ;;  %945 = vrot.lane.b32.xlu0 %v5882_v38, %s5188_s11  ;;  %825 = vrot.lane.b32.xlu1 %v5882_v38, %s5187_s28 }
 0x1f9   :  { %734 = vst.msk [vmem:[#allocation2 + $0xc8] sm:$0xff] %vm30_vm0, %v714_v51 }
 0x1fa   :  { %733 = vst.msk [vmem:[#allocation2 + $0xc0] sm:$0xff] %vm30_vm0, %v713_v28  ;;  %v918_v56 = vpop.permute.xlu0 %917  ;;  %v798_v32 = vpop.permute.xlu1 %797 }
 0x1fb   :  { %v1039_v48 = vsel %vm30_vm0, %v5736_v45, %v798_v32 }
 0x1fc   :  { %1003 = vrot.lane.b32.xlu0 %v5901_v40, %s5189_s1  ;;  %943 = vrot.lane.b32.xlu1 %v5901_v40, %s5188_s11 }
 0x1fe   :  { %v976_v53 = vpop.permute.xlu0 %975  ;;  %v916_v61 = vpop.permute.xlu1 %915 }
 0x1ff   :  { %v1076_v63 = vsel %vm421_vm2, %v1056_v60, %v916_v61  ;;  %v1095_v0 = vsel %vm442_vm3, %v1075_v62, %v976_v53 }
 0x200   :  { %883 = vrot.lane.b32.xlu0 %v5901_v40, %s5186_s27  ;;  %4832 = vmatprep.mubr.msk.f32.mxu1 %vm469_vm4, %v1095_v0  ;;  %v1096_v25 = vsel %vm442_vm3, %v1076_v63, %v978_v52  ;;  %v764_v42 = vld [vmem:[#allocation2 + $0xc8] sm:$0xff] }
 0x201   :  { %823 = vrot.lane.b32.xlu1 %v5901_v40, %s5187_s28  ;;  %4833 = vmatmul.mubr.msk.f32.vlgmr.msra.gmra.mrb[0].mxu1 %vm469_vm4, %v1096_v25  ;;  %v762_v43 = vld [vmem:[#allocation2 + $0xc0] sm:$0xff] }
 0x202   :  { %v856_v1 = vpop.permute.xlu0 %855  ;;  %v796_v5 = vpop.permute.xlu1 %795 }
 0x203   :  { %v1057_v16 = vsel %vm400_vm1, %v1037_v8, %v856_v1  ;;  %v1038_v17 = vsel %vm30_vm0, %v5690_v4, %v796_v5 }
 0x204   :  { %1009 = vrot.lane.b32.xlu0 %v764_v42, %s5189_s1  ;;  %v1077_v44 = vsel %vm421_vm2, %v1057_v16, %v918_v56  ;;  %v1058_v19 = vsel %vm400_vm1, %v1038_v17, %v858_v54 }
 0x205   :  { %889 = vrot.lane.b32.xlu1 %v764_v42, %s5186_s27 }
 0x206   :  { %v982_v6 = vpop.permute.xlu0 %981  ;;  %v862_v41 = vpop.permute.xlu1 %861 }
 0x208   :  { %949 = vrot.lane.b32.xlu0 %v764_v42, %s5188_s11 }
 0x209   :  { %947 = vrot.lane.b32.xlu1 %v762_v43, %s5188_s11 }
 0x20a   :  { %v922_v33 = vpop.permute.xlu0 %921  ;;  %v802_v15 = vpop.permute.xlu1 %801 }
 0x20b   :  { %v1041_v60 = vsel %vm30_vm0, %v5760_v30, %v802_v15 }
 0x20c   :  { %1007 = vrot.lane.b32.xlu0 %v762_v43, %s5189_s1 }
 0x20d   :  { %827 = vrot.lane.b32.xlu1 %v762_v43, %s5187_s28 }
 0x20e   :  { %v980_v18 = vpop.permute.xlu0 %979  ;;  %v920_v22 = vpop.permute.xlu1 %919 }
 0x20f   :  { %v1097_v35 = vsel %vm442_vm3, %v1077_v44, %v980_v18  ;;  %v1078_v7 = vsel %vm421_vm2, %v1058_v19, %v920_v22 }
 0x210   :  { %887 = vrot.lane.b32.xlu0 %v762_v43, %s5186_s27  ;;  %4835 = vmatprep.mubr.msk.f32.mxu1 %vm469_vm4, %v1097_v35  ;;  %v1098_v4 = vsel %vm442_vm3, %v1078_v7, %v982_v6 }
 0x211   :  { %1013 = vrot.lane.b32.xlu1 %v5565_v29, %s5189_s1  ;;  %4836 = vmatmul.mubr.msk.f32.gmra.mrb[2].mxu1 %vm469_vm4, %v1098_v4 }
 0x212   :  { %v860_v23 = vpop.permute.xlu0 %859  ;;  %v800_v36 = vpop.permute.xlu1 %799 }
 0x213   :  { %v1059_v51 = vsel %vm400_vm1, %v1039_v48, %v860_v23  ;;  %v1040_v52 = vsel %vm30_vm0, %v5723_v14, %v800_v36  ;;  %v5157_v36 = vld [vmem:[#allocation2 + $0x78] sm:$0xff] }
 0x214   :  { %1011 = vrot.lane.b32.xlu0 %v5560_v24, %s5189_s1  ;;  %v1079_v54 = vsel %vm421_vm2, %v1059_v51, %v922_v33  ;;  %v1060_v28 = vsel %vm400_vm1, %v1040_v52, %v862_v41 }
 0x216   :  { %v986_v27 = vpop.permute.xlu0 %985  ;;  %v866_v37 = vpop.permute.xlu1 %865 }
 0x21a   :  { %v926_v49 = vpop.permute.xlu0 %925  ;;  %v806_v46 = vpop.permute.xlu1 %805 }
 0x21b   :  { %v1043_v43 = vsel %vm30_vm0, %v5784_v47, %v806_v46 }
 0x21e   :  { %v984_v29 = vpop.permute.xlu0 %983  ;;  %v924_v55 = vpop.permute.xlu1 %923 }
 0x21f   :  { %v1099_v24 = vsel %vm442_vm3, %v1079_v54, %v984_v29  ;;  %v1080_v56 = vsel %vm421_vm2, %v1060_v28, %v924_v55  ;;  %v5992_v28 = vld [vmem:[#allocation2 + $0x8] sm:$0xff]  ;;  %v5994_v55 = vld [vmem:[#allocation2 + $0x60] sm:$0xff] }
 0x220   :  { %4838 = vmatprep.mubr.msk.f32.mxu1 %vm469_vm4, %v1099_v24  ;;  %v1100_v45 = vsel %vm442_vm3, %v1080_v56, %v986_v27  ;;  %1439 = vrot.lane.b32.xlu0 %v5992_v28, %s5187_s28 }
 0x221   :  { %4839 = vmatmul.mubr.msk.f32.gmra.mrb[4].mxu1 %vm469_vm4, %v1100_v45  ;;  %1581 = vrot.lane.b32.xlu1 %v5994_v55, %s5188_s11 }
 0x222   :  { %v864_v32 = vpop.permute.xlu0 %863  ;;  %v804_v50 = vpop.permute.xlu1 %803 }
 0x223   :  { %v1042_v53 = vsel %vm30_vm0, %v5747_v20, %v804_v50  ;;  %v1061_v63 = vsel %vm400_vm1, %v1041_v60, %v864_v32  ;;  %v6002_v32 = vld [vmem:[#allocation2 + $0x78] sm:$0xff] }
 0x224   :  { %v1062_v0 = vsel %vm400_vm1, %v1042_v53, %v866_v37  ;;  %v1081_v5 = vsel %vm421_vm2, %v1061_v63, %v926_v49  ;;  %1641 = vrot.lane.b32.xlu0 %v5994_v55, %s5189_s1  ;;  %v6013_v53 = vld [vmem:[#allocation2 + $0xd0] sm:$0xff] }
 0x225   :  { %1459 = vrot.lane.b32.xlu1 %v6002_v32, %s5187_s28 }
 0x226   :  { %v990_v57 = vpop.permute.xlu0 %989  ;;  %v870_v14 = vpop.permute.xlu1 %869 }
 0x229   :  { %1601 = vrot.lane.b32.xlu1 %v6013_v53, %s5188_s11 }
 0x22a   :  { %v930_v61 = vpop.permute.xlu0 %929  ;;  %v928_v62 = vpop.permute.xlu1 %927 }
 0x22b   :  { %v1082_v25 = vsel %vm421_vm2, %v1062_v0, %v928_v62 }
 0x22c   :  { %v1102_v30 = vsel %vm442_vm3, %v1082_v25, %v990_v57 }
 0x22e   :  { %v988_v1 = vpop.permute.xlu0 %987  ;;  %v808_v42 = vpop.permute.xlu1 %807 }
 0x22f   :  { %v1101_v6 = vsel %vm442_vm3, %v1081_v5, %v988_v1  ;;  %v1044_v20 = vsel %vm30_vm0, %v5771_v31, %v808_v42 }
 0x230   :  { %v1064_v41 = vsel %vm400_vm1, %v1044_v20, %v870_v14  ;;  %4841 = vmatprep.mubr.msk.f32.mxu1 %vm469_vm4, %v1101_v6  ;;  %v6011_v14 = vld [vmem:[#allocation2 + $0x68] sm:$0xff] }
 0x231   :  { %4842 = vmatmul.mubr.msk.f32.gmra.mrb[6].mxu1 %vm469_vm4, %v1102_v30  ;;  %v1084_v15 = vsel %vm421_vm2, %v1064_v41, %v5830_v3  ;;  %v1045_v3 = vsel %vm30_vm0, %v5619_v26, %v5840_v34  ;;  %1643 = vrot.lane.b32.xlu0 %v6011_v14, %s5189_s1 }
 0x232   :  { %v868_v8 = vpop.permute.xlu0 %867  ;;  %v1104_v18 = vsel %vm442_vm3, %v1084_v15, %v5862_v13 }
 0x233   :  { %v1063_v33 = vsel %vm400_vm1, %v1043_v43, %v868_v8 }
 0x234   :  { %v1083_v16 = vsel %vm421_vm2, %v1063_v33, %v930_v61 }
 0x235   :  { %v1103_v17 = vsel %vm442_vm3, %v1083_v16, %v5852_v10 }
 0x236   :  { %v874_v31 = vpop.permute.xlu1 %873  ;;  %4844 = vmatprep.mubr.msk.f32.mxu1 %vm469_vm4, %v1103_v17  ;;  %v934_v47 = vpop.permute.xlu0 %933 }
 0x237   :  { %4845 = vmatmul.mubr.msk.f32.gmra.mrb[8].mxu1 %vm469_vm4, %v1104_v18 }
 0x23a   :  { %v814_v44 = vpop.permute.xlu1 %813  ;;  %v872_v19 = vpop.permute.xlu0 %871 }
 0x23b   :  { %v1065_v10 = vsel %vm400_vm1, %v1045_v3, %v872_v19  ;;  %v1047_v24 = vsel %vm30_vm0, %v5813_v58, %v814_v44 }
 0x23c   :  { %v1085_v13 = vsel %vm421_vm2, %v1065_v10, %v934_v47 }
 0x23e   :  { %v812_v22 = vpop.permute.xlu1 %811 }
 0x23f   :  { %v1046_v27 = vsel %vm30_vm0, %v5157_v36, %v812_v22 }
 0x240   :  { %v1066_v48 = vsel %vm400_vm1, %v1046_v27, %v874_v31 }
 0x246   :  { %v998_v35 = vpop.permute.xlu0 %997  ;;  %v878_v7 = vpop.permute.xlu1 %877 }
 0x24a   :  { %v938_v4 = vpop.permute.xlu0 %937  ;;  %v818_v23 = vpop.permute.xlu1 %817 }
 0x24b   :  { %v1049_v6 = vsel %vm30_vm0, %v5838_v9, %v818_v23 }
 0x24e   :  { %v996_v37 = vpop.permute.xlu0 %995  ;;  %v936_v49 = vpop.permute.xlu1 %935 }
 0x24f   :  { %v1105_v46 = vsel %vm442_vm3, %v1085_v13, %v996_v37  ;;  %v1086_v51 = vsel %vm421_vm2, %v1066_v48, %v936_v49 }
 0x250   :  { %4847 = vmatprep.mubr.msk.f32.mxu1 %vm469_vm4, %v1105_v46  ;;  %v1106_v26 = vsel %vm442_vm3, %v1086_v51, %v998_v35 }
 0x251   :  { %4848 = vmatmul.mubr.msk.f32.gmra.mrb[10].mxu1 %vm469_vm4, %v1106_v26 }
 0x252   :  { %v876_v34 = vpop.permute.xlu0 %875  ;;  %v816_v52 = vpop.permute.xlu1 %815 }
 0x253   :  { %v1067_v50 = vsel %vm400_vm1, %v1047_v24, %v876_v34  ;;  %v1048_v57 = vsel %vm30_vm0, %v5806_v59, %v816_v52 }
 0x254   :  { %v1087_v60 = vsel %vm421_vm2, %v1067_v50, %v938_v4  ;;  %v1068_v61 = vsel %vm400_vm1, %v1048_v57, %v878_v7  ;;  %v4544_v57 = vld [vmem:[%s7188_s3 + $0x28] sm:$0xff] }
 0x256   :  { %v1002_v29 = vpop.permute.xlu0 %1001  ;;  %v882_v54 = vpop.permute.xlu1 %881 }
 0x25a   :  { %v942_v56 = vpop.permute.xlu0 %941  ;;  %v822_v45 = vpop.permute.xlu1 %821 }
 0x25b   :  { %v1051_v22 = vsel %vm30_vm0, %v5870_v21, %v822_v45 }
 0x25e   :  { %v1000_v58 = vpop.permute.xlu0 %999  ;;  %v940_v62 = vpop.permute.xlu1 %939 }
 0x25f   :  { %v1107_v63 = vsel %vm442_vm3, %v1087_v60, %v1000_v58  ;;  %v1088_v59 = vsel %vm421_vm2, %v1068_v61, %v940_v62  ;;  %v4545_v58 = vld [vmem:[%s7188_s3 + $0x30] sm:$0xff]  ;;  %v4546_v62 = vld [vmem:[%s7188_s3 + $0x38] sm:$0xff] }
 0x260   :  { %4850 = vmatprep.mubr.msk.f32.mxu1 %vm469_vm4, %v1107_v63  ;;  %v1108_v0 = vsel %vm442_vm3, %v1088_v59, %v1002_v29  ;;  %v5075_v60 = vpack.c.bf16 %v4545_v58, %v4544_v57  ;;  %v4547_v63 = vld [vmem:[%s7188_s3 + $0x40] sm:$0xff] }
 0x261   :  { %4851 = vmatmul.mubr.msk.f32.gmra.mrb[12].mxu1 %vm469_vm4, %v1108_v0  ;;  %v5079_v59 = vpack.c.bf16 %v4547_v63, %v4546_v62 }
 0x262   :  { %v880_v25 = vpop.permute.xlu0 %879  ;;  %v820_v1 = vpop.permute.xlu1 %819  ;;  %5076 = vmatprep.subr.bf16.mxu0 %v5075_v60 }
 0x263   :  { %v1069_v30 = vsel %vm400_vm1, %v1049_v6, %v880_v25  ;;  %v1050_v43 = vsel %vm30_vm0, %v5824_v39, %v820_v1  ;;  %5078 = vmatpush3.bf16.msra.mxu0 %v5075_v60 }
 0x264   :  { %v1089_v33 = vsel %vm421_vm2, %v1069_v30, %v942_v56  ;;  %v1070_v15 = vsel %vm400_vm1, %v1050_v43, %v882_v54  ;;  %5080 = vmatprep.subr.bf16.mxu0 %v5079_v59 }
 0x266   :  { %v1006_v5 = vpop.permute.xlu0 %1005  ;;  %v886_v42 = vpop.permute.xlu1 %885 }
 0x267   :  { %5082 = vmatpush3.bf16.msra.mxu0 %v5079_v59 }
 0x26a   :  { %v946_v20 = vpop.permute.xlu0 %945  ;;  %v826_v41 = vpop.permute.xlu1 %825 }
 0x26b   :  { %v1053_v37 = vsel %vm30_vm0, %v5901_v40, %v826_v41  ;;  %v6066_v40 = vld [vmem:[%s7189_s4] ss:$0 sm:$0xff]  ;;  %v4548_v41 = vld [vmem:[%s7188_s3 + $0x48] sm:$0xff] }
 0x26c   :  { %4870 = vmatprep.subr.mxu0 %v4548_v41 }
 0x26d   :  { %4871 = vmatpush3.msra.mxu0 %v4548_v41 }
 0x26e   :  { %v1004_v8 = vpop.permute.xlu0 %1003  ;;  %v944_v16 = vpop.permute.xlu1 %943 }
 0x26f   :  { %v1109_v31 = vsel %vm442_vm3, %v1089_v33, %v1004_v8  ;;  %v1090_v17 = vsel %vm421_vm2, %v1070_v15, %v944_v16 }
 0x270   :  { %4853 = vmatprep.mubr.msk.f32.mxu1 %vm469_vm4, %v1109_v31  ;;  %v1110_v9 = vsel %vm442_vm3, %v1090_v17, %v1006_v5 }
 0x271   :  { %4854 = vmatmul.mubr.msk.f32.gmra.mrb[14].mxu1 %vm469_vm4, %v1110_v9 }
 0x272   :  { %v884_v18 = vpop.permute.xlu0 %883 }
 0x273   :  { %v824_v47 = vpop.permute.xlu1 %823  ;;  %v1071_v7 = vsel %vm400_vm1, %v1051_v22, %v884_v18 }
 0x274   :  { %v1052_v19 = vsel %vm30_vm0, %v5856_v12, %v824_v47  ;;  %v1091_v36 = vsel %vm421_vm2, %v1071_v7, %v946_v20 }
 0x275   :  { %v1072_v4 = vsel %vm400_vm1, %v1052_v19, %v886_v42 }
 0x276   :  { %v1010_v44 = vpop.permute.xlu0 %1009 }
 0x277   :  { %v890_v39 = vpop.permute.xlu1 %889 }
 0x27a   :  { %v950_v35 = vpop.permute.xlu0 %949 }
 0x27b   :  { %v948_v3 = vpop.permute.xlu1 %947 }
 0x27c   :  { %v1092_v23 = vsel %vm421_vm2, %v1072_v4, %v948_v3 }
 0x27d   :  { %v1112_v21 = vsel %vm442_vm3, %v1092_v23, %v1010_v44 }
 0x27e   :  { %v1008_v10 = vpop.permute.xlu0 %1007 }
 0x27f   :  { %v1111_v27 = vsel %vm442_vm3, %v1091_v36, %v1008_v10  ;;  %v828_v13 = vpop.permute.xlu1 %827 }
 0x280   :  { %v1054_v12 = vsel %vm30_vm0, %v5882_v38, %v828_v13  ;;  %4856 = vmatprep.mubr.msk.f32.mxu1 %vm469_vm4, %v1111_v27 }
 0x281   :  { %4857 = vmatmul.mubr.msk.f32.gmra.mrb[16].mxu1 %vm469_vm4, %v1112_v21  ;;  %v1074_v48 = vsel %vm400_vm1, %v1054_v12, %v890_v39 }
 0x282   :  { %v888_v49 = vpop.permute.xlu0 %887  ;;  %v1094_v51 = vsel %vm421_vm2, %v1074_v48, %v5854_v11 }
 0x283   :  { %v1073_v46 = vsel %vm400_vm1, %v1053_v37, %v888_v49  ;;  %v1014_v26 = vpop.permute.xlu1 %1013 }
 0x284   :  { %v1093_v38 = vsel %vm421_vm2, %v1073_v46, %v950_v35  ;;  %v1114_v29 = vsel %vm442_vm3, %v1094_v51, %v1014_v26 }
 0x286   :  { %v1012_v34 = vpop.permute.xlu0 %1011 }
 0x287   :  { %v1113_v52 = vsel %vm442_vm3, %v1093_v38, %v1012_v34 }
 0x288   :  { %4859 = vmatprep.mubr.msk.f32.mxu1 %vm469_vm4, %v1113_v52 }
 0x289   :  { %4860 = vmatmul.mubr.msk.f32.gmra.mrb[18].mxu1 %vm469_vm4, %v1114_v29 }
 0x292   :  { %v1440_v59 = vpop.permute.xlu0 %1439 }
 0x2d4   :  { %v4834_v54 = vpop.f32.mrb[0].mxu1 }
 0x2d5   :  { %v1251_v11 = vadd.f32 %v4834_v54, %v6066_v40  ;;  %v1245_v24 = vpop.f32.mrb[1].mxu1 }
 0x2d6   :  { %v1246_v56 = vadd.f32 %v6066_v40, %v1245_v24 }
 0x2d7   :  { %v1345_v45 = vmax.f32 %v1251_v11, 0.0 }
 0x2d8   :  { %v1344_v50 = vmax.f32 %v1246_v56, 0.0 }
 0x2d9   :  { %1365 = vst.msk [vmem:[#allocation2 + $0x18] sm:$0xff] %vm30_vm0, %v1345_v45 }
 0x2da   :  { %1364 = vst.msk [vmem:[#allocation2 + $0x10] sm:$0xff] %vm30_vm0, %v1344_v50  ;;  %v6212_v50 = vpop.permute.xlu1 %1581 }
 0x2e0   :  { %v6078_v61 = vld [vmem:[#allocation2 + $0x18] sm:$0xff] }
 0x2e1   :  { %1563 = vrot.lane.b32.xlu0 %v6078_v61, %s5188_s11  ;;  %1503 = vrot.lane.b32.xlu1 %v6078_v61, %s5186_s27  ;;  %v6090_v25 = vld [vmem:[#allocation2 + $0x10] sm:$0xff] }
 0x2e4   :  { %v4837_v0 = vpop.f32.mrb[2].mxu1 }
 0x2e5   :  { %v1261_v1 = vadd.f32 %v4837_v0, %v6066_v40  ;;  %1443 = vrot.lane.b32.xlu1 %v6078_v61, %s5187_s28  ;;  %1501 = vrot.lane.b32.xlu0 %v6090_v25, %s5186_s27  ;;  %v1255_v5 = vpop.f32.mrb[3].mxu1 }
 0x2e6   :  { %v1256_v42 = vadd.f32 %v6066_v40, %v1255_v5 }
 0x2e7   :  { %v1347_v6 = vmax.f32 %v1261_v1, 0.0  ;;  %v6222_v1 = vpop.permute.xlu1 %1459 }
 0x2e8   :  { %v1346_v20 = vmax.f32 %v1256_v42, 0.0  ;;  %v6234_v42 = vpop.permute.xlu0 %1641 }
 0x2e9   :  { %1367 = vst.msk [vmem:[#allocation2 + $0x28] sm:$0xff] %vm30_vm0, %v1347_v6  ;;  %1441 = vrot.lane.b32.xlu1 %v6090_v25, %s5187_s28 }
 0x2ea   :  { %1366 = vst.msk [vmem:[#allocation2 + $0x20] sm:$0xff] %vm30_vm0, %v1346_v20 }
 0x2eb   :  { %v6236_v6 = vpop.permute.xlu1 %1601 }
 0x2ec   :  { %v6244_v41 = vpop.permute.xlu0 %1643 }
 0x2f0   :  { %v6105_v30 = vld [vmem:[#allocation2 + $0x28] sm:$0xff] }
 0x2f1   :  { %1507 = vrot.lane.b32.xlu1 %v6105_v30, %s5186_s27  ;;  %1627 = vrot.lane.b32.xlu0 %v6105_v30, %s5189_s1  ;;  %v6117_v17 = vld [vmem:[#allocation2 + $0x20] sm:$0xff] }
 0x2f4   :  { %v4840_v43 = vpop.f32.mrb[4].mxu1 }
 0x2f5   :  { %v1271_v8 = vadd.f32 %v4840_v43, %v6066_v40  ;;  %1447 = vrot.lane.b32.xlu1 %v6105_v30, %s5187_s28  ;;  %1567 = vrot.lane.b32.xlu0 %v6105_v30, %s5188_s11  ;;  %v1265_v33 = vpop.f32.mrb[5].mxu1 }
 0x2f6   :  { %v1266_v15 = vadd.f32 %v6066_v40, %v1265_v33 }
 0x2f7   :  { %v1349_v16 = vmax.f32 %v1271_v8, 0.0 }
 0x2f8   :  { %v1348_v31 = vmax.f32 %v1266_v15, 0.0 }
 0x2f9   :  { %1369 = vst.msk [vmem:[#allocation2 + $0x38] sm:$0xff] %vm30_vm0, %v1349_v16  ;;  %1625 = vrot.lane.b32.xlu0 %v6117_v17, %s5189_s1  ;;  %1565 = vrot.lane.b32.xlu1 %v6117_v17, %s5188_s11 }
 0x2fa   :  { %1368 = vst.msk [vmem:[#allocation2 + $0x30] sm:$0xff] %vm30_vm0, %v1348_v31 }
 0x2fd   :  { %1505 = vrot.lane.b32.xlu0 %v6117_v17, %s5186_s27  ;;  %1445 = vrot.lane.b32.xlu1 %v6117_v17, %s5187_s28 }
 0x300   :  { %v6129_v9 = vld [vmem:[#allocation2 + $0x38] sm:$0xff] }
 0x301   :  { %1631 = vrot.lane.b32.xlu0 %v6129_v9, %s5189_s1  ;;  %1511 = vrot.lane.b32.xlu1 %v6129_v9, %s5186_s27  ;;  %v6141_v35 = vld [vmem:[#allocation2 + $0x30] sm:$0xff] }
 0x304   :  { %v4843_v18 = vpop.f32.mrb[6].mxu1 }
 0x305   :  { %v1281_v47 = vadd.f32 %v4843_v18, %v6066_v40  ;;  %v1275_v44 = vpop.f32.mrb[7].mxu1  ;;  %1571 = vrot.lane.b32.xlu0 %v6129_v9, %s5188_s11  ;;  %1451 = vrot.lane.b32.xlu1 %v6129_v9, %s5187_s28 }
 0x306   :  { %v1276_v39 = vadd.f32 %v6066_v40, %v1275_v44 }
 0x307   :  { %v1351_v19 = vmax.f32 %v1281_v47, 0.0 }
 0x308   :  { %v1350_v22 = vmax.f32 %v1276_v39, 0.0 }
 0x309   :  { %1371 = vst.msk [vmem:[#allocation2 + $0x48] sm:$0xff] %vm30_vm0, %v1351_v19  ;;  %1629 = vrot.lane.b32.xlu0 %v6141_v35, %s5189_s1  ;;  %1569 = vrot.lane.b32.xlu1 %v6141_v35, %s5188_s11 }
 0x30a   :  { %1370 = vst.msk [vmem:[#allocation2 + $0x40] sm:$0xff] %vm30_vm0, %v1350_v22  ;;  %v4846_v7 = vpop.f32.mrb[8].mxu1 }
 0x30b   :  { %v1291_v3 = vadd.f32 %v4846_v7, %v6066_v40  ;;  %v1285_v4 = vpop.f32.mrb[9].mxu1 }
 0x30c   :  { %v1286_v23 = vadd.f32 %v6066_v40, %v1285_v4 }
 0x30d   :  { %v1353_v10 = vmax.f32 %v1291_v3, 0.0  ;;  %1509 = vrot.lane.b32.xlu0 %v6141_v35, %s5186_s27  ;;  %1449 = vrot.lane.b32.xlu1 %v6141_v35, %s5187_s28 }
 0x30e   :  { %v1352_v36 = vmax.f32 %v1286_v23, 0.0 }
 0x30f   :  { %1373 = vst.msk [vmem:[#allocation2 + $0x58] sm:$0xff] %vm30_vm0, %v1353_v10 }
 0x310   :  { %1372 = vst.msk [vmem:[#allocation2 + $0x50] sm:$0xff] %vm30_vm0, %v1352_v36  ;;  %v6157_v27 = vld [vmem:[#allocation2 + $0x48] sm:$0xff] }
 0x311   :  { %1635 = vrot.lane.b32.xlu0 %v6157_v27, %s5189_s1  ;;  %1515 = vrot.lane.b32.xlu1 %v6157_v27, %s5186_s27  ;;  %v6167_v13 = vld [vmem:[#allocation2 + $0x40] sm:$0xff] }
 0x315   :  { %1575 = vrot.lane.b32.xlu0 %v6157_v27, %s5188_s11  ;;  %1455 = vrot.lane.b32.xlu1 %v6157_v27, %s5187_s28 }
 0x316   :  { %v1413_v12 = vld [vmem:[#allocation2 + $0x58] sm:$0xff] }
 0x317   :  { %v1411_v49 = vld [vmem:[#allocation2 + $0x50] sm:$0xff] }
 0x319   :  { %1633 = vrot.lane.b32.xlu0 %v6167_v13, %s5189_s1  ;;  %1573 = vrot.lane.b32.xlu1 %v6167_v13, %s5188_s11 }
 0x31d   :  { %1513 = vrot.lane.b32.xlu0 %v6167_v13, %s5186_s27  ;;  %1453 = vrot.lane.b32.xlu1 %v6167_v13, %s5187_s28 }
 0x321   :  { %1639 = vrot.lane.b32.xlu0 %v1413_v12, %s5189_s1  ;;  %1519 = vrot.lane.b32.xlu1 %v1413_v12, %s5186_s27 }
 0x324   :  { %v4849_v21 = vpop.f32.mrb[10].mxu1 }
 0x325   :  { %v1301_v37 = vadd.f32 %v4849_v21, %v6066_v40  ;;  %v1295_v48 = vpop.f32.mrb[11].mxu1  ;;  %1579 = vrot.lane.b32.xlu0 %v1413_v12, %s5188_s11  ;;  %1577 = vrot.lane.b32.xlu1 %v1411_v49, %s5188_s11  ;;  %v6273_v21 = vld [vmem:[#allocation2] sm:$0xff] }
 0x326   :  { %v1296_v46 = vadd.f32 %v6066_v40, %v1295_v48  ;;  %v1685_v48 = vsel %vm30_vm0, %v6273_v21, %v1440_v59 }
 0x327   :  { %v1355_v51 = vmax.f32 %v1301_v37, 0.0 }
 0x328   :  { %v1354_v26 = vmax.f32 %v1296_v46, 0.0 }
 0x329   :  { %1375 = vst.msk [vmem:[#allocation2 + $0x88] sm:$0xff] %vm30_vm0, %v1355_v51  ;;  %1637 = vrot.lane.b32.xlu0 %v1411_v49, %s5189_s1  ;;  %1457 = vrot.lane.b32.xlu1 %v1411_v49, %s5187_s28 }
 0x32a   :  { %1374 = vst.msk [vmem:[#allocation2 + $0x80] sm:$0xff] %vm30_vm0, %v1354_v26 }
 0x32d   :  { %1517 = vrot.lane.b32.xlu0 %v1411_v49, %s5186_s27 }
 0x330   :  { %v6188_v34 = vld [vmem:[#allocation2 + $0x88] sm:$0xff] }
 0x331   :  { %1523 = vrot.lane.b32.xlu1 %v6188_v34, %s5186_s27  ;;  %1583 = vrot.lane.b32.xlu0 %v6188_v34, %s5188_s11  ;;  %v6195_v54 = vld [vmem:[#allocation2 + $0x80] sm:$0xff] }
 0x334   :  { %v4852_v38 = vpop.f32.mrb[12].mxu1 }
 0x335   :  { %v1311_v52 = vadd.f32 %v4852_v38, %v6066_v40  ;;  %v1305_v29 = vpop.f32.mrb[13].mxu1  ;;  %1463 = vrot.lane.b32.xlu1 %v6188_v34, %s5187_s28  ;;  %1521 = vrot.lane.b32.xlu0 %v6195_v54, %s5186_s27 }
 0x336   :  { %v1306_v11 = vadd.f32 %v6066_v40, %v1305_v29 }
 0x337   :  { %v1357_v24 = vmax.f32 %v1311_v52, 0.0 }
 0x338   :  { %v1356_v56 = vmax.f32 %v1306_v11, 0.0 }
 0x339   :  { %1377 = vst.msk [vmem:[#allocation2 + $0x98] sm:$0xff] %vm30_vm0, %v1357_v24  ;;  %1461 = vrot.lane.b32.xlu1 %v6195_v54, %s5187_s28 }
 0x33a   :  { %1376 = vst.msk [vmem:[#allocation2 + $0x90] sm:$0xff] %vm30_vm0, %v1356_v56 }
 0x340   :  { %v6206_v45 = vld [vmem:[#allocation2 + $0x98] sm:$0xff] }
 0x341   :  { %1647 = vrot.lane.b32.xlu0 %v6206_v45, %s5189_s1  ;;  %1527 = vrot.lane.b32.xlu1 %v6206_v45, %s5186_s27  ;;  %v6220_v0 = vld [vmem:[#allocation2 + $0x90] sm:$0xff] }
 0x344   :  { %v4855_v57 = vpop.f32.mrb[14].mxu1 }
 0x345   :  { %1587 = vrot.lane.b32.xlu0 %v6206_v45, %s5188_s11  ;;  %1467 = vrot.lane.b32.xlu1 %v6206_v45, %s5187_s28  ;;  %v1321_v58 = vadd.f32 %v4855_v57, %v6066_v40  ;;  %v1315_v60 = vpop.f32.mrb[15].mxu1 }
 0x346   :  { %v1316_v62 = vadd.f32 %v6066_v40, %v1315_v60 }
 0x347   :  { %v1359_v63 = vmax.f32 %v1321_v58, 0.0 }
 0x348   :  { %v1358_v5 = vmax.f32 %v1316_v62, 0.0 }
 0x349   :  { %1645 = vrot.lane.b32.xlu0 %v6220_v0, %s5189_s1  ;;  %1585 = vrot.lane.b32.xlu1 %v6220_v0, %s5188_s11  ;;  %1379 = vst.msk [vmem:[#allocation2 + $0xa8] sm:$0xff] %vm30_vm0, %v1359_v63 }
 0x34a   :  { %1378 = vst.msk [vmem:[#allocation2 + $0xa0] sm:$0xff] %vm30_vm0, %v1358_v5 }
 0x34d   :  { %1525 = vrot.lane.b32.xlu0 %v6220_v0, %s5186_s27  ;;  %1465 = vrot.lane.b32.xlu1 %v6220_v0, %s5187_s28 }
 0x350   :  { %v6238_v20 = vld [vmem:[#allocation2 + $0xa8] sm:$0xff] }
 0x351   :  { %1651 = vrot.lane.b32.xlu0 %v6238_v20, %s5189_s1  ;;  %1531 = vrot.lane.b32.xlu1 %v6238_v20, %s5186_s27  ;;  %v6252_v47 = vld [vmem:[#allocation2 + $0xa0] sm:$0xff] }
 0x353   :  { %v1504_v43 = vpop.permute.xlu1 %1503  ;;  %v1564_v44 = vpop.permute.xlu0 %1563 }
 0x354   :  { %v4858_v8 = vpop.f32.mrb[16].mxu1 }
 0x355   :  { %v1331_v33 = vadd.f32 %v4858_v8, %v6066_v40  ;;  %v1325_v15 = vpop.f32.mrb[17].mxu1  ;;  %1591 = vrot.lane.b32.xlu0 %v6238_v20, %s5188_s11  ;;  %1471 = vrot.lane.b32.xlu1 %v6238_v20, %s5187_s28 }
 0x356   :  { %v1326_v16 = vadd.f32 %v6066_v40, %v1325_v15 }
 0x357   :  { %v1361_v31 = vmax.f32 %v1331_v33, 0.0  ;;  %v1444_v39 = vpop.permute.xlu1 %1443  ;;  %v1502_v4 = vpop.permute.xlu0 %1501 }
 0x358   :  { %v1360_v18 = vmax.f32 %v1326_v16, 0.0  ;;  %v1705_v51 = vsel %vm400_vm1, %v1685_v48, %v1502_v4  ;;  %v1687_v8 = vsel %vm30_vm0, %v6090_v25, %v1444_v39 }
 0x359   :  { %1381 = vst.msk [vmem:[#allocation2 + $0xb8] sm:$0xff] %vm30_vm0, %v1361_v31  ;;  %1649 = vrot.lane.b32.xlu0 %v6252_v47, %s5189_s1  ;;  %1589 = vrot.lane.b32.xlu1 %v6252_v47, %s5188_s11  ;;  %v1725_v52 = vsel %vm421_vm2, %v1705_v51, %v1564_v44 }
 0x35a   :  { %1380 = vst.msk [vmem:[#allocation2 + $0xb0] sm:$0xff] %vm30_vm0, %v1360_v18 }
 0x35b   :  { %v1442_v23 = vpop.permute.xlu1 %1441 }
 0x35c   :  { %v4861_v19 = vpop.f32.mrb[18].mxu1  ;;  %v1686_v26 = vsel %vm30_vm0, %v5992_v28, %v1442_v23 }
 0x35d   :  { %v1341_v22 = vadd.f32 %v4861_v19, %v6066_v40  ;;  %v1335_v7 = vpop.f32.mrb[19].mxu1  ;;  %1529 = vrot.lane.b32.xlu0 %v6252_v47, %s5186_s27  ;;  %1469 = vrot.lane.b32.xlu1 %v6252_v47, %s5187_s28  ;;  %v1706_v11 = vsel %vm400_vm1, %v1686_v26, %v1504_v43 }
 0x35e   :  { %v1336_v3 = vadd.f32 %v6066_v40, %v1335_v7  ;;  %v6315_v7 = vld [vmem:[#allocation2 + $0xd8] sm:$0xff] }
 0x35f   :  { %v1363_v10 = vmax.f32 %v1341_v22, 0.0 }
 0x360   :  { %v1362_v36 = vmax.f32 %v1336_v3, 0.0  ;;  %v6266_v12 = vld [vmem:[#allocation2 + $0xb8] sm:$0xff] }
 0x361   :  { %1383 = vst.msk [vmem:[#allocation2 + $0xc8] sm:$0xff] %vm30_vm0, %v1363_v10  ;;  %1655 = vrot.lane.b32.xlu0 %v6266_v12, %s5189_s1  ;;  %1535 = vrot.lane.b32.xlu1 %v6266_v12, %s5186_s27  ;;  %v6285_v38 = vld [vmem:[#allocation2 + $0xb0] sm:$0xff] }
 0x362   :  { %1382 = vst.msk [vmem:[#allocation2 + $0xc0] sm:$0xff] %vm30_vm0, %v1362_v36 }
 0x363   :  { %v1508_v37 = vpop.permute.xlu1 %1507  ;;  %v1628_v40 = vpop.permute.xlu0 %1627 }
 0x365   :  { %1595 = vrot.lane.b32.xlu0 %v6266_v12, %s5188_s11  ;;  %1475 = vrot.lane.b32.xlu1 %v6266_v12, %s5187_s28 }
 0x367   :  { %v1448_v49 = vpop.permute.xlu1 %1447  ;;  %v1568_v46 = vpop.permute.xlu0 %1567 }
 0x368   :  { %v1414_v63 = vld [vmem:[#allocation2 + $0xc8] sm:$0xff]  ;;  %v1689_v36 = vsel %vm30_vm0, %v6117_v17, %v1448_v49 }
 0x369   :  { %1653 = vrot.lane.b32.xlu0 %v6285_v38, %s5189_s1  ;;  %1593 = vrot.lane.b32.xlu1 %v6285_v38, %s5188_s11  ;;  %v1412_v43 = vld [vmem:[#allocation2 + $0xc0] sm:$0xff] }
 0x36b   :  { %v1626_v29 = vpop.permute.xlu0 %1625  ;;  %v1566_v24 = vpop.permute.xlu1 %1565 }
 0x36c   :  { %v1745_v56 = vsel %vm442_vm3, %v1725_v52, %v1626_v29  ;;  %v1726_v57 = vsel %vm421_vm2, %v1706_v11, %v1566_v24 }
 0x36d   :  { %v1746_v58 = vsel %vm442_vm3, %v1726_v57, %v1628_v40  ;;  %1533 = vrot.lane.b32.xlu0 %v6285_v38, %s5186_s27  ;;  %4872 = vmatprep.mubr.msk.f32.mxu0 %vm469_vm4, %v1745_v56 }
 0x36e   :  { %1473 = vrot.lane.b32.xlu1 %v6285_v38, %s5187_s28  ;;  %4873 = vmatmul.mubr.msk.f32.vlgmr.msra.gmra.mrb[20].mxu0 %vm469_vm4, %v1746_v58 }
 0x36f   :  { %v1506_v60 = vpop.permute.xlu0 %1505  ;;  %v1446_v62 = vpop.permute.xlu1 %1445 }
 0x370   :  { %v1707_v16 = vsel %vm400_vm1, %v1687_v8, %v1506_v60  ;;  %v1688_v31 = vsel %vm30_vm0, %v6078_v61, %v1446_v62 }
 0x371   :  { %1659 = vrot.lane.b32.xlu0 %v1414_v63, %s5189_s1  ;;  %v1727_v18 = vsel %vm421_vm2, %v1707_v16, %v1568_v46  ;;  %v1708_v19 = vsel %vm400_vm1, %v1688_v31, %v1508_v37 }
 0x372   :  { %1539 = vrot.lane.b32.xlu1 %v1414_v63, %s5186_s27 }
 0x373   :  { %v1632_v59 = vpop.permute.xlu0 %1631  ;;  %v1512_v5 = vpop.permute.xlu1 %1511 }
 0x375   :  { %1599 = vrot.lane.b32.xlu0 %v1414_v63, %s5188_s11 }
 0x376   :  { %1597 = vrot.lane.b32.xlu1 %v1412_v43, %s5188_s11 }
 0x377   :  { %v1572_v33 = vpop.permute.xlu0 %1571  ;;  %v1452_v15 = vpop.permute.xlu1 %1451 }
 0x378   :  { %v1691_v56 = vsel %vm30_vm0, %v6141_v35, %v1452_v15 }
 0x379   :  { %1657 = vrot.lane.b32.xlu0 %v1412_v43, %s5189_s1 }
 0x37a   :  { %1477 = vrot.lane.b32.xlu1 %v1412_v43, %s5187_s28 }
 0x37b   :  { %v1630_v44 = vpop.permute.xlu0 %1629  ;;  %v1570_v22 = vpop.permute.xlu1 %1569 }
 0x37c   :  { %v1747_v25 = vsel %vm442_vm3, %v1727_v18, %v1630_v44  ;;  %v1728_v39 = vsel %vm421_vm2, %v1708_v19, %v1570_v22 }
 0x37d   :  { %1537 = vrot.lane.b32.xlu0 %v1412_v43, %s5186_s27  ;;  %4875 = vmatprep.mubr.msk.f32.mxu0 %vm469_vm4, %v1747_v25  ;;  %v1748_v61 = vsel %vm442_vm3, %v1728_v39, %v1632_v59 }
 0x37e   :  { %1663 = vrot.lane.b32.xlu1 %v6315_v7, %s5189_s1  ;;  %4876 = vmatmul.mubr.msk.f32.gmra.mrb[22].mxu0 %vm469_vm4, %v1748_v61 }
 0x37f   :  { %v1510_v3 = vpop.permute.xlu0 %1509  ;;  %v1450_v4 = vpop.permute.xlu1 %1449 }
 0x380   :  { %v1709_v48 = vsel %vm400_vm1, %v1689_v36, %v1510_v3  ;;  %v1690_v46 = vsel %vm30_vm0, %v6105_v30, %v1450_v4 }
 0x381   :  { %1661 = vrot.lane.b32.xlu0 %v6013_v53, %s5189_s1  ;;  %v1729_v51 = vsel %vm421_vm2, %v1709_v48, %v1572_v33  ;;  %v1710_v26 = vsel %vm400_vm1, %v1690_v46, %v1512_v5 }
 0x382   :  { %2231 = vrot.lane.b32.xlu1 %v5994_v55, %s5188_s11 }
 0x383   :  { %v1636_v23 = vpop.permute.xlu0 %1635  ;;  %v1516_v10 = vpop.permute.xlu1 %1515 }
 0x385   :  { %2089 = vrot.lane.b32.xlu0 %v5992_v28, %s5187_s28 }
 0x386   :  { %2109 = vrot.lane.b32.xlu1 %v6002_v32, %s5187_s28 }
 0x387   :  { %v1576_v37 = vpop.permute.xlu0 %1575  ;;  %v1456_v40 = vpop.permute.xlu1 %1455 }
 0x388   :  { %v1693_v33 = vsel %vm30_vm0, %v6167_v13, %v1456_v40 }
 0x389   :  { %2291 = vrot.lane.b32.xlu0 %v5994_v55, %s5189_s1 }
 0x38a   :  { %2251 = vrot.lane.b32.xlu1 %v6013_v53, %s5188_s11 }
 0x38b   :  { %v1634_v28 = vpop.permute.xlu0 %1633  ;;  %v1574_v52 = vpop.permute.xlu1 %1573 }
 0x38c   :  { %v1749_v17 = vsel %vm442_vm3, %v1729_v51, %v1634_v28  ;;  %v1730_v49 = vsel %vm421_vm2, %v1710_v26, %v1574_v52 }
 0x38d   :  { %4878 = vmatprep.mubr.msk.f32.mxu0 %vm469_vm4, %v1749_v17  ;;  %v1750_v30 = vsel %vm442_vm3, %v1730_v49, %v1636_v23  ;;  %2293 = vrot.lane.b32.xlu0 %v6011_v14, %s5189_s1 }
 0x38e   :  { %4879 = vmatmul.mubr.msk.f32.gmra.mrb[24].mxu0 %vm469_vm4, %v1750_v30 }
 0x38f   :  { %v1514_v55 = vpop.permute.xlu0 %1513  ;;  %v1454_v53 = vpop.permute.xlu1 %1453 }
 0x390   :  { %v1692_v24 = vsel %vm30_vm0, %v6129_v9, %v1454_v53  ;;  %v1711_v60 = vsel %vm400_vm1, %v1691_v56, %v1514_v55 }
 0x391   :  { %v1712_v62 = vsel %vm400_vm1, %v1692_v24, %v1516_v10  ;;  %v1731_v59 = vsel %vm421_vm2, %v1711_v60, %v1576_v37 }
 0x393   :  { %v1640_v29 = vpop.permute.xlu0 %1639  ;;  %v1520_v11 = vpop.permute.xlu1 %1519 }
 0x397   :  { %v1580_v57 = vpop.permute.xlu0 %1579  ;;  %v1578_v58 = vpop.permute.xlu1 %1577 }
 0x398   :  { %v1732_v14 = vsel %vm421_vm2, %v1712_v62, %v1578_v58 }
 0x399   :  { %v1752_v35 = vsel %vm442_vm3, %v1732_v14, %v1640_v29 }
 0x39b   :  { %v1638_v63 = vpop.permute.xlu0 %1637  ;;  %v1458_v5 = vpop.permute.xlu1 %1457 }
 0x39c   :  { %v1751_v43 = vsel %vm442_vm3, %v1731_v59, %v1638_v63  ;;  %v1694_v9 = vsel %vm30_vm0, %v6157_v27, %v1458_v5 }
 0x39d   :  { %v1714_v8 = vsel %vm400_vm1, %v1694_v9, %v1520_v11  ;;  %4881 = vmatprep.mubr.msk.f32.mxu0 %vm469_vm4, %v1751_v43 }
 0x39e   :  { %4882 = vmatmul.mubr.msk.f32.gmra.mrb[26].mxu0 %vm469_vm4, %v1752_v35  ;;  %v1734_v31 = vsel %vm421_vm2, %v1714_v8, %v6212_v50  ;;  %v6378_v50 = vld [vmem:[#allocation2 + $0x70] sm:$0xff] }
 0x39f   :  { %v1518_v15 = vpop.permute.xlu0 %1517  ;;  %v1754_v19 = vsel %vm442_vm3, %v1734_v31, %v6244_v41  ;;  %v1695_v4 = vsel %vm30_vm0, %v6378_v50, %v6222_v1 }
 0x3a0   :  { %v1713_v16 = vsel %vm400_vm1, %v1693_v33, %v1518_v15 }
 0x3a1   :  { %v1733_v18 = vsel %vm421_vm2, %v1713_v16, %v1580_v57 }
 0x3a2   :  { %v1753_v44 = vsel %vm442_vm3, %v1733_v18, %v6234_v42 }
 0x3a3   :  { %v1524_v27 = vpop.permute.xlu1 %1523  ;;  %4884 = vmatprep.mubr.msk.f32.mxu0 %vm469_vm4, %v1753_v44  ;;  %v1584_v13 = vpop.permute.xlu0 %1583 }
 0x3a4   :  { %4885 = vmatmul.mubr.msk.f32.gmra.mrb[28].mxu0 %vm469_vm4, %v1754_v19 }
 0x3a7   :  { %v1464_v22 = vpop.permute.xlu1 %1463  ;;  %v1522_v25 = vpop.permute.xlu0 %1521 }
 0x3a8   :  { %v1715_v10 = vsel %vm400_vm1, %v1695_v4, %v1522_v25  ;;  %v1697_v17 = vsel %vm30_vm0, %v6195_v54, %v1464_v22 }
 0x3a9   :  { %v1735_v36 = vsel %vm421_vm2, %v1715_v10, %v1584_v13 }
 0x3ab   :  { %v1462_v39 = vpop.permute.xlu1 %1461 }
 0x3ac   :  { %v1696_v41 = vsel %vm30_vm0, %v6002_v32, %v1462_v39 }
 0x3ad   :  { %v1716_v40 = vsel %vm400_vm1, %v1696_v41, %v1524_v27 }
 0x3b3   :  { %v1648_v61 = vpop.permute.xlu0 %1647  ;;  %v1528_v3 = vpop.permute.xlu1 %1527 }
 0x3b7   :  { %v1588_v42 = vpop.permute.xlu0 %1587  ;;  %v1468_v23 = vpop.permute.xlu1 %1467 }
 0x3b8   :  { %v1699_v63 = vsel %vm30_vm0, %v6220_v0, %v1468_v23 }
 0x3bb   :  { %v1646_v37 = vpop.permute.xlu0 %1645  ;;  %v1586_v48 = vpop.permute.xlu1 %1585 }
 0x3bc   :  { %v1755_v46 = vsel %vm442_vm3, %v1735_v36, %v1646_v37  ;;  %v1736_v28 = vsel %vm421_vm2, %v1716_v40, %v1586_v48 }
 0x3bd   :  { %4887 = vmatprep.mubr.msk.f32.mxu0 %vm469_vm4, %v1755_v46  ;;  %v1756_v1 = vsel %vm442_vm3, %v1736_v28, %v1648_v61 }
 0x3be   :  { %4888 = vmatmul.mubr.msk.f32.gmra.mrb[30].mxu0 %vm469_vm4, %v1756_v1 }
 0x3bf   :  { %v1526_v51 = vpop.permute.xlu0 %1525  ;;  %v1466_v26 = vpop.permute.xlu1 %1465 }
 0x3c0   :  { %v1717_v55 = vsel %vm400_vm1, %v1697_v17, %v1526_v51  ;;  %v1698_v53 = vsel %vm30_vm0, %v6188_v34, %v1466_v26 }
 0x3c1   :  { %v1737_v11 = vsel %vm421_vm2, %v1717_v55, %v1588_v42  ;;  %v1718_v24 = vsel %vm400_vm1, %v1698_v53, %v1528_v3  ;;  %v4570_v55 = vld [vmem:[%s7188_s3 + $0x50] sm:$0xff]  ;;  %v4571_v53 = vld [vmem:[%s7188_s3 + $0x58] sm:$0xff] }
 0x3c3   :  { %v1652_v52 = vpop.permute.xlu0 %1651  ;;  %v1532_v32 = vpop.permute.xlu1 %1531 }
 0x3c7   :  { %v1592_v49 = vpop.permute.xlu0 %1591  ;;  %v1472_v30 = vpop.permute.xlu1 %1471 }
 0x3c8   :  { %v1701_v13 = vsel %vm30_vm0, %v6252_v47, %v1472_v30 }
 0x3cb   :  { %v1650_v29 = vpop.permute.xlu0 %1649  ;;  %v1590_v56 = vpop.permute.xlu1 %1589 }
 0x3cc   :  { %v1757_v57 = vsel %vm442_vm3, %v1737_v11, %v1650_v29  ;;  %v1738_v58 = vsel %vm421_vm2, %v1718_v24, %v1590_v56  ;;  %v5083_v29 = vpack.c.bf16 %v4571_v53, %v4570_v55 }
 0x3cd   :  { %4890 = vmatprep.mubr.msk.f32.mxu0 %vm469_vm4, %v1757_v57  ;;  %v1758_v54 = vsel %vm442_vm3, %v1738_v58, %v1652_v52 }
 0x3ce   :  { %4891 = vmatmul.mubr.msk.f32.gmra.mrb[32].mxu0 %vm469_vm4, %v1758_v54  ;;  %5084 = vmatprep.subr.bf16.mxu1 %v5083_v29  ;;  %v4572_v54 = vld [vmem:[%s7188_s3 + $0x60] sm:$0xff] }
 0x3cf   :  { %v1530_v60 = vpop.permute.xlu0 %1529  ;;  %v1470_v62 = vpop.permute.xlu1 %1469  ;;  %5086 = vmatpush3.bf16.msra.mxu1 %v5083_v29 }
 0x3d0   :  { %v1719_v43 = vsel %vm400_vm1, %v1699_v63, %v1530_v60  ;;  %v1700_v9 = vsel %vm30_vm0, %v6206_v45, %v1470_v62  ;;  %v4573_v60 = vld [vmem:[%s7188_s3 + $0x68] sm:$0xff]  ;;  %v4574_v63 = vld [vmem:[%s7188_s3 + $0x70] sm:$0xff] }
 0x3d1   :  { %v1739_v35 = vsel %vm421_vm2, %v1719_v43, %v1592_v49  ;;  %v1720_v33 = vsel %vm400_vm1, %v1700_v9, %v1532_v32 }
 0x3d3   :  { %v1656_v14 = vpop.permute.xlu0 %1655  ;;  %v1536_v34 = vpop.permute.xlu1 %1535 }
 0x3d7   :  { %v1596_v59 = vpop.permute.xlu0 %1595  ;;  %v1476_v5 = vpop.permute.xlu1 %1475 }
 0x3d8   :  { %v1703_v41 = vsel %vm30_vm0, %v6285_v38, %v1476_v5  ;;  %v6445_v38 = vld [vmem:[%s7189_s4 + $0x1] ss:$0 sm:$0xff] }
 0x3db   :  { %v1654_v8 = vpop.permute.xlu0 %1653  ;;  %v1594_v15 = vpop.permute.xlu1 %1593 }
 0x3dc   :  { %v1759_v16 = vsel %vm442_vm3, %v1739_v35, %v1654_v8  ;;  %v1740_v31 = vsel %vm421_vm2, %v1720_v33, %v1594_v15 }
 0x3dd   :  { %4893 = vmatprep.mubr.msk.f32.mxu0 %vm469_vm4, %v1759_v16  ;;  %v1760_v0 = vsel %vm442_vm3, %v1740_v31, %v1656_v14  ;;  %v5087_v14 = vpack.c.bf16 %v4573_v60, %v4572_v54 }
 0x3de   :  { %4894 = vmatmul.mubr.msk.f32.gmra.mrb[34].mxu0 %vm469_vm4, %v1760_v0 }
 0x3df   :  { %v1534_v18 = vpop.permute.xlu0 %1533  ;;  %5088 = vmatprep.subr.bf16.mxu1 %v5087_v14 }
 0x3e0   :  { %v1474_v27 = vpop.permute.xlu1 %1473  ;;  %v1721_v25 = vsel %vm400_vm1, %v1701_v13, %v1534_v18  ;;  %5090 = vmatpush3.bf16.msra.mxu1 %v5087_v14 }
 0x3e1   :  { %v1702_v19 = vsel %vm30_vm0, %v6238_v20, %v1474_v27  ;;  %v1741_v42 = vsel %vm421_vm2, %v1721_v25, %v1596_v59  ;;  %4910 = vmatprep.subr.mxu1 %v4574_v63 }
 0x3e2   :  { %v1722_v61 = vsel %vm400_vm1, %v1702_v19, %v1536_v34 }
 0x3e3   :  { %v1660_v44 = vpop.permute.xlu0 %1659 }
 0x3e4   :  { %v1540_v45 = vpop.permute.xlu1 %1539  ;;  %4911 = vmatpush3.msra.mxu1 %v4574_v63 }
 0x3e7   :  { %v1600_v22 = vpop.permute.xlu0 %1599 }
 0x3e8   :  { %v1598_v39 = vpop.permute.xlu1 %1597 }
 0x3e9   :  { %v1742_v3 = vsel %vm421_vm2, %v1722_v61, %v1598_v39 }
 0x3ea   :  { %v1762_v47 = vsel %vm442_vm3, %v1742_v3, %v1660_v44 }
 0x3eb   :  { %v1658_v4 = vpop.permute.xlu0 %1657 }
 0x3ec   :  { %v1761_v23 = vsel %vm442_vm3, %v1741_v42, %v1658_v4  ;;  %v1478_v10 = vpop.permute.xlu1 %1477 }
 0x3ed   :  { %v1704_v20 = vsel %vm30_vm0, %v6266_v12, %v1478_v10  ;;  %4896 = vmatprep.mubr.msk.f32.mxu0 %vm469_vm4, %v1761_v23 }
 0x3ee   :  { %4897 = vmatmul.mubr.msk.f32.gmra.mrb[36].mxu0 %vm469_vm4, %v1762_v47  ;;  %v1724_v36 = vsel %vm400_vm1, %v1704_v20, %v1540_v45 }
 0x3ef   :  { %v1538_v37 = vpop.permute.xlu0 %1537  ;;  %v1744_v48 = vsel %vm421_vm2, %v1724_v36, %v6236_v6 }
 0x3f0   :  { %v1723_v40 = vsel %vm400_vm1, %v1703_v41, %v1538_v37  ;;  %v1664_v46 = vpop.permute.xlu1 %1663 }
 0x3f1   :  { %v1743_v12 = vsel %vm421_vm2, %v1723_v40, %v1600_v22  ;;  %v1764_v51 = vsel %vm442_vm3, %v1744_v48, %v1664_v46 }
 0x3f3   :  { %v1662_v28 = vpop.permute.xlu0 %1661 }
 0x3f4   :  { %v1763_v1 = vsel %vm442_vm3, %v1743_v12, %v1662_v28 }
 0x3f5   :  { %4899 = vmatprep.mubr.msk.f32.mxu0 %vm469_vm4, %v1763_v1 }
 0x3f6   :  { %4900 = vmatmul.mubr.msk.f32.gmra.mrb[38].mxu0 %vm469_vm4, %v1764_v51 }
 0x441   :  { %v4874_v26 = vpop.f32.mrb[20].mxu0 }
 0x442   :  { %v1901_v6 = vadd.f32 %v4874_v26, %v6445_v38  ;;  %v1895_v52 = vpop.f32.mrb[21].mxu0 }
 0x443   :  { %v1896_v32 = vadd.f32 %v6445_v38, %v1895_v52 }
 0x444   :  { %v1995_v17 = vmax.f32 %v1901_v6, 0.0 }
 0x445   :  { %v1994_v49 = vmax.f32 %v1896_v32, 0.0  ;;  %v6591_v32 = vpop.permute.xlu1 %2231 }
 0x446   :  { %2015 = vst.msk [vmem:[#allocation2 + $0x18] sm:$0xff] %vm30_vm0, %v1995_v17 }
 0x447   :  { %2014 = vst.msk [vmem:[#allocation2 + $0x10] sm:$0xff] %vm30_vm0, %v1994_v49 }
 0x44d   :  { %v6451_v30 = vld [vmem:[#allocation2 + $0x18] sm:$0xff] }
 0x44e   :  { %2213 = vrot.lane.b32.xlu0 %v6451_v30, %s5188_s11  ;;  %2153 = vrot.lane.b32.xlu1 %v6451_v30, %s5186_s27  ;;  %v6463_v24 = vld [vmem:[#allocation2 + $0x10] sm:$0xff] }
 0x451   :  { %v4877_v11 = vpop.f32.mrb[22].mxu0 }
 0x452   :  { %v1911_v56 = vadd.f32 %v4877_v11, %v6445_v38  ;;  %2093 = vrot.lane.b32.xlu1 %v6451_v30, %s5187_s28  ;;  %2151 = vrot.lane.b32.xlu0 %v6463_v24, %s5186_s27  ;;  %v1905_v57 = vpop.f32.mrb[23].mxu0  ;;  %v2090_v11 = vpop.permute.xlu0 %2089 }
 0x453   :  { %v1906_v58 = vadd.f32 %v6445_v38, %v1905_v57 }
 0x454   :  { %v1997_v62 = vmax.f32 %v1911_v56, 0.0  ;;  %v6599_v56 = vpop.permute.xlu1 %2109 }
 0x455   :  { %v1996_v34 = vmax.f32 %v1906_v58, 0.0 }
 0x456   :  { %2017 = vst.msk [vmem:[#allocation2 + $0x28] sm:$0xff] %vm30_vm0, %v1997_v62  ;;  %2091 = vrot.lane.b32.xlu1 %v6463_v24, %s5187_s28  ;;  %v6609_v54 = vpop.permute.xlu0 %2291 }
 0x457   :  { %2016 = vst.msk [vmem:[#allocation2 + $0x20] sm:$0xff] %vm30_vm0, %v1996_v34 }
 0x458   :  { %v6615_v60 = vpop.permute.xlu1 %2251 }
 0x45a   :  { %v6623_v14 = vpop.permute.xlu0 %2293 }
 0x45d   :  { %v6484_v59 = vld [vmem:[#allocation2 + $0x28] sm:$0xff] }
 0x45e   :  { %2157 = vrot.lane.b32.xlu1 %v6484_v59, %s5186_s27  ;;  %2277 = vrot.lane.b32.xlu0 %v6484_v59, %s5189_s1  ;;  %v6496_v15 = vld [vmem:[#allocation2 + $0x20] sm:$0xff] }
 0x461   :  { %v4880_v5 = vpop.f32.mrb[24].mxu0 }
 0x462   :  { %v1921_v43 = vadd.f32 %v4880_v5, %v6445_v38  ;;  %2097 = vrot.lane.b32.xlu1 %v6484_v59, %s5187_s28  ;;  %2217 = vrot.lane.b32.xlu0 %v6484_v59, %s5188_s11  ;;  %v1915_v9 = vpop.f32.mrb[25].mxu0 }
 0x463   :  { %v1916_v8 = vadd.f32 %v6445_v38, %v1915_v9 }
 0x464   :  { %v1999_v35 = vmax.f32 %v1921_v43, 0.0 }
 0x465   :  { %v1998_v33 = vmax.f32 %v1916_v8, 0.0 }
 0x466   :  { %2019 = vst.msk [vmem:[#allocation2 + $0x38] sm:$0xff] %vm30_vm0, %v1999_v35  ;;  %2275 = vrot.lane.b32.xlu0 %v6496_v15, %s5189_s1  ;;  %2215 = vrot.lane.b32.xlu1 %v6496_v15, %s5188_s11 }
 0x467   :  { %2018 = vst.msk [vmem:[#allocation2 + $0x30] sm:$0xff] %vm30_vm0, %v1998_v33 }
 0x46a   :  { %2155 = vrot.lane.b32.xlu0 %v6496_v15, %s5186_s27  ;;  %2095 = vrot.lane.b32.xlu1 %v6496_v15, %s5187_s28 }
 0x46d   :  { %v6508_v16 = vld [vmem:[#allocation2 + $0x38] sm:$0xff] }
 0x46e   :  { %2161 = vrot.lane.b32.xlu1 %v6508_v16, %s5186_s27  ;;  %2281 = vrot.lane.b32.xlu0 %v6508_v16, %s5189_s1  ;;  %v6520_v19 = vld [vmem:[#allocation2 + $0x30] sm:$0xff] }
 0x471   :  { %v4883_v31 = vpop.f32.mrb[26].mxu0 }
 0x472   :  { %v1931_v0 = vadd.f32 %v4883_v31, %v6445_v38  ;;  %2101 = vrot.lane.b32.xlu1 %v6508_v16, %s5187_s28  ;;  %2221 = vrot.lane.b32.xlu0 %v6508_v16, %s5188_s11  ;;  %v1925_v18 = vpop.f32.mrb[27].mxu0 }
 0x473   :  { %v1926_v27 = vadd.f32 %v6445_v38, %v1925_v18 }
 0x474   :  { %v2001_v44 = vmax.f32 %v1931_v0, 0.0 }
 0x475   :  { %v2000_v45 = vmax.f32 %v1926_v27, 0.0 }
 0x476   :  { %2021 = vst.msk [vmem:[#allocation2 + $0x48] sm:$0xff] %vm30_vm0, %v2001_v44  ;;  %2279 = vrot.lane.b32.xlu0 %v6520_v19, %s5189_s1  ;;  %2219 = vrot.lane.b32.xlu1 %v6520_v19, %s5188_s11 }
 0x477   :  { %2020 = vst.msk [vmem:[#allocation2 + $0x40] sm:$0xff] %vm30_vm0, %v2000_v45  ;;  %v4886_v13 = vpop.f32.mrb[28].mxu0 }
 0x478   :  { %v1941_v22 = vadd.f32 %v4886_v13, %v6445_v38  ;;  %v1935_v25 = vpop.f32.mrb[29].mxu0 }
 0x479   :  { %v1936_v39 = vadd.f32 %v6445_v38, %v1935_v25 }
 0x47a   :  { %v2003_v61 = vmax.f32 %v1941_v22, 0.0  ;;  %2159 = vrot.lane.b32.xlu0 %v6520_v19, %s5186_s27  ;;  %2099 = vrot.lane.b32.xlu1 %v6520_v19, %s5187_s28 }
 0x47b   :  { %v2002_v3 = vmax.f32 %v1936_v39, 0.0 }
 0x47c   :  { %2023 = vst.msk [vmem:[#allocation2 + $0x58] sm:$0xff] %vm30_vm0, %v2003_v61 }
 0x47d   :  { %2022 = vst.msk [vmem:[#allocation2 + $0x50] sm:$0xff] %vm30_vm0, %v2002_v3  ;;  %v6536_v4 = vld [vmem:[#allocation2 + $0x48] sm:$0xff] }
 0x47e   :  { %2285 = vrot.lane.b32.xlu0 %v6536_v4, %s5189_s1  ;;  %2165 = vrot.lane.b32.xlu1 %v6536_v4, %s5186_s27  ;;  %v6546_v42 = vld [vmem:[#allocation2 + $0x40] sm:$0xff] }
 0x482   :  { %2225 = vrot.lane.b32.xlu0 %v6536_v4, %s5188_s11  ;;  %2105 = vrot.lane.b32.xlu1 %v6536_v4, %s5187_s28 }
 0x483   :  { %v2063_v23 = vld [vmem:[#allocation2 + $0x58] sm:$0xff] }
 0x484   :  { %v2061_v41 = vld [vmem:[#allocation2 + $0x50] sm:$0xff] }
 0x486   :  { %2283 = vrot.lane.b32.xlu0 %v6546_v42, %s5189_s1  ;;  %2223 = vrot.lane.b32.xlu1 %v6546_v42, %s5188_s11 }
 0x48a   :  { %2163 = vrot.lane.b32.xlu0 %v6546_v42, %s5186_s27  ;;  %2103 = vrot.lane.b32.xlu1 %v6546_v42, %s5187_s28 }
 0x48e   :  { %2289 = vrot.lane.b32.xlu0 %v2063_v23, %s5189_s1  ;;  %2169 = vrot.lane.b32.xlu1 %v2063_v23, %s5186_s27 }
 0x491   :  { %v4889_v10 = vpop.f32.mrb[30].mxu0 }
 0x492   :  { %v1951_v20 = vadd.f32 %v4889_v10, %v6445_v38  ;;  %v1945_v47 = vpop.f32.mrb[31].mxu0  ;;  %2229 = vrot.lane.b32.xlu0 %v2063_v23, %s5188_s11  ;;  %2227 = vrot.lane.b32.xlu1 %v2061_v41, %s5188_s11 }
 0x493   :  { %v1946_v36 = vadd.f32 %v6445_v38, %v1945_v47 }
 0x494   :  { %v2005_v37 = vmax.f32 %v1951_v20, 0.0 }
 0x495   :  { %v2004_v40 = vmax.f32 %v1946_v36, 0.0 }
 0x496   :  { %2025 = vst.msk [vmem:[#allocation2 + $0x88] sm:$0xff] %vm30_vm0, %v2005_v37  ;;  %2287 = vrot.lane.b32.xlu0 %v2061_v41, %s5189_s1  ;;  %2107 = vrot.lane.b32.xlu1 %v2061_v41, %s5187_s28 }
 0x497   :  { %2024 = vst.msk [vmem:[#allocation2 + $0x80] sm:$0xff] %vm30_vm0, %v2004_v40 }
 0x49a   :  { %2167 = vrot.lane.b32.xlu0 %v2061_v41, %s5186_s27  ;;  %v5158_v41 = vld [vmem:[#allocation2 + $0x8] sm:$0xff] }
 0x49d   :  { %v6567_v48 = vld [vmem:[#allocation2 + $0x88] sm:$0xff] }
 0x49e   :  { %2173 = vrot.lane.b32.xlu1 %v6567_v48, %s5186_s27  ;;  %2233 = vrot.lane.b32.xlu0 %v6567_v48, %s5188_s11  ;;  %v6573_v28 = vld [vmem:[#allocation2 + $0x80] sm:$0xff] }
 0x4a1   :  { %v4892_v46 = vpop.f32.mrb[32].mxu0 }
 0x4a2   :  { %2113 = vrot.lane.b32.xlu1 %v6567_v48, %s5187_s28  ;;  %v1961_v12 = vadd.f32 %v4892_v46, %v6445_v38  ;;  %v1955_v1 = vpop.f32.mrb[33].mxu0  ;;  %2171 = vrot.lane.b32.xlu0 %v6573_v28, %s5186_s27 }
 0x4a3   :  { %v1956_v51 = vadd.f32 %v6445_v38, %v1955_v1 }
 0x4a4   :  { %v2007_v26 = vmax.f32 %v1961_v12, 0.0 }
 0x4a5   :  { %v2006_v6 = vmax.f32 %v1956_v51, 0.0 }
 0x4a6   :  { %2111 = vrot.lane.b32.xlu1 %v6573_v28, %s5187_s28  ;;  %2027 = vst.msk [vmem:[#allocation2 + $0x98] sm:$0xff] %vm30_vm0, %v2007_v26 }
 0x4a7   :  { %2026 = vst.msk [vmem:[#allocation2 + $0x90] sm:$0xff] %vm30_vm0, %v2006_v6 }
 0x4ad   :  { %v6585_v52 = vld [vmem:[#allocation2 + $0x98] sm:$0xff] }
 0x4ae   :  { %2297 = vrot.lane.b32.xlu0 %v6585_v52, %s5189_s1  ;;  %2177 = vrot.lane.b32.xlu1 %v6585_v52, %s5186_s27  ;;  %v6601_v58 = vld [vmem:[#allocation2 + $0x90] sm:$0xff] }
 0x4b1   :  { %v4895_v17 = vpop.f32.mrb[34].mxu0 }
 0x4b2   :  { %v1971_v49 = vadd.f32 %v4895_v17, %v6445_v38  ;;  %v1965_v55 = vpop.f32.mrb[35].mxu0  ;;  %2237 = vrot.lane.b32.xlu0 %v6585_v52, %s5188_s11  ;;  %2117 = vrot.lane.b32.xlu1 %v6585_v52, %s5187_s28 }
 0x4b3   :  { %v1966_v53 = vadd.f32 %v6445_v38, %v1965_v55 }
 0x4b4   :  { %v2009_v29 = vmax.f32 %v1971_v49, 0.0 }
 0x4b5   :  { %v2008_v57 = vmax.f32 %v1966_v53, 0.0 }
 0x4b6   :  { %2029 = vst.msk [vmem:[#allocation2 + $0xa8] sm:$0xff] %vm30_vm0, %v2009_v29  ;;  %2295 = vrot.lane.b32.xlu0 %v6601_v58, %s5189_s1  ;;  %2235 = vrot.lane.b32.xlu1 %v6601_v58, %s5188_s11 }
 0x4b7   :  { %2028 = vst.msk [vmem:[#allocation2 + $0xa0] sm:$0xff] %vm30_vm0, %v2008_v57 }
 0x4ba   :  { %2175 = vrot.lane.b32.xlu0 %v6601_v58, %s5186_s27  ;;  %2115 = vrot.lane.b32.xlu1 %v6601_v58, %s5187_s28 }
 0x4bd   :  { %v6617_v62 = vld [vmem:[#allocation2 + $0xa8] sm:$0xff] }
 0x4be   :  { %2301 = vrot.lane.b32.xlu0 %v6617_v62, %s5189_s1  ;;  %2181 = vrot.lane.b32.xlu1 %v6617_v62, %s5186_s27  ;;  %v6631_v33 = vld [vmem:[#allocation2 + $0xa0] sm:$0xff] }
 0x4c0   :  { %v2154_v34 = vpop.permute.xlu1 %2153  ;;  %v2214_v31 = vpop.permute.xlu0 %2213 }
 0x4c1   :  { %v4898_v63 = vpop.f32.mrb[36].mxu0 }
 0x4c2   :  { %v1981_v5 = vadd.f32 %v4898_v63, %v6445_v38  ;;  %v1975_v43 = vpop.f32.mrb[37].mxu0  ;;  %2241 = vrot.lane.b32.xlu0 %v6617_v62, %s5188_s11  ;;  %2121 = vrot.lane.b32.xlu1 %v6617_v62, %s5187_s28 }
 0x4c3   :  { %v1976_v9 = vadd.f32 %v6445_v38, %v1975_v43 }
 0x4c4   :  { %v2011_v8 = vmax.f32 %v1981_v5, 0.0  ;;  %v2094_v0 = vpop.permute.xlu1 %2093  ;;  %v2152_v13 = vpop.permute.xlu0 %2151 }
 0x4c5   :  { %v2010_v35 = vmax.f32 %v1976_v9, 0.0 }
 0x4c6   :  { %2031 = vst.msk [vmem:[#allocation2 + $0xb8] sm:$0xff] %vm30_vm0, %v2011_v8  ;;  %2299 = vrot.lane.b32.xlu0 %v6631_v33, %s5189_s1  ;;  %2239 = vrot.lane.b32.xlu1 %v6631_v33, %s5188_s11 }
 0x4c7   :  { %2030 = vst.msk [vmem:[#allocation2 + $0xb0] sm:$0xff] %vm30_vm0, %v2010_v35 }
 0x4c8   :  { %v2092_v22 = vpop.permute.xlu1 %2091 }
 0x4c9   :  { %v4901_v18 = vpop.f32.mrb[38].mxu0  ;;  %v2336_v36 = vsel %vm30_vm0, %v5158_v41, %v2092_v22 }
 0x4ca   :  { %v1991_v27 = vadd.f32 %v4901_v18, %v6445_v38  ;;  %v1985_v44 = vpop.f32.mrb[39].mxu0  ;;  %2179 = vrot.lane.b32.xlu0 %v6631_v33, %s5186_s27  ;;  %2119 = vrot.lane.b32.xlu1 %v6631_v33, %s5187_s28  ;;  %v2356_v46 = vsel %vm400_vm1, %v2336_v36, %v2154_v34 }
 0x4cb   :  { %v1986_v45 = vadd.f32 %v6445_v38, %v1985_v44  ;;  %v2335_v38 = vsel %vm30_vm0, %v6273_v21, %v2090_v11  ;;  %v2337_v11 = vsel %vm30_vm0, %v6463_v24, %v2094_v0 }
 0x4cc   :  { %v2013_v25 = vmax.f32 %v1991_v27, 0.0  ;;  %v2355_v47 = vsel %vm400_vm1, %v2335_v38, %v2152_v13  ;;  %v5159_v27 = vld [vmem:[#allocation2 + $0xd0] sm:$0xff] }
 0x4cd   :  { %v2012_v39 = vmax.f32 %v1986_v45, 0.0  ;;  %v6645_v61 = vld [vmem:[#allocation2 + $0xb8] sm:$0xff]  ;;  %v2375_v21 = vsel %vm421_vm2, %v2355_v47, %v2214_v31 }
 0x4ce   :  { %2033 = vst.msk [vmem:[#allocation2 + $0xc8] sm:$0xff] %vm30_vm0, %v2013_v25  ;;  %2305 = vrot.lane.b32.xlu0 %v6645_v61, %s5189_s1  ;;  %2185 = vrot.lane.b32.xlu1 %v6645_v61, %s5186_s27  ;;  %v6661_v37 = vld [vmem:[#allocation2 + $0xb0] sm:$0xff] }
 0x4cf   :  { %2032 = vst.msk [vmem:[#allocation2 + $0xc0] sm:$0xff] %vm30_vm0, %v2012_v39 }
 0x4d0   :  { %v2278_v3 = vpop.permute.xlu0 %2277  ;;  %v2158_v23 = vpop.permute.xlu1 %2157 }
 0x4d2   :  { %2245 = vrot.lane.b32.xlu0 %v6645_v61, %s5188_s11  ;;  %2125 = vrot.lane.b32.xlu1 %v6645_v61, %s5187_s28 }
 0x4d4   :  { %v2218_v10 = vpop.permute.xlu0 %2217  ;;  %v2098_v20 = vpop.permute.xlu1 %2097 }
 0x4d5   :  { %v2064_v49 = vld [vmem:[#allocation2 + $0xc8] sm:$0xff]  ;;  %v2339_v13 = vsel %vm30_vm0, %v6496_v15, %v2098_v20 }
 0x4d6   :  { %2303 = vrot.lane.b32.xlu0 %v6661_v37, %s5189_s1  ;;  %2243 = vrot.lane.b32.xlu1 %v6661_v37, %s5188_s11  ;;  %v2062_v29 = vld [vmem:[#allocation2 + $0xc0] sm:$0xff] }
 0x4d8   :  { %v2276_v40 = vpop.permute.xlu0 %2275  ;;  %v2216_v12 = vpop.permute.xlu1 %2215 }
 0x4d9   :  { %v2395_v1 = vsel %vm442_vm3, %v2375_v21, %v2276_v40  ;;  %v2376_v51 = vsel %vm421_vm2, %v2356_v46, %v2216_v12 }
 0x4da   :  { %v2396_v26 = vsel %vm442_vm3, %v2376_v51, %v2278_v3  ;;  %4912 = vmatprep.mubr.msk.f32.mxu1 %vm469_vm4, %v2395_v1  ;;  %2183 = vrot.lane.b32.xlu0 %v6661_v37, %s5186_s27 }
 0x4db   :  { %2123 = vrot.lane.b32.xlu1 %v6661_v37, %s5187_s28  ;;  %4913 = vmatmul.mubr.msk.f32.vlgmr.msra.gmra.mrb[20].mxu1 %vm469_vm4, %v2396_v26 }
 0x4dc   :  { %v2156_v6 = vpop.permute.xlu0 %2155  ;;  %v2096_v17 = vpop.permute.xlu1 %2095 }
 0x4dd   :  { %v2357_v63 = vsel %vm400_vm1, %v2337_v11, %v2156_v6  ;;  %v2338_v5 = vsel %vm30_vm0, %v6451_v30, %v2096_v17 }
 0x4de   :  { %2309 = vrot.lane.b32.xlu0 %v2064_v49, %s5189_s1  ;;  %v2377_v43 = vsel %vm421_vm2, %v2357_v63, %v2218_v10  ;;  %v2358_v8 = vsel %vm400_vm1, %v2338_v5, %v2158_v23 }
 0x4df   :  { %2189 = vrot.lane.b32.xlu1 %v2064_v49, %s5186_s27 }
 0x4e0   :  { %v2162_v55 = vpop.permute.xlu1 %2161  ;;  %v2282_v53 = vpop.permute.xlu0 %2281 }
 0x4e2   :  { %2249 = vrot.lane.b32.xlu0 %v2064_v49, %s5188_s11 }
 0x4e3   :  { %2247 = vrot.lane.b32.xlu1 %v2062_v29, %s5188_s11 }
 0x4e4   :  { %v2102_v57 = vpop.permute.xlu1 %2101  ;;  %v2222_v34 = vpop.permute.xlu0 %2221 }
 0x4e5   :  { %v2341_v46 = vsel %vm30_vm0, %v6520_v19, %v2102_v57 }
 0x4e6   :  { %2307 = vrot.lane.b32.xlu0 %v2062_v29, %s5189_s1 }
 0x4e7   :  { %2127 = vrot.lane.b32.xlu1 %v2062_v29, %s5187_s28 }
 0x4e8   :  { %v2280_v9 = vpop.permute.xlu0 %2279  ;;  %v2220_v35 = vpop.permute.xlu1 %2219 }
 0x4e9   :  { %v2397_v31 = vsel %vm442_vm3, %v2377_v43, %v2280_v9  ;;  %v2378_v24 = vsel %vm421_vm2, %v2358_v8, %v2220_v35 }
 0x4ea   :  { %2187 = vrot.lane.b32.xlu0 %v2062_v29, %s5186_s27  ;;  %4915 = vmatprep.mubr.msk.f32.mxu1 %vm469_vm4, %v2397_v31  ;;  %v2398_v30 = vsel %vm442_vm3, %v2378_v24, %v2282_v53 }
 0x4eb   :  { %2313 = vrot.lane.b32.xlu1 %v6315_v7, %s5189_s1  ;;  %4916 = vmatmul.mubr.msk.f32.gmra.mrb[22].mxu1 %vm469_vm4, %v2398_v30 }
 0x4ec   :  { %v2160_v0 = vpop.permute.xlu0 %2159  ;;  %v2100_v18 = vpop.permute.xlu1 %2099 }
 0x4ed   :  { %v2359_v39 = vsel %vm400_vm1, %v2339_v13, %v2160_v0  ;;  %v2340_v3 = vsel %vm30_vm0, %v6484_v59, %v2100_v18 }
 0x4ee   :  { %2311 = vrot.lane.b32.xlu0 %v5159_v27, %s5189_s1  ;;  %v2379_v7 = vsel %vm421_vm2, %v2359_v39, %v2222_v34  ;;  %v2360_v38 = vsel %vm400_vm1, %v2340_v3, %v2162_v55  ;;  %v5160_v27 = vld [vmem:[#allocation2 + $0x78] sm:$0xff] }
 0x4f0   :  { %v2286_v44 = vpop.permute.xlu0 %2285  ;;  %v2166_v45 = vpop.permute.xlu1 %2165 }
 0x4f4   :  { %v2226_v22 = vpop.permute.xlu0 %2225  ;;  %v2106_v25 = vpop.permute.xlu1 %2105 }
 0x4f5   :  { %v2343_v11 = vsel %vm30_vm0, %v6546_v42, %v2106_v25 }
 0x4f8   :  { %v2284_v23 = vpop.permute.xlu0 %2283  ;;  %v2224_v10 = vpop.permute.xlu1 %2223 }
 0x4f9   :  { %v2399_v47 = vsel %vm442_vm3, %v2379_v7, %v2284_v23  ;;  %v2380_v41 = vsel %vm421_vm2, %v2360_v38, %v2224_v10 }
 0x4fa   :  { %4918 = vmatprep.mubr.msk.f32.mxu1 %vm469_vm4, %v2399_v47  ;;  %v2400_v15 = vsel %vm442_vm3, %v2380_v41, %v2286_v44 }
 0x4fb   :  { %4919 = vmatmul.mubr.msk.f32.gmra.mrb[24].mxu1 %vm469_vm4, %v2400_v15 }
 0x4fc   :  { %v2164_v20 = vpop.permute.xlu0 %2163  ;;  %v2104_v36 = vpop.permute.xlu1 %2103 }
 0x4fd   :  { %v2342_v40 = vsel %vm30_vm0, %v6508_v16, %v2104_v36  ;;  %v2361_v51 = vsel %vm400_vm1, %v2341_v46, %v2164_v20 }
 0x4fe   :  { %v2362_v26 = vsel %vm400_vm1, %v2342_v40, %v2166_v45  ;;  %v2381_v49 = vsel %vm421_vm2, %v2361_v51, %v2226_v22 }
 0x500   :  { %v2290_v21 = vpop.permute.xlu0 %2289  ;;  %v2170_v59 = vpop.permute.xlu1 %2169 }
 0x504   :  { %v2230_v12 = vpop.permute.xlu0 %2229  ;;  %v2228_v1 = vpop.permute.xlu1 %2227 }
 0x505   :  { %v2382_v6 = vsel %vm421_vm2, %v2362_v26, %v2228_v1 }
 0x506   :  { %v2402_v19 = vsel %vm442_vm3, %v2382_v6, %v2290_v21 }
 0x508   :  { %v2288_v17 = vpop.permute.xlu0 %2287  ;;  %v2108_v55 = vpop.permute.xlu1 %2107 }
 0x509   :  { %v2401_v53 = vsel %vm442_vm3, %v2381_v49, %v2288_v17  ;;  %v2344_v16 = vsel %vm30_vm0, %v6536_v4, %v2108_v55 }
 0x50a   :  { %v2364_v29 = vsel %vm400_vm1, %v2344_v16, %v2170_v59  ;;  %4921 = vmatprep.mubr.msk.f32.mxu1 %vm469_vm4, %v2401_v53 }
 0x50b   :  { %4922 = vmatmul.mubr.msk.f32.gmra.mrb[26].mxu1 %vm469_vm4, %v2402_v19  ;;  %v2384_v63 = vsel %vm421_vm2, %v2364_v29, %v6591_v32  ;;  %v2345_v32 = vsel %vm30_vm0, %v6378_v50, %v6599_v56 }
 0x50c   :  { %v2168_v57 = vpop.permute.xlu0 %2167  ;;  %v2404_v9 = vsel %vm442_vm3, %v2384_v63, %v6623_v14 }
 0x50d   :  { %v2363_v34 = vsel %vm400_vm1, %v2343_v11, %v2168_v57 }
 0x50e   :  { %v2383_v5 = vsel %vm421_vm2, %v2363_v34, %v2230_v12 }
 0x50f   :  { %v2403_v4 = vsel %vm442_vm3, %v2383_v5, %v6609_v54 }
 0x510   :  { %v2174_v43 = vpop.permute.xlu1 %2173  ;;  %4924 = vmatprep.mubr.msk.f32.mxu1 %vm469_vm4, %v2403_v4  ;;  %v2234_v42 = vpop.permute.xlu0 %2233 }
 0x511   :  { %4925 = vmatmul.mubr.msk.f32.gmra.mrb[28].mxu1 %vm469_vm4, %v2404_v9 }
 0x514   :  { %v2114_v8 = vpop.permute.xlu1 %2113  ;;  %v2172_v35 = vpop.permute.xlu0 %2171 }
 0x515   :  { %v2365_v18 = vsel %vm400_vm1, %v2345_v32, %v2172_v35  ;;  %v2347_v38 = vsel %vm30_vm0, %v6573_v28, %v2114_v8 }
 0x516   :  { %v2385_v14 = vsel %vm421_vm2, %v2365_v18, %v2234_v42 }
 0x518   :  { %v2112_v31 = vpop.permute.xlu1 %2111 }
 0x519   :  { %v2346_v44 = vsel %vm30_vm0, %v5160_v27, %v2112_v31 }
 0x51a   :  { %v2366_v13 = vsel %vm400_vm1, %v2346_v44, %v2174_v43 }
 0x520   :  { %v2298_v24 = vpop.permute.xlu0 %2297  ;;  %v2178_v30 = vpop.permute.xlu1 %2177 }
 0x524   :  { %v2238_v0 = vpop.permute.xlu0 %2237  ;;  %v2118_v54 = vpop.permute.xlu1 %2117 }
 0x525   :  { %v2349_v26 = vsel %vm30_vm0, %v6601_v58, %v2118_v54 }
 0x528   :  { %v2296_v45 = vpop.permute.xlu0 %2295  ;;  %v2236_v22 = vpop.permute.xlu1 %2235 }
 0x529   :  { %v2405_v25 = vsel %vm442_vm3, %v2385_v14, %v2296_v45  ;;  %v2386_v39 = vsel %vm421_vm2, %v2366_v13, %v2236_v22 }
 0x52a   :  { %4927 = vmatprep.mubr.msk.f32.mxu1 %vm469_vm4, %v2405_v25  ;;  %v2406_v50 = vsel %vm442_vm3, %v2386_v39, %v2298_v24 }
 0x52b   :  { %4928 = vmatmul.mubr.msk.f32.gmra.mrb[30].mxu1 %vm469_vm4, %v2406_v50 }
 0x52c   :  { %v2176_v56 = vpop.permute.xlu0 %2175  ;;  %v2116_v3 = vpop.permute.xlu1 %2115 }
 0x52d   :  { %v2367_v41 = vsel %vm400_vm1, %v2347_v38, %v2176_v56  ;;  %v2348_v15 = vsel %vm30_vm0, %v6567_v48, %v2116_v3  ;;  %v2742_v38 = vld [vmem:[%s7190_s5] sm:$0xff] }
 0x52e   :  { %v2387_v36 = vsel %vm421_vm2, %v2367_v41, %v2238_v0  ;;  %v2368_v21 = vsel %vm400_vm1, %v2348_v15, %v2178_v30  ;;  %v2744_v15 = vld [vmem:[%s7190_s5 + $0x10] sm:$0xff] }
 0x530   :  { %v2302_v7 = vpop.permute.xlu0 %2301  ;;  %v2182_v23 = vpop.permute.xlu1 %2181 }
 0x534   :  { %v2242_v10 = vpop.permute.xlu0 %2241  ;;  %v2122_v47 = vpop.permute.xlu1 %2121 }
 0x535   :  { %v2351_v43 = vsel %vm30_vm0, %v6631_v33, %v2122_v47 }
 0x538   :  { %v2300_v20 = vpop.permute.xlu0 %2299  ;;  %v2240_v59 = vpop.permute.xlu1 %2239 }
 0x539   :  { %v2407_v40 = vsel %vm442_vm3, %v2387_v36, %v2300_v20  ;;  %v2388_v46 = vsel %vm421_vm2, %v2368_v21, %v2240_v59 }
 0x53a   :  { %4930 = vmatprep.mubr.msk.f32.mxu1 %vm469_vm4, %v2407_v40  ;;  %v2408_v28 = vsel %vm442_vm3, %v2388_v46, %v2302_v7 }
 0x53b   :  { %4931 = vmatmul.mubr.msk.f32.gmra.mrb[32].mxu1 %vm469_vm4, %v2408_v28 }
 0x53c   :  { %v2180_v12 = vpop.permute.xlu0 %2179  ;;  %v2120_v1 = vpop.permute.xlu1 %2119 }
 0x53d   :  { %v2369_v49 = vsel %vm400_vm1, %v2349_v26, %v2180_v12  ;;  %v2350_v55 = vsel %vm30_vm0, %v6585_v52, %v2120_v1 }
 0x53e   :  { %v2389_v16 = vsel %vm421_vm2, %v2369_v49, %v2242_v10  ;;  %v2370_v29 = vsel %vm400_vm1, %v2350_v55, %v2182_v23  ;;  %v2743_v10 = vld [vmem:[%s7190_s5 + $0x8] sm:$0xff]  ;;  %s5191_s5 = smov 120  }
 0x53f   :  { %v5091_v47 = vpack.c.bf16 %v2743_v10, %v2742_v38 }
 0x540   :  { %v2306_v51 = vpop.permute.xlu0 %2305  ;;  %v2186_v48 = vpop.permute.xlu1 %2185 }
 0x541   :  { %5092 = vmatprep.subr.bf16.mxu0 %v5091_v47  ;;  %5107 = vmatprep.subr.bf16.mxu1 %v5091_v47 }
 0x542   :  { %5094 = vmatpush3.bf16.msra.mxu0 %v5091_v47  ;;  %5109 = vmatpush3.bf16.msra.mxu1 %v5091_v47 }
 0x543   :  { %4946 = vmatprep.subr.mxu0 %v2744_v15  ;;  %5108 = vmatprep.subr.mxu1 %v2744_v15 }
 0x544   :  { %v2246_v6 = vpop.permute.xlu0 %2245  ;;  %v2126_v17 = vpop.permute.xlu1 %2125 }
 0x545   :  { %v2353_v54 = vsel %vm30_vm0, %v6661_v37, %v2126_v17  ;;  %v6803_v37 = vld [vmem:[%s7189_s4 + $0x2] ss:$0 sm:$0xff]  ;;  %s5161_s4 = scalar_lea.vmem %s4485_s10, 128 }
 0x546   :  { %4947 = vmatpush3.msra.mxu0 %v2744_v15  ;;  %5110 = vmatpush3.msra.mxu1 %v2744_v15  ;;  %p5162_p0 = scmp.ne.s32.totalorder %s4485_s10, %s5161_s4  ;;  %p5167_p2 = scmp.lt.s32.totalorder %s5161_s4, %s5161_s4 }
 0x547   :  { %4960 = vmatprep.subr.mxu1 %v5185_v2  ;;  %4980 = vmatprep.subr.mxu0 %v5185_v2 }
 0x548   :  { %v2304_v53 = vpop.permute.xlu0 %2303  ;;  %v2244_v19 = vpop.permute.xlu1 %2243  ;;  %p5168_p3 = por %p5167_p2, %p5166_p1 }
 0x549   :  { %v2409_v11 = vsel %vm442_vm3, %v2389_v16, %v2304_v53  ;;  %v2390_v57 = vsel %vm421_vm2, %v2370_v29, %v2244_v19 }
 0x54a   :  { %4933 = vmatprep.mubr.msk.f32.mxu1 %vm469_vm4, %v2409_v11  ;;  %v2410_v58 = vsel %vm442_vm3, %v2390_v57, %v2306_v51  ;;  %p5169_p4 = pnand %p5168_p3, %p5162_p0 }
 0x54b   :  { %4934 = vmatmul.mubr.msk.f32.gmra.mrb[34].mxu1 %vm469_vm4, %v2410_v58 }
 0x54c   :  { %v2184_v34 = vpop.permute.xlu0 %2183 }
 0x54d   :  { %v2124_v63 = vpop.permute.xlu1 %2123  ;;  %v2371_v42 = vsel %vm400_vm1, %v2351_v43, %v2184_v34 }
 0x54e   :  { %v2352_v4 = vsel %vm30_vm0, %v6617_v62, %v2124_v63  ;;  %v2391_v30 = vsel %vm421_vm2, %v2371_v42, %v2246_v6 }
 0x54f   :  { %v2372_v35 = vsel %vm400_vm1, %v2352_v4, %v2186_v48 }
 0x550   :  { %v2310_v5 = vpop.permute.xlu0 %2309 }
 0x551   :  { %v2190_v52 = vpop.permute.xlu1 %2189 }
 0x554   :  { %v2250_v9 = vpop.permute.xlu0 %2249 }
 0x555   :  { %v2248_v8 = vpop.permute.xlu1 %2247 }
 0x556   :  { %v2392_v31 = vsel %vm421_vm2, %v2372_v35, %v2248_v8 }
 0x557   :  { %v2412_v33 = vsel %vm442_vm3, %v2392_v31, %v2310_v5 }
 0x558   :  { %v2308_v24 = vpop.permute.xlu0 %2307 }
 0x559   :  { %v2411_v32 = vsel %vm442_vm3, %v2391_v30, %v2308_v24  ;;  %v2128_v0 = vpop.permute.xlu1 %2127 }
 0x55a   :  { %v2354_v62 = vsel %vm30_vm0, %v6645_v61, %v2128_v0  ;;  %4936 = vmatprep.mubr.msk.f32.mxu1 %vm469_vm4, %v2411_v32 }
 0x55b   :  { %4937 = vmatmul.mubr.msk.f32.gmra.mrb[36].mxu1 %vm469_vm4, %v2412_v33  ;;  %v2374_v18 = vsel %vm400_vm1, %v2354_v62, %v2190_v52 }
 0x55c   :  { %v2188_v27 = vpop.permute.xlu0 %2187  ;;  %v2394_v14 = vsel %vm421_vm2, %v2374_v18, %v6615_v60 }
 0x55d   :  { %v2373_v44 = vsel %vm400_vm1, %v2353_v54, %v2188_v27  ;;  %v2314_v45 = vpop.permute.xlu1 %2313 }
 0x55e   :  { %v2393_v61 = vsel %vm421_vm2, %v2373_v44, %v2250_v9  ;;  %v2414_v25 = vsel %vm442_vm3, %v2394_v14, %v2314_v45 }
 0x560   :  { %v2312_v13 = vpop.permute.xlu0 %2311 }
 0x561   :  { %v2413_v22 = vsel %vm442_vm3, %v2393_v61, %v2312_v13 }
 0x562   :  { %4939 = vmatprep.mubr.msk.f32.mxu1 %vm469_vm4, %v2413_v22 }
 0x563   :  { %4940 = vmatmul.mubr.msk.f32.gmra.mrb[38].mxu1 %vm469_vm4, %v2414_v25 }
 0x5ae   :  { %v4914_v39 = vpop.f32.mrb[20].mxu1 }
 0x5af   :  { %v2551_v60 = vadd.f32 %v4914_v39, %v6803_v37  ;;  %v6806_v50 = vpop.f32.mrb[21].mxu1 }
 0x5b0   :  { %v2546_v31 = vadd.f32 %v6803_v37, %v6806_v50 }
 0x5b1   :  { %v2645_v56 = vmax.f32 %v2551_v60, 0.0 }
 0x5b2   :  { %v2644_v32 = vmax.f32 %v2546_v31, 0.0 }
 0x5b3   :  { %2665 = vrot.lane.b32.xlu0 %v2645_v56, %s5187_s28 }
 0x5be   :  { %v6809_v3 = vpop.f32.mrb[22].mxu1 }
 0x5bf   :  { %v2555_v7 = vpop.f32.mrb[23].mxu1  ;;  %v2561_v13 = vadd.f32 %v6809_v3, %v6803_v37 }
 0x5c0   :  { %v2556_v23 = vadd.f32 %v6803_v37, %v2555_v7 }
 0x5c1   :  { %v2647_v61 = vmax.f32 %v2561_v13, 0.0 }
 0x5c2   :  { %v2646_v41 = vmax.f32 %v2556_v23, 0.0 }
 0x5c4   :  { %2669 = vrot.lane.b32.xlu1 %v2646_v41, %s5186_s27 }
 0x5ce   :  { %v4920_v20 = vpop.f32.mrb[24].mxu1 }
 0x5cf   :  { %v2571_v36 = vadd.f32 %v4920_v20, %v6803_v37  ;;  %v2565_v21 = vpop.f32.mrb[25].mxu1 }
 0x5d0   :  { %v2566_v59 = vadd.f32 %v6803_v37, %v2565_v21 }
 0x5d1   :  { %v2649_v40 = vmax.f32 %v2571_v36, 0.0 }
 0x5d2   :  { %v2648_v46 = vmax.f32 %v2566_v59, 0.0 }
 0x5d3   :  { %2679 = vrot.lane.b32.xlu1 %v2649_v40, %s5186_s27 }
 0x5d4   :  { %2675 = vrot.lane.b32.xlu0 %v2648_v46, %s5187_s28 }
 0x5de   :  { %v4923_v28 = vpop.f32.mrb[26].mxu1 }
 0x5df   :  { %v6829_v12 = vadd.f32 %v4923_v28, %v6803_v37  ;;  %v2575_v1 = vpop.f32.mrb[27].mxu1 }
 0x5e0   :  { %v2576_v56 = vadd.f32 %v6803_v37, %v2575_v1 }
 0x5e1   :  { %v2651_v51 = vmax.f32 %v6829_v12, 0.0 }
 0x5e2   :  { %v2650_v38 = vmax.f32 %v2576_v56, 0.0 }
 0x5e3   :  { %2685 = vrot.lane.b32.xlu0 %v2651_v51, %s5187_s28 }
 0x5e4   :  { %v4926_v48 = vpop.f32.mrb[28].mxu1 }
 0x5e5   :  { %v2591_v26 = vadd.f32 %v4926_v48, %v6803_v37  ;;  %v2585_v6 = vpop.f32.mrb[29].mxu1 }
 0x5e6   :  { %v2586_v17 = vadd.f32 %v6803_v37, %v2585_v6 }
 0x5e7   :  { %v2653_v49 = vmax.f32 %v2591_v26, 0.0 }
 0x5e8   :  { %v2652_v55 = vmax.f32 %v2586_v17, 0.0 }
 0x5e9   :  { %2698 = vrot.lane.b32.xlu1 %v2653_v49, %s5186_s27 }
 0x5ea   :  { %2694 = vrot.lane.b32.xlu0 %v2652_v55, %s5187_s28 }
 0x5ed   :  { %2689 = vrot.lane.b32.xlu1 %v2652_v55, %s5186_s27 }
 0x5fe   :  { %v4929_v53 = vpop.f32.mrb[30].mxu1 }
 0x5ff   :  { %v2601_v16 = vadd.f32 %v4929_v53, %v6803_v37  ;;  %v2595_v29 = vpop.f32.mrb[31].mxu1 }
 0x600   :  { %v2596_v20 = vadd.f32 %v6803_v37, %v2595_v29 }
 0x601   :  { %v2655_v19 = vmax.f32 %v2601_v16, 0.0 }
 0x602   :  { %v2654_v21 = vmax.f32 %v2596_v20, 0.0 }
 0x603   :  { %2704 = vrot.lane.b32.xlu0 %v2655_v19, %s5187_s28 }
 0x60e   :  { %v4932_v11 = vpop.f32.mrb[32].mxu1 }
 0x60f   :  { %v2605_v57 = vpop.f32.mrb[33].mxu1  ;;  %v2611_v28 = vadd.f32 %v4932_v11, %v6803_v37 }
 0x610   :  { %v2606_v58 = vadd.f32 %v6803_v37, %v2605_v57 }
 0x611   :  { %v2657_v12 = vmax.f32 %v2611_v28, 0.0 }
 0x612   :  { %v2656_v34 = vmax.f32 %v2606_v58, 0.0 }
 0x614   :  { %2708 = vrot.lane.b32.xlu1 %v2656_v34, %s5186_s27 }
 0x61e   :  { %v4935_v63 = vpop.f32.mrb[34].mxu1 }
 0x61f   :  { %v2621_v5 = vadd.f32 %v4935_v63, %v6803_v37  ;;  %v2615_v52 = vpop.f32.mrb[35].mxu1 }
 0x620   :  { %v2616_v4 = vadd.f32 %v6803_v37, %v2615_v52 }
 0x621   :  { %v2659_v43 = vmax.f32 %v2621_v5, 0.0 }
 0x622   :  { %v2658_v9 = vmax.f32 %v2616_v4, 0.0 }
 0x623   :  { %2718 = vrot.lane.b32.xlu1 %v2659_v43, %s5186_s27 }
 0x624   :  { %2714 = vrot.lane.b32.xlu0 %v2658_v9, %s5187_s28 }
 0x625   :  { %v2666_v30 = vpop.permute.xlu0 %2665 }
 0x626   :  { %v2672_v0 = vsel %vm30_vm0, %v2644_v32, %v2666_v30 }
 0x62e   :  { %v4938_v42 = vpop.f32.mrb[36].mxu1 }
 0x62f   :  { %v6849_v8 = vadd.f32 %v4938_v42, %v6803_v37  ;;  %v2625_v35 = vpop.f32.mrb[37].mxu1 }
 0x630   :  { %v2626_v6 = vadd.f32 %v6803_v37, %v2625_v35 }
 0x631   :  { %v2661_v24 = vmax.f32 %v6849_v8, 0.0 }
 0x632   :  { %v2660_v49 = vmax.f32 %v2626_v6, 0.0 }
 0x633   :  { %2724 = vrot.lane.b32.xlu0 %v2661_v24, %s5187_s28 }
 0x636   :  { %v2670_v62 = vpop.permute.xlu1 %2669  ;;  %v4941_v33 = vpop.f32.mrb[38].mxu1 }
 0x637   :  { %v2673_v54 = vsel %vm400_vm1, %v2672_v0, %v2670_v62  ;;  %v2635_v18 = vpop.f32.mrb[39].mxu1  ;;  %v2641_v44 = vadd.f32 %v4941_v33, %v6803_v37  ;;  %v3490_v0 = vlaneseq }
 0x638   :  { %v2636_v27 = vadd.f32 %v6803_v37, %v2635_v18  ;;  %4948 = vmatprep.mubr.msk.f32.mxu0 %vm421_vm2, %v2673_v54 }
 0x639   :  { %v2663_v45 = vmax.f32 %v2641_v44, 0.0  ;;  %v3491_v62 = vand.u32 127, %v3490_v0 }
 0x63a   :  { %v2662_v14 = vmax.f32 %v2636_v27, 0.0 }
 0x63b   :  { %vm3492_vm6 = vcmp.lt.s32.totalorder %v3491_v62, 4 }
 0x63c   :  { %2733 = vrot.lane.b32.xlu0 %v2662_v14, %s5187_s28  ;;  %2728 = vrot.lane.b32.xlu1 %v2662_v14, %s5186_s27 }
 0x640   :  { %2737 = vrot.lane.b32.xlu1 %v2663_v45, %s5186_s27 }
 0x645   :  { %v2680_v25 = vpop.permute.xlu1 %2679 }
 0x646   :  { %v2676_v22 = vpop.permute.xlu0 %2675 }
 0x647   :  { %v2682_v39 = vsel %vm30_vm0, %v2647_v61, %v2676_v22 }
 0x648   :  { %v2683_v60 = vsel %vm400_vm1, %v2682_v39, %v2680_v25 }
 0x649   :  { %4949 = vmatmul.mubr.msk.f32.vlgmr.msra.gmra.mrb[40].mxu0 %vm421_vm2, %v2683_v60 }
 0x655   :  { %v2686_v50 = vpop.permute.xlu0 %2685 }
 0x656   :  { %v2692_v3 = vsel %vm30_vm0, %v2650_v38, %v2686_v50 }
 0x65b   :  { %v2699_v7 = vpop.permute.xlu1 %2698 }
 0x65c   :  { %v2695_v23 = vpop.permute.xlu0 %2694 }
 0x65d   :  { %v2701_v10 = vsel %vm30_vm0, %v2651_v51, %v2695_v23 }
 0x65e   :  { %v2702_v15 = vsel %vm400_vm1, %v2701_v10, %v2699_v7 }
 0x65f   :  { %v2690_v47 = vpop.permute.xlu1 %2689 }
 0x660   :  { %v2693_v41 = vsel %vm400_vm1, %v2692_v3, %v2690_v47 }
 0x661   :  { %4951 = vmatprep.mubr.msk.f32.mxu0 %vm421_vm2, %v2693_v41 }
 0x662   :  { %4952 = vmatmul.mubr.msk.f32.gmra.mrb[42].mxu0 %vm421_vm2, %v2702_v15 }
 0x663   :  { %4982 = vmatprep.mubr.msk.f32.mxu0 %vm5190_vm5, %v5185_v2 }
 0x675   :  { %v2705_v36 = vpop.permute.xlu0 %2704 }
 0x676   :  { %v2711_v59 = vsel %vm30_vm0, %v2654_v21, %v2705_v36 }
 0x686   :  { %v2709_v40 = vpop.permute.xlu1 %2708 }
 0x687   :  { %v2712_v46 = vsel %vm400_vm1, %v2711_v59, %v2709_v40 }
 0x688   :  { %4954 = vmatprep.mubr.msk.f32.mxu1 %vm421_vm2, %v2712_v46 }
 0x695   :  { %v2719_v51 = vpop.permute.xlu1 %2718 }
 0x696   :  { %v2715_v1 = vpop.permute.xlu0 %2714 }
 0x697   :  { %v2721_v48 = vsel %vm30_vm0, %v2657_v12, %v2715_v1 }
 0x698   :  { %v2722_v26 = vsel %vm400_vm1, %v2721_v48, %v2719_v51 }
 0x699   :  { %4955 = vmatmul.mubr.msk.f32.vlgmr.msra.gmra.mrb[40].mxu1 %vm421_vm2, %v2722_v26 }
 0x6a5   :  { %v2725_v17 = vpop.permute.xlu0 %2724 }
 0x6a6   :  { %v2731_v55 = vsel %vm30_vm0, %v2660_v49, %v2725_v17 }
 0x6ae   :  { %v2729_v53 = vpop.permute.xlu1 %2728  ;;  %v2734_v16 = vpop.permute.xlu0 %2733 }
 0x6af   :  { %v2732_v29 = vsel %vm400_vm1, %v2731_v55, %v2729_v53  ;;  %v2740_v19 = vsel %vm30_vm0, %v2661_v24, %v2734_v16 }
 0x6b0   :  { %4957 = vmatprep.mubr.msk.f32.mxu1 %vm421_vm2, %v2732_v29 }
 0x6b2   :  { %v2738_v11 = vpop.permute.xlu1 %2737 }
 0x6b3   :  { %v2741_v57 = vsel %vm400_vm1, %v2740_v19, %v2738_v11 }
 0x6b4   :  { %4958 = vmatmul.mubr.msk.f32.gmra.mrb[42].mxu1 %vm421_vm2, %v2741_v57 }
 0x6b5   :  { %4962 = vmatprep.mubr.msk.f32.mxu1 %vm5190_vm5, %v5185_v2 }
 0x71c   :  { %v6896_v37 = vpop.f32.mrb[40].mxu0 }
 0x71d   :  { %v6898_v58 = vpop.f32.mrb[41].mxu0  ;;  %2952 = vrot.lane.b32.xlu1 %v6896_v37, %s5191_s5 }
 0x71e   :  { %2875 = vrot.lane.b32.xlu0 %v6898_v58, %s5191_s5  ;;  %4961 = vmatpush3.xpose.msk.msra.mxu1 %vm30_vm0, %v6898_v58 }
 0x71f   :  { %4965 = vmatprep.subr.mxu1 %v5185_v2 }
 0x735   :  { %v6905_v34 = vpop.f32.mrb[42].mxu0 }
 0x736   :  { %3106 = vrot.lane.b32.xlu1 %v6905_v34, %s5191_s5  ;;  %v6908_v63 = vpop.f32.mrb[43].mxu0 }
 0x737   :  { %3029 = vrot.lane.b32.xlu0 %v6908_v63, %s5191_s5 }
 0x76c   :  { %v6911_v5 = vpop.f32.mrb[40].mxu1 }
 0x76d   :  { %v6913_v52 = vpop.f32.mrb[41].mxu1  ;;  %3260 = vrot.lane.b32.xlu1 %v6911_v5, %s5191_s5 }
 0x76e   :  { %4981 = vmatpush3.xpose.msk.msra.mxu0 %vm30_vm0, %v6913_v52  ;;  %3183 = vrot.lane.b32.xlu0 %v6913_v52, %s5191_s5 }
 0x76f   :  { %4990 = vmatprep.subr.mxu0 %v5185_v2 }
 0x787   :  { %v6920_v4 = vpop.f32.mrb[42].mxu1 }
 0x788   :  { %v6922_v43 = vpop.f32.mrb[43].mxu1  ;;  %3414 = vrot.lane.b32.xlu1 %v6920_v4, %s5191_s5 }
 0x789   :  { %3337 = vrot.lane.b32.xlu0 %v6922_v43, %s5191_s5 }
 0x78f   :  { %v2953_v42 = vpop.permute.xlu1 %2952 }
 0x790   :  { %v2876_v9 = vpop.permute.xlu0 %2875 }
 0x791   :  { %4963 = vmatmul.mubr.msk.f32.vlgmr.msra.gmra.mrb[44].mxu1 %vm30_vm0, %v2876_v9 }
 0x792   :  { %4966 = vmatpush3.xpose.msk.msra.mxu1 %vm30_vm0, %v6896_v37  ;;  %4967 = vmatprep.mubr.msk.f32.mxu1 %vm5190_vm5, %v5185_v2 }
 0x793   :  { %4970 = vmatprep.subr.mxu1 %v5185_v2 }
 0x795   :  { %4968 = vmatmul.mubr.msk.f32.vlgmr.msra.gmra.mrb[46].mxu1 %vm30_vm0, %v2953_v42 }
 0x796   :  { %4971 = vmatpush3.xpose.msk.msra.mxu1 %vm30_vm0, %v6908_v63  ;;  %4972 = vmatprep.mubr.msk.f32.mxu1 %vm5190_vm5, %v5185_v2 }
 0x797   :  { %4975 = vmatprep.subr.mxu1 %v5185_v2 }
 0x7a8   :  { %v3107_v35 = vpop.permute.xlu1 %3106 }
 0x7a9   :  { %v3030_v8 = vpop.permute.xlu0 %3029 }
 0x7aa   :  { %4973 = vmatmul.mubr.msk.f32.vlgmr.msra.gmra.mrb[48].mxu1 %vm30_vm0, %v3030_v8 }
 0x7ab   :  { %4976 = vmatpush3.xpose.msk.msra.mxu1 %vm30_vm0, %v6905_v34  ;;  %4977 = vmatprep.mubr.msk.f32.mxu1 %vm5190_vm5, %v5185_v2 }
 0x7ac   :  { %4985 = vmatprep.subr.mxu1 %v5185_v2 }
 0x7ae   :  { %4978 = vmatmul.mubr.msk.f32.vlgmr.msra.gmra.mrb[50].mxu1 %vm30_vm0, %v3107_v35 }
 0x7af   :  { %4986 = vmatpush3.xpose.msk.msra.mxu1 %vm30_vm0, %v6911_v5  ;;  %4987 = vmatprep.mubr.msk.f32.mxu1 %vm5190_vm5, %v5185_v2 }
 0x7b0   :  { %4995 = vmatprep.subr.mxu1 %v5185_v2 }
 0x7df   :  { %v3261_v31 = vpop.permute.xlu1 %3260 }
 0x7e0   :  { %v3184_v24 = vpop.permute.xlu0 %3183  ;;  %4988 = vmatmul.mubr.msk.f32.vlgmr.msra.gmra.mrb[52].mxu1 %vm30_vm0, %v3261_v31 }
 0x7e1   :  { %4996 = vmatpush3.xpose.msk.msra.mxu1 %vm30_vm0, %v6920_v4  ;;  %4983 = vmatmul.mubr.msk.f32.vlgmr.msra.gmra.mrb[44].mxu0 %vm30_vm0, %v3184_v24 }
 0x7e2   :  { %4991 = vmatpush3.xpose.msk.msra.mxu0 %vm30_vm0, %v6922_v43  ;;  %4997 = vmatprep.mubr.msk.f32.mxu1 %vm5190_vm5, %v5185_v2 }
 0x7e3   :  { %4992 = vmatprep.mubr.msk.f32.mxu0 %vm5190_vm5, %v5185_v2  ;;  %5005 = vmatprep.subr.mxu1 %v5185_v2 }
 0x7e4   :  { %5000 = vmatprep.subr.mxu0 %v5185_v2 }
 0x7fa   :  { %v3415_v30 = vpop.permute.xlu1 %3414 }
 0x7fb   :  { %v3338_v32 = vpop.permute.xlu0 %3337  ;;  %4998 = vmatmul.mubr.msk.f32.vlgmr.msra.gmra.mrb[54].mxu1 %vm30_vm0, %v3415_v30 }
 0x7fc   :  { %4993 = vmatmul.mubr.msk.f32.vlgmr.msra.gmra.mrb[46].mxu0 %vm30_vm0, %v3338_v32  ;;  %5007 = vmatprep.mubr.msk.f32.mxu1 %vm5190_vm5, %v5185_v2 }
 0x7fd   :  { %5002 = vmatprep.mubr.msk.f32.mxu0 %vm5190_vm5, %v5185_v2 }
 0x864   :  { %v2947_v33 = vpop.f32.mrb[44].mxu1 }
 0x865   :  { %v3493_v54 = vsel %vm3492_vm6, %v2947_v33, -1e+30  ;;  %v4964_v18 = vpop.f32.mrb[45].mxu1 }
 0x866   :  { %v3501_v27 = vsel %vm30_vm0, %v3493_v54, -inf }
 0x867   :  { %3502 = vmax.xlane.f32.xlu0 %v3501_v27 }
 0x868   :  { %v3024_v44 = vpop.f32.mrb[46].mxu1 }
 0x869   :  { %v3494_v14 = vsel %vm3492_vm6, %v3024_v44, -1e+30  ;;  %v4969_v45 = vpop.f32.mrb[47].mxu1 }
 0x86a   :  { %v3504_v13 = vsel %vm30_vm0, %v3494_v14, -inf }
 0x86b   :  { %3505 = vmax.xlane.f32.xlu1 %v3504_v13 }
 0x87d   :  { %v3101_v61 = vpop.f32.mrb[48].mxu1 }
 0x87e   :  { %v3495_v22 = vsel %vm3492_vm6, %v3101_v61, -1e+30  ;;  %v4974_v25 = vpop.f32.mrb[49].mxu1 }
 0x87f   :  { %v3507_v39 = vsel %vm30_vm0, %v3495_v22, -inf }
 0x880   :  { %3508 = vmax.xlane.f32.xlu0 %v3507_v39 }
 0x881   :  { %v3178_v60 = vpop.f32.mrb[50].mxu1 }
 0x882   :  { %v3496_v50 = vsel %vm3492_vm6, %v3178_v60, -1e+30  ;;  %v4979_v56 = vpop.f32.mrb[51].mxu1 }
 0x883   :  { %v3510_v7 = vsel %vm30_vm0, %v3496_v50, -inf }
 0x884   :  { %3511 = vmax.xlane.f32.xlu0 %v3510_v7 }
 0x8b3   :  { %v3332_v23 = vpop.f32.mrb[52].mxu1 }
 0x8b4   :  { %v3498_v38 = vsel %vm3492_vm6, %v3332_v23, -1e+30  ;;  %v3255_v10 = vpop.f32.mrb[44].mxu0  ;;  %v4989_v3 = vpop.f32.mrb[53].mxu1 }
 0x8b5   :  { %v3516_v47 = vsel %vm30_vm0, %v3498_v38, -inf  ;;  %v3497_v41 = vsel %vm3492_vm6, %v3255_v10, -1e+30  ;;  %v4984_v15 = vpop.f32.mrb[45].mxu0 }
 0x8b6   :  { %v3513_v20 = vsel %vm30_vm0, %v3497_v41, -inf  ;;  %3517 = vmax.xlane.f32.xlu0 %v3516_v47 }
 0x8b7   :  { %3514 = vmax.xlane.f32.xlu1 %v3513_v20 }
 0x8ce   :  { %v3486_v36 = vpop.f32.mrb[54].mxu1 }
 0x8cf   :  { %v3500_v21 = vsel %vm3492_vm6, %v3486_v36, -1e+30  ;;  %v3409_v59 = vpop.f32.mrb[46].mxu0  ;;  %v4999_v40 = vpop.f32.mrb[55].mxu1 }
 0x8d0   :  { %v3522_v46 = vsel %vm30_vm0, %v3500_v21, -inf  ;;  %v3499_v28 = vsel %vm3492_vm6, %v3409_v59, -1e+30  ;;  %v4994_v12 = vpop.f32.mrb[47].mxu0 }
 0x8d1   :  { %v3519_v1 = vsel %vm30_vm0, %v3499_v28, -inf  ;;  %3523 = vmax.xlane.f32.xlu0 %v3522_v46 }
 0x8d2   :  { %3520 = vmax.xlane.f32.xlu1 %v3519_v1 }
 0x8e3   :  { %3589 = vrot.lane.b32.xlu1 %v6898_v58, %s5192_s0 }
 0x8e7   :  { %3747 = vrot.lane.b32.xlu1 %v6908_v63, %s5192_s0  ;;  %3668 = vrot.lane.b32.xlu0 %v6896_v37, %s5192_s0 }
 0x8eb   :  { %3826 = vrot.lane.b32.xlu1 %v6905_v34, %s5192_s0  ;;  %3905 = vrot.lane.b32.xlu0 %v6913_v52, %s5192_s0 }
 0x8ef   :  { %3984 = vrot.lane.b32.xlu1 %v6911_v5, %s5192_s0 }
 0x8f4   :  { %v3503_v26 = vpop.xlane.xlu0 %3502 }
 0x8f5   :  { %v3525_v17 = vsub.f32 %v3493_v54, %v3503_v26 }
 0x8f7   :  { %v3533_v49 = vmul.f32 1.442695, %v3525_v17 }
 0x8f8   :  { %v3506_v51 = vpop.xlane.xlu1 %3505 }
 0x8f9   :  { %v3526_v48 = vsub.f32 %v3494_v14, %v3506_v51 }
 0x8fb   :  { %v3535_v6 = vmul.f32 1.442695, %v3526_v48 }
 0x8fd   :  { %5125 = vpow2.f32 %v3535_v6 }
 0x8fe   :  { %5127 = vpow2.f32 %v3533_v49 }
 0x907   :  { %v6996_v55 = vpop.eup %5125 }
 0x908   :  { %v3552_v53 = vsel %vm30_vm0, %v6996_v55, 0.0  ;;  %v7000_v19 = vpop.eup %5127 }
 0x909   :  { %v3549_v42 = vsel %vm30_vm0, %v7000_v19, 0.0 }
 0x90a   :  { %3553 = vadd.xlane.f32.xlu0 %v3552_v53 }
 0x90d   :  { %v3509_v16 = vpop.xlane.xlu0 %3508 }
 0x90e   :  { %v3527_v29 = vsub.f32 %v3495_v22, %v3509_v16 }
 0x910   :  { %v3537_v11 = vmul.f32 1.442695, %v3527_v29  ;;  %v4387_v29 = vld [vmem:[%s7191_s6] sm:$0xff] }
 0x911   :  { %v3512_v57 = vpop.xlane.xlu0 %3511 }
 0x912   :  { %5129 = vpow2.f32 %v3537_v11  ;;  %v3528_v9 = vsub.f32 %v3496_v50, %v3512_v57  ;;  %v5194_v11 = vmov 0.0|0.0  }
 0x913   :  { %3550 = vadd.xlane.f32.xlu1 %v3549_v42 }
 0x914   :  { %v3539_v8 = vmul.f32 1.442695, %v3528_v9 }
 0x916   :  { %5131 = vpow2.f32 %v3539_v8 }
 0x91c   :  { %v7004_v35 = vpop.eup %5129 }
 0x91d   :  { %v3555_v31 = vsel %vm30_vm0, %v7004_v35, 0.0 }
 0x91e   :  { %3556 = vadd.xlane.f32.xlu1 %v3555_v31 }
 0x920   :  { %v7008_v24 = vpop.eup %5131 }
 0x921   :  { %v3558_v30 = vsel %vm30_vm0, %v7008_v24, 0.0 }
 0x922   :  { %3559 = vadd.xlane.f32.xlu0 %v3558_v30 }
 0x943   :  { %v3518_v32 = vpop.xlane.xlu0 %3517 }
 0x944   :  { %v3530_v0 = vsub.f32 %v3498_v38, %v3518_v32  ;;  %v3515_v62 = vpop.xlane.xlu1 %3514 }
 0x945   :  { %v3529_v33 = vsub.f32 %v3497_v41, %v3515_v62 }
 0x946   :  { %v3543_v54 = vmul.f32 1.442695, %v3530_v0 }
 0x947   :  { %v3541_v18 = vmul.f32 1.442695, %v3529_v33 }
 0x948   :  { %5133 = vpow2.f32 %v3543_v54 }
 0x949   :  { %5135 = vpow2.f32 %v3541_v18 }
 0x952   :  { %v7012_v27 = vpop.eup %5133 }
 0x953   :  { %v7014_v44 = vpop.eup %5135  ;;  %v3564_v14 = vsel %vm30_vm0, %v7012_v27, 0.0 }
 0x954   :  { %3565 = vadd.xlane.f32.xlu0 %v3564_v14  ;;  %v3561_v45 = vsel %vm30_vm0, %v7014_v44, 0.0 }
 0x955   :  { %3562 = vadd.xlane.f32.xlu1 %v3561_v45 }
 0x95e   :  { %v3524_v13 = vpop.xlane.xlu0 %3523 }
 0x95f   :  { %v3532_v61 = vsub.f32 %v3500_v21, %v3524_v13  ;;  %v3521_v22 = vpop.xlane.xlu1 %3520 }
 0x960   :  { %v3531_v25 = vsub.f32 %v3499_v28, %v3521_v22 }
 0x961   :  { %v3547_v39 = vmul.f32 1.442695, %v3532_v61 }
 0x962   :  { %v3545_v60 = vmul.f32 1.442695, %v3531_v25  ;;  %v3669_v50 = vpop.permute.xlu0 %3668 }
 0x963   :  { %5137 = vpow2.f32 %v3547_v39  ;;  %v3590_v56 = vpop.permute.xlu1 %3589  ;;  %5006 = vmatpush3.msra.mxu1 %v3669_v50 }
 0x964   :  { %5139 = vpow2.f32 %v3545_v60  ;;  %5001 = vmatpush3.msra.mxu0 %v3590_v56  ;;  %5015 = vmatprep.subr.mxu1 %v5185_v2 }
 0x965   :  { %5010 = vmatprep.subr.mxu0 %v5185_v2 }
 0x966   :  { %v3906_v47 = vpop.permute.xlu0 %3905 }
 0x967   :  { %v3748_v3 = vpop.permute.xlu1 %3747 }
 0x96d   :  { %v7022_v7 = vpop.eup %5137 }
 0x96e   :  { %v7024_v23 = vpop.eup %5139  ;;  %v3570_v38 = vsel %vm30_vm0, %v7022_v7, 0.0 }
 0x96f   :  { %3571 = vadd.xlane.f32.xlu0 %v3570_v38  ;;  %v3567_v10 = vsel %vm30_vm0, %v7024_v23, 0.0 }
 0x970   :  { %3568 = vadd.xlane.f32.xlu1 %v3567_v10 }
 0x981   :  { %4142 = vrot.lane.b32.xlu1 %v6920_v4, %s5192_s0 }
 0x985   :  { %3671 = vrot.lane.b32.xlu1 %v6896_v37, %s5193_s14  ;;  %4063 = vrot.lane.b32.xlu0 %v6922_v43, %s5192_s0  ;;  %v3827_v37 = vpop.permute.xlu1 %3826 }
 0x989   :  { %3829 = vrot.lane.b32.xlu1 %v6905_v34, %s5193_s14  ;;  %3592 = vrot.lane.b32.xlu0 %v6898_v58, %s5193_s14  ;;  %v3985_v15 = vpop.permute.xlu1 %3984 }
 0x98d   :  { %3987 = vrot.lane.b32.xlu1 %v6911_v5, %s5193_s14  ;;  %3750 = vrot.lane.b32.xlu0 %v6908_v63, %s5193_s14 }
 0x991   :  { %4145 = vrot.lane.b32.xlu1 %v6920_v4, %s5193_s14  ;;  %3908 = vrot.lane.b32.xlu0 %v6913_v52, %s5193_s14 }
 0x995   :  { %4066 = vrot.lane.b32.xlu0 %v6922_v43, %s5193_s14 }
 0x997   :  { %v3554_v41 = vpop.xlane.xlu0 %3553 }
 0x998   :  { %5141 = vrcp.f32 %v3554_v41 }
 0x9a0   :  { %v3551_v20 = vpop.xlane.xlu1 %3550 }
 0x9a1   :  { %5143 = vrcp.f32 %v3551_v20 }
 0x9a2   :  { %v5142_v34 = vpop.eup %5141 }
 0x9a3   :  { %v3576_v58 = vmul.f32 %v5142_v34, %v6996_v55 }
 0x9a5   :  { %5008 = vmatmul.mubr.msk.f32.vlgmr.msra.gmra.mrb[56].mxu1 %vm30_vm0, %v3576_v58 }
 0x9a6   :  { %5016 = vmatpush3.msra.mxu1 %v3827_v37  ;;  %5017 = vmatprep.mubr.msk.f32.mxu1 %vm5190_vm5, %v5185_v2 }
 0x9a7   :  { %5025 = vmatprep.subr.mxu1 %v5185_v2 }
 0x9ab   :  { %v5144_v63 = vpop.eup %5143  ;;  %v3557_v5 = vpop.xlane.xlu1 %3556 }
 0x9ac   :  { %v3574_v52 = vmul.f32 %v5144_v63, %v7000_v19  ;;  %5145 = vrcp.f32 %v3557_v5  ;;  %v4388_v19 = vld [vmem:[%s7191_s6 + $0x8] sm:$0xff] }
 0x9ad   :  { %v5096_v57 = vpack.c.bf16 %v4388_v19, %v4387_v29 }
 0x9ae   :  { %5003 = vmatmul.mubr.msk.f32.vlgmr.msra.gmra.mrb[48].mxu0 %vm30_vm0, %v3574_v52 }
 0x9af   :  { %5011 = vmatpush3.msra.mxu0 %v3748_v3  ;;  %v3560_v4 = vpop.xlane.xlu0 %3559  ;;  %5012 = vmatprep.mubr.msk.f32.mxu0 %vm5190_vm5, %v5185_v2 }
 0x9b0   :  { %5147 = vrcp.f32 %v3560_v4  ;;  %5020 = vmatprep.subr.mxu0 %v5185_v2 }
 0x9b6   :  { %v5146_v43 = vpop.eup %5145 }
 0x9b7   :  { %v3578_v36 = vmul.f32 %v5146_v43, %v7004_v35 }
 0x9b9   :  { %5013 = vmatmul.mubr.msk.f32.vlgmr.msra.gmra.mrb[50].mxu0 %vm30_vm0, %v3578_v36 }
 0x9ba   :  { %v5148_v21 = vpop.eup %5147  ;;  %5021 = vmatpush3.msra.mxu0 %v3906_v47  ;;  %5022 = vmatprep.mubr.msk.f32.mxu0 %vm5190_vm5, %v5185_v2 }
 0x9bb   :  { %v3580_v59 = vmul.f32 %v5148_v21, %v7008_v24  ;;  %5030 = vmatprep.subr.mxu0 %v5185_v2 }
 0x9bd   :  { %5018 = vmatmul.mubr.msk.f32.vlgmr.msra.gmra.mrb[58].mxu1 %vm30_vm0, %v3580_v59 }
 0x9be   :  { %5026 = vmatpush3.msra.mxu1 %v3985_v15  ;;  %5027 = vmatprep.mubr.msk.f32.mxu1 %vm5190_vm5, %v5185_v2 }
 0x9bf   :  { %5035 = vmatprep.subr.mxu1 %v5185_v2 }
 0x9e1   :  { %v3566_v40 = vpop.xlane.xlu0 %3565 }
 0x9e2   :  { %5149 = vrcp.f32 %v3566_v40  ;;  %v3563_v46 = vpop.xlane.xlu1 %3562 }
 0x9e3   :  { %5151 = vrcp.f32 %v3563_v46 }
 0x9ec   :  { %v5150_v28 = vpop.eup %5149 }
 0x9ed   :  { %v5152_v12 = vpop.eup %5151  ;;  %v3584_v1 = vmul.f32 %v5150_v28, %v7012_v27 }
 0x9ee   :  { %v3582_v51 = vmul.f32 %v5152_v12, %v7014_v44 }
 0x9ef   :  { %5028 = vmatmul.mubr.msk.f32.vlgmr.msra.gmra.mrb[60].mxu1 %vm30_vm0, %v3584_v1 }
 0x9f0   :  { %5023 = vmatmul.mubr.msk.f32.vlgmr.msra.gmra.mrb[52].mxu0 %vm30_vm0, %v3582_v51  ;;  %5037 = vmatprep.mubr.msk.f32.mxu1 %vm5190_vm5, %v5185_v2 }
 0x9f1   :  { %5032 = vmatprep.mubr.msk.f32.mxu0 %vm5190_vm5, %v5185_v2 }
 0x9fc   :  { %v3572_v48 = vpop.xlane.xlu0 %3571 }
 0x9fd   :  { %5153 = vrcp.f32 %v3572_v48  ;;  %v3569_v26 = vpop.xlane.xlu1 %3568 }
 0x9fe   :  { %5155 = vrcp.f32 %v3569_v26 }
 0xa00   :  { %v4064_v6 = vpop.permute.xlu0 %4063 }
 0xa01   :  { %v4143_v17 = vpop.permute.xlu1 %4142  ;;  %5031 = vmatpush3.msra.mxu0 %v4064_v6 }
 0xa02   :  { %5036 = vmatpush3.msra.mxu1 %v4143_v17  ;;  %5095 = vmatprep.subr.bf16.mxu0 %v5194_v11 }
 0xa04   :  { %v3593_v31 = vpop.permute.xlu0 %3592 }
 0xa05   :  { %v3672_v8 = vpop.permute.xlu1 %3671 }
 0xa07   :  { %v5154_v49 = vpop.eup %5153 }
 0xa08   :  { %v5156_v55 = vpop.eup %5155  ;;  %v3588_v53 = vmul.f32 %v5154_v49, %v7022_v7  ;;  %v3751_v37 = vpop.permute.xlu0 %3750 }
 0xa09   :  { %v3586_v16 = vmul.f32 %v5156_v55, %v7024_v23  ;;  %v3830_v58 = vpop.permute.xlu1 %3829 }
 0xa0a   :  { %5038 = vmatmul.mubr.msk.f32.vlgmr.msra.gmra.mrb[62].mxu1 %vm30_vm0, %v3588_v53 }
 0xa0b   :  { %5033 = vmatmul.mubr.msk.f32.vlgmr.msra.gmra.mrb[54].mxu0 %vm30_vm0, %v3586_v16 }
 0xa0c   :  { %5056 = vmatprep.mubr.msk.f32.mxu0 %vm5190_vm5, %v5185_v2  ;;  %5097 = vmatpush3.bf16.msra.mxu0 %v5096_v57  ;;  %vm4402_vm5 = vcmask 523264  }
 0xa0d   :  { %5098 = vmatprep.subr.bf16.mxu0 %v5194_v11 }
 0xa78   :  { %v3743_v9 = vpop.f32.mrb[56].mxu1 }
 0xa79   :  { %v5009_v42 = vpop.f32.mrb[57].mxu1  ;;  %v3744_v35 = vadd.f32 %v3743_v9, %v3672_v8 }
 0xa7b   :  { %v4222_v2 = vmax.f32 %v3744_v35, 0.0 }
 0xa7d   :  { %v4277_v62 = vrot.slane %v4222_v2, 1  ;;  %v4311_v33 = vrot.slane %v4222_v2, 3  ;;  %v4294_v54 = vrot.slane %v4222_v2, 2  ;;  %v4345_v18 = vrot.slane %v4222_v2, 5 }
 0xa7e   :  { %v4328_v27 = vrot.slane %v4222_v2, 4  ;;  %v4362_v44 = vrot.slane %v4222_v2, 6  ;;  %v4237_v14 = vrot.slane %v4222_v2, 7 }
 0xa81   :  { %v3664_v24 = vpop.f32.mrb[48].mxu0 }
 0xa82   :  { %v3665_v30 = vadd.f32 %v3664_v24, %v3593_v31  ;;  %v5004_v32 = vpop.f32.mrb[49].mxu0 }
 0xa84   :  { %v4221_v0 = vmax.f32 %v3665_v30, 0.0 }
 0xa86   :  { %v4276_v45 = vrot.slane %v4221_v0, 2  ;;  %v4259_v13 = vrot.slane %v4221_v0, 1  ;;  %v4310_v61 = vrot.slane %v4221_v0, 4  ;;  %v4293_v22 = vrot.slane %v4221_v0, 3 }
 0xa87   :  { %v4344_v25 = vrot.slane %v4221_v0, 6  ;;  %v4327_v39 = vrot.slane %v4221_v0, 5  ;;  %v4361_v60 = vrot.slane %v4221_v0, 7  ;;  %v4239_v50 = vsel %vm4238_vm7, %v4237_v14, %v4221_v0  ;;  %v3909_v0 = vpop.permute.xlu0 %3908 }
 0xa88   :  { %v4278_v56 = vsel %vm4238_vm7, %v4277_v62, %v4276_v45  ;;  %v4260_v7 = vsel %vm4238_vm7, %v4222_v2, %v4259_v13  ;;  %v4312_v23 = vsel %vm4238_vm7, %v4311_v33, %v4310_v61  ;;  %v4295_v38 = vsel %vm4238_vm7, %v4294_v54, %v4293_v22  ;;  %v3988_v62 = vpop.permute.xlu1 %3987 }
 0xa89   :  { %v4346_v10 = vsel %vm4238_vm7, %v4345_v18, %v4344_v25  ;;  %v4329_v3 = vsel %vm4238_vm7, %v4328_v27, %v4327_v39  ;;  %v4363_v47 = vsel %vm4238_vm7, %v4362_v44, %v4361_v60 }
 0xa8c   :  { %v3822_v41 = vpop.f32.mrb[50].mxu0 }
 0xa8d   :  { %v3823_v15 = vadd.f32 %v3822_v41, %v3751_v37  ;;  %v5014_v20 = vpop.f32.mrb[51].mxu0 }
 0xa8f   :  { %v4223_v34 = vmax.f32 %v3823_v15, 0.0 }
 0xa90   :  { %v3901_v63 = vpop.f32.mrb[58].mxu1 }
 0xa91   :  { %v3902_v5 = vadd.f32 %v3901_v63, %v3830_v58  ;;  %v5019_v52 = vpop.f32.mrb[59].mxu1  ;;  %v4279_v4 = vsel %vm4241_vm8, %v4223_v34, %v4278_v56  ;;  %v4261_v43 = vrot.slane %v4223_v34, 7  ;;  %v4313_v36 = vrot.slane %v4223_v34, 2 }
 0xa92   :  { %v4296_v21 = vrot.slane %v4223_v34, 1  ;;  %v4347_v59 = vrot.slane %v4223_v34, 4  ;;  %v4330_v40 = vrot.slane %v4223_v34, 3  ;;  %v4364_v46 = vrot.slane %v4223_v34, 5 }
 0xa93   :  { %v4224_v28 = vmax.f32 %v3902_v5, 0.0  ;;  %v4262_v12 = vsel %vm4241_vm8, %v4261_v43, %v4260_v7  ;;  %v4314_v1 = vsel %vm4241_vm8, %v4313_v36, %v4312_v23  ;;  %v4240_v51 = vrot.slane %v4223_v34, 6 }
 0xa94   :  { %v4297_v48 = vsel %vm4241_vm8, %v4296_v21, %v4295_v38  ;;  %v4348_v26 = vsel %vm4241_vm8, %v4347_v59, %v4346_v10  ;;  %v4331_v6 = vsel %vm4241_vm8, %v4330_v40, %v4329_v3  ;;  %v4365_v17 = vsel %vm4241_vm8, %v4364_v46, %v4363_v47 }
 0xa95   :  { %v4280_v49 = vrot.slane %v4224_v28, 7  ;;  %v4263_v55 = vrot.slane %v4224_v28, 6  ;;  %v4315_v53 = vrot.slane %v4224_v28, 1  ;;  %v4298_v16 = vsel %vm4244_vm9, %v4224_v28, %v4297_v48  ;;  %v4067_v48 = vpop.permute.xlu0 %4066 }
 0xa96   :  { %v4349_v29 = vrot.slane %v4224_v28, 3  ;;  %v4332_v19 = vrot.slane %v4224_v28, 2  ;;  %v4366_v57 = vrot.slane %v4224_v28, 4  ;;  %v4242_v9 = vsel %vm4241_vm8, %v4240_v51, %v4239_v50 }
 0xa97   :  { %v4281_v42 = vsel %vm4244_vm9, %v4280_v49, %v4279_v4  ;;  %v4264_v8 = vsel %vm4244_vm9, %v4263_v55, %v4262_v12  ;;  %v4316_v35 = vsel %vm4244_vm9, %v4315_v53, %v4314_v1  ;;  %v4243_v2 = vrot.slane %v4224_v28, 5  ;;  %v4389_v12 = vld [vmem:[%s7191_s6 + $0x10] sm:$0xff]  ;;  %v4390_v1 = vld [vmem:[%s7191_s6 + $0x18] sm:$0xff]  ;;  %v4391_v53 = vld [vmem:[%s7191_s6 + $0x20] sm:$0xff] }
 0xa98   :  { %v4350_v31 = vsel %vm4244_vm9, %v4349_v29, %v4348_v26  ;;  %v4333_v24 = vsel %vm4244_vm9, %v4332_v19, %v4331_v6  ;;  %v4367_v30 = vsel %vm4244_vm9, %v4366_v57, %v4365_v17  ;;  %v5099_v51 = vpack.c.bf16 %v4390_v1, %v4389_v12  ;;  %v4146_v26 = vpop.permute.xlu1 %4145 }
 0xa99   :  { %v4245_v32 = vsel %vm4244_vm9, %v4243_v2, %v4242_v9 }
 0xa9a   :  { %5100 = vmatpush3.bf16.msra.mxu0 %v5099_v51 }
 0xa9b   :  { %5101 = vmatprep.subr.bf16.mxu0 %v5194_v11 }
 0xac2   :  { %v4059_v33 = vpop.f32.mrb[60].mxu1 }
 0xac3   :  { %v4060_v54 = vadd.f32 %v4059_v33, %v3988_v62  ;;  %v3980_v18 = vpop.f32.mrb[52].mxu0  ;;  %v5029_v27 = vpop.f32.mrb[61].mxu1 }
 0xac4   :  { %v3981_v44 = vadd.f32 %v3980_v18, %v3909_v0  ;;  %v5024_v14 = vpop.f32.mrb[53].mxu0 }
 0xac5   :  { %v4226_v45 = vmax.f32 %v4060_v54, 0.0 }
 0xac6   :  { %v4225_v13 = vmax.f32 %v3981_v44, 0.0 }
 0xac7   :  { %v4284_v61 = vrot.slane %v4226_v45, 5  ;;  %v4267_v22 = vrot.slane %v4226_v45, 4  ;;  %v4318_v25 = vrot.slane %v4226_v45, 7  ;;  %v4301_v39 = vrot.slane %v4226_v45, 6 }
 0xac8   :  { %v4282_v60 = vrot.slane %v4225_v13, 6  ;;  %v4265_v50 = vrot.slane %v4225_v13, 5  ;;  %v4317_v56 = vsel %vm4247_vm10, %v4225_v13, %v4316_v35  ;;  %v4299_v7 = vrot.slane %v4225_v13, 7 }
 0xac9   :  { %v4319_v23 = vsel %vm4250_vm11, %v4318_v25, %v4317_v56  ;;  %v4351_v38 = vrot.slane %v4225_v13, 2  ;;  %v4353_v10 = vrot.slane %v4226_v45, 1  ;;  %v4334_v3 = vrot.slane %v4225_v13, 1 }
 0xaca   :  { %v4283_v47 = vsel %vm4247_vm10, %v4282_v60, %v4281_v42  ;;  %v4266_v37 = vsel %vm4247_vm10, %v4265_v50, %v4264_v8  ;;  %v4300_v41 = vsel %vm4247_vm10, %v4299_v7, %v4298_v16  ;;  %v4368_v15 = vrot.slane %v4225_v13, 3  ;;  %v4392_v16 = vld [vmem:[%s7191_s6 + $0x28] sm:$0xff] }
 0xacb   :  { %v4285_v20 = vsel %vm4250_vm11, %v4284_v61, %v4283_v47  ;;  %v4268_v34 = vsel %vm4250_vm11, %v4267_v22, %v4266_v37  ;;  %v4302_v58 = vsel %vm4250_vm11, %v4301_v39, %v4300_v41  ;;  %v4352_v63 = vsel %vm4247_vm10, %v4351_v38, %v4350_v31 }
 0xacc   :  { %v4354_v5 = vsel %vm4250_vm11, %v4353_v10, %v4352_v63  ;;  %v4335_v52 = vsel %vm4247_vm10, %v4334_v3, %v4333_v24  ;;  %v4369_v4 = vsel %vm4247_vm10, %v4368_v15, %v4367_v30  ;;  %v4370_v43 = vrot.slane %v4226_v45, 2 }
 0xacd   :  { %v4336_v36 = vsel %vm4250_vm11, %v4226_v45, %v4335_v52  ;;  %v4246_v21 = vrot.slane %v4225_v13, 4  ;;  %v4249_v40 = vrot.slane %v4226_v45, 3  ;;  %v5102_v57 = vpack.c.bf16 %v4392_v16, %v4391_v53  ;;  %v4394_v13 = vld [vmem:[%s7191_s6 + $0x38] sm:$0xff] }
 0xace   :  { %v4371_v59 = vsel %vm4250_vm11, %v4370_v43, %v4369_v4 }
 0xacf   :  { %v4248_v46 = vsel %vm4247_vm10, %v4246_v21, %v4245_v32  ;;  %5103 = vmatpush3.bf16.msra.mxu0 %v5102_v57 }
 0xad0   :  { %v4251_v28 = vsel %vm4250_vm11, %v4249_v40, %v4248_v46  ;;  %5104 = vmatprep.subr.bf16.mxu0 %v5194_v11  ;;  %v4393_v11 = vld [vmem:[%s7191_s6 + $0x30] sm:$0xff]  ;;  %s5195_s6 = smov 48  }
 0xad1   :  { %v5105_v10 = vpack.c.bf16 %v4394_v13, %v4393_v11 }
 0xad3   :  { %5106 = vmatpush3.bf16.msra.mxu0 %v5105_v10 }
 0xadd   :  { %v4217_v6 = vpop.f32.mrb[62].mxu1 }
 0xade   :  { %v4218_v17 = vadd.f32 %v4217_v6, %v4146_v26  ;;  %v4138_v49 = vpop.f32.mrb[54].mxu0  ;;  %v5039_v55 = vpop.f32.mrb[63].mxu1 }
 0xadf   :  { %v4139_v29 = vadd.f32 %v4138_v49, %v4067_v48  ;;  %v5034_v19 = vpop.f32.mrb[55].mxu0 }
 0xae0   :  { %v4228_v9 = vmax.f32 %v4218_v17, 0.0 }
 0xae1   :  { %v4227_v42 = vmax.f32 %v4139_v29, 0.0 }
 0xae2   :  { %v4288_v8 = vrot.slane %v4228_v9, 3  ;;  %v4271_v35 = vrot.slane %v4228_v9, 2  ;;  %v4322_v2 = vrot.slane %v4228_v9, 5  ;;  %v4305_v31 = vrot.slane %v4228_v9, 4 }
 0xae3   :  { %v4286_v24 = vrot.slane %v4227_v42, 4  ;;  %v4269_v30 = vrot.slane %v4227_v42, 3  ;;  %v4320_v32 = vrot.slane %v4227_v42, 6  ;;  %v4303_v0 = vrot.slane %v4227_v42, 5 }
 0xae4   :  { %v4355_v62 = vsel %vm4253_vm12, %v4227_v42, %v4354_v5  ;;  %v4356_v33 = vrot.slane %v4228_v9, 7  ;;  %v4337_v54 = vrot.slane %v4227_v42, 7  ;;  %v4339_v18 = vrot.slane %v4228_v9, 6 }
 0xae5   :  { %v4287_v27 = vsel %vm4253_vm12, %v4286_v24, %v4285_v20  ;;  %v4270_v44 = vsel %vm4253_vm12, %v4269_v30, %v4268_v34  ;;  %v4321_v14 = vsel %vm4253_vm12, %v4320_v32, %v4319_v23  ;;  %v4304_v45 = vsel %vm4253_vm12, %v4303_v0, %v4302_v58 }
 0xae6   :  { %v4289_v61 = vsel %vm4256_vm13, %v4288_v8, %v4287_v27  ;;  %v4272_v22 = vsel %vm4256_vm13, %v4271_v35, %v4270_v44  ;;  %v4323_v25 = vsel %vm4256_vm13, %v4322_v2, %v4321_v14  ;;  %v4306_v39 = vsel %vm4256_vm13, %v4305_v31, %v4304_v45 }
 0xae7   :  { %4290 = vrot.lane.b32.xlu1 %v4289_v61, %s5186_s27  ;;  %4273 = vrot.lane.b32.xlu0 %v4272_v22, %s5187_s28  ;;  %v4357_v60 = vsel %vm4256_vm13, %v4356_v33, %v4355_v62  ;;  %v4338_v50 = vsel %vm4253_vm12, %v4337_v54, %v4336_v36  ;;  %v4372_v56 = vrot.slane %v4227_v42, 1  ;;  %v4252_v7 = vrot.slane %v4227_v42, 2  ;;  %s5196_s27 = smov 40   ;;  %s5197_s28 = smov 56  }
 0xae8   :  { %v4340_v23 = vsel %vm4256_vm13, %v4339_v18, %v4338_v50  ;;  %v4255_v38 = vrot.slane %v4228_v9, 1 }
 0xae9   :  { %v4373_v3 = vsel %vm4253_vm12, %v4372_v56, %v4371_v59  ;;  %v4254_v47 = vsel %vm4253_vm12, %v4252_v7, %v4251_v28  ;;  %v4628_v28 = vld [vmem:[%s7192_s7] ss:$0 sm:$0xff] }
 0xaea   :  { %v4374_v37 = vsel %vm4256_vm13, %v4228_v9, %v4373_v3  ;;  %v4257_v41 = vsel %vm4256_vm13, %v4255_v38, %v4254_v47 }
 0xaeb   :  { %4324 = vrot.lane.b32.xlu1 %v4323_v25, %s5189_s1  ;;  %4307 = vrot.lane.b32.xlu0 %v4306_v39, %s5188_s11 }
 0xaef   :  { %4358 = vrot.lane.b32.xlu1 %v4357_v60, %s5195_s6  ;;  %4341 = vrot.lane.b32.xlu0 %v4340_v23, %s5196_s27 }
 0xaf3   :  { %4375 = vrot.lane.b32.xlu0 %v4374_v37, %s5197_s28 }
 0xb59   :  { %v4291_v15 = vpop.permute.xlu1 %4290  ;;  %v4274_v20 = vpop.permute.xlu0 %4273 }
 0xb5a   :  { %v4378_v34 = vsel %vm30_vm0, %v4257_v41, %v4274_v20 }
 0xb5b   :  { %v4379_v5 = vsel %vm400_vm1, %v4378_v34, %v4291_v15 }
 0xb5d   :  { %v4325_v58 = vpop.permute.xlu1 %4324  ;;  %v4308_v63 = vpop.permute.xlu0 %4307 }
 0xb5e   :  { %v4380_v52 = vsel %vm421_vm2, %v4379_v5, %v4308_v63 }
 0xb5f   :  { %v4381_v43 = vsel %vm442_vm3, %v4380_v52, %v4325_v58 }
 0xb61   :  { %v4342_v4 = vpop.permute.xlu0 %4341  ;;  %v4359_v36 = vpop.permute.xlu1 %4358 }
 0xb62   :  { %v4382_v21 = vsel %vm469_vm4, %v4381_v43, %v4342_v4 }
 0xb63   :  { %v4384_v40 = vsel %vm4383_vm14, %v4382_v21, %v4359_v36 }
 0xb65   :  { %v4376_v59 = vpop.permute.xlu0 %4375 }
 0xb66   :  { %v4386_v46 = vsel %vm4385_vm15, %v4384_v40, %v4376_v59 }
 0xb67   :  { %5057 = vmatmul.mubr.msk.f32.vlgmr.msra.gmra.mrb[56].mxu0 %vm4402_vm5, %v4386_v46 }
 0xc3a   :  { %v4472_v12 = vpop.f32.mrb[56].mxu0 }
 0xc3b   :  { %v4473_v1 = vadd.f32 %v4628_v28, %v4472_v12  ;;  %v5058_v51 = vpop.f32.mrb[57].mxu0 }
 0xc3d   :  { %v4476_v48 = vmax.f32 %v4473_v1, 0.0 }
 0xc3f   :  { %4477 = vst.msk [vmem:[#allocation3] sm:$0xff] %vm442_vm3, %v4476_v48 }
 0xc40   :  { %5172 = shalt.err (!%p5169_p4)
}
 0xc41   :  { %s5173_s7 = scalar_lea.hbm %s7193_s8, 128 }
 0xc42   :  { %p5174_p5 = scmp.ne.s32.totalorder %s7193_s8, %s5173_s7  ;;  %p5177_p6 = scmp.lt.u32.totalorder %s5173_s7, %s7193_s8 }
 0xc44   :  { %p5179_p7 = pnand %p5177_p6, %p5174_p5 }
 0xc46   :  { %5182 = shalt.err (!%p5179_p7)
}
 0xc47   :  { %4487 = dma.vmem_to_hbm [thread:$0]  %s4485_s10, 128, %s7193_s8, [#allocation4]  }
 0xc48   :  { %5183 = dma.done.wait [#allocation4], 128  }
 0xc49   :  { %5184 = vsyncadd [#allocation4], 4294967168 }
 0xc4a   :  { %4491 = vsyncpa [#allocation4], 1 }

</bundles_post_ra>
